<compile_context>
chip_gen: v7x
topology: tpu7x:2x2x1
jax: 0.10.0
libtpu: 0.0.40
codegen_flags: <defaults>
</compile_context>

<pallas_src>
import jax
import jax.numpy as jnp
from jax import lax
from jax.experimental import pallas as pl
from jax.experimental.pallas import tpu as pltpu

# ---------------- static config (small synthetic shapes) ----------------
VOX = 8                        # voxel grid edge -> D = H = W = 8
LOG2_VOX = 3                   # VOX is a power of two (shift/mask index math)
V = VOX * VOX * VOX            # 512 voxels (= 4 * 128 lanes -> lane-dense outputs)
FEAT = 3                       # rgb feature channels
VOX_C = 3 + FEAT + 1 + 3       # mean xyz + mean rgb + occupancy + norm index = 10
VALS_C = 3 + FEAT + 2          # packed per-point values [x,y,z,r,g,b,1,0] = 8 rows
HID = 32                       # hidden dim of the qnet stand-in
PROP = 4                       # proprio dim (per arm)
LANG = 32                      # language embedding dim
NTOK = 8                       # language tokens
ROT_RES = 45.0                 # rotation_resolution
NUM_ROT = int(360 // ROT_RES)  # 8 rotation bins per axis
RG_DIM = 3 * NUM_ROT + 2       # q_rot_and_grip output dim = 26
NSMALL = 2 * RG_DIM + 4        # packed heads: [rg_right(26) | coll_right(2) | rg_left(26) | coll_left(2)] = 56


def _cat_lanes(parts):
    return parts[0] if len(parts) == 1 else jnp.concatenate(parts, axis=1)


# ---------------------- fused voxelize + qnet kernel ---------------------
def _make_kernel(bb_block, n):
    fv = float(VOX)
    inv_v = 1.0 / float(V)

    def kernel(vals_ref, prm_ref, ctxb_ref, w_in_ref, w_tr_ref, w_sm_ref,
               vox_ref, qtr_ref, qsm_ref):
        base = pl.program_id(0) * bb_block

        # constants shared by every batch in this block
        vox_iota = lax.broadcasted_iota(jnp.int32, (V, n), 0)          # voxel id on sublanes
        vid = lax.broadcasted_iota(jnp.int32, (1, V), 1)
        vx = (vid >> (2 * LOG2_VOX)).astype(jnp.float32)
        vy = ((vid >> LOG2_VOX) & (VOX - 1)).astype(jnp.float32)
        vz = (vid & (VOX - 1)).astype(jnp.float32)
        vnorm = jnp.concatenate([vx, vy, vz], axis=0) * (1.0 / float(VOX - 1))   # (3, V)

        # ---------------- phase 1: scatter-mean voxelization ----------------
        slabs = []
        for bb in range(bb_block):
            vals = vals_ref[bb]                                        # (8, N) channel-major
            bidx = base + bb
            bx = prm_ref[bidx, 0]
            by = prm_ref[bidx, 1]
            bz = prm_ref[bidx, 2]
            sx = prm_ref[bidx, 3]
            sy = prm_ref[bidx, 4]
            sz = prm_ref[bidx, 5]

            # lane-dense grid coords straight from the channel-major xyz rows
            gx = (vals[0:1, :] - bx) * sx                              # (1, N)
            gy = (vals[1:2, :] - by) * sy
            gz = (vals[2:3, :] - bz) * sz
            valid = ((gx >= 0.0) & (gx < fv) & (gy >= 0.0) & (gy < fv)
                     & (gz >= 0.0) & (gz < fv))                        # (1, N) drop OOB points
            flat = (gx.astype(jnp.int32) * (VOX * VOX)
                    + gy.astype(jnp.int32) * VOX
                    + gz.astype(jnp.int32))                            # (1, N) int32
            flat = jnp.where(valid, flat, -1)                          # -1 never matches a voxel

            onehot = (vox_iota == flat).astype(jnp.float32)            # (V, N)
            # channel-major scatter-sum on the MXU, attention-style A @ B^T:
            # (8, N) x (V, N) contracting both minor dims -> (8, V)
            acc = lax.dot_general(vals, onehot, (((1,), (1,)), ((), ())),
                                  preferred_element_type=jnp.float32)

            cnt = acc[6:7, :]                                          # (1, V) points per voxel
            inv_cnt = 1.0 / jnp.maximum(cnt, 1.0)
            mean6 = acc[0:6, :] * inv_cnt                              # (6, V) mean xyz + rgb
            occ = (cnt > 0.0).astype(jnp.float32)                      # (1, V)

            # slab assembled in registers, stored once, reused directly for phase 2
            slab = jnp.concatenate([mean6, occ, vnorm], axis=0)        # (10, V)
            vox_ref[bb] = slab
            slabs.append(slab)

        # ---------------- phase 2: qnet stand-in, one matmul per step --------
        slab_all = _cat_lanes(slabs)                                   # (10, BB*V)
        ctx_all = _cat_lanes([jnp.broadcast_to(ctxb_ref[bb], (HID, V))
                              for bb in range(bb_block)])              # (HID, BB*V)

        h_all = jnp.maximum(
            jnp.dot(w_in_ref[...], slab_all, preferred_element_type=jnp.float32)
            + ctx_all, 0.0)                                            # (HID, BB*V)
        qtr_all = jnp.dot(w_tr_ref[...], h_all,
                          preferred_element_type=jnp.float32)          # (2, BB*V)

        for bb in range(bb_block):
            qtr_ref[bb] = qtr_all[:, bb * V:(bb + 1) * V]              # lane-dense (2, V) store
            g = jnp.sum(h_all[:, bb * V:(bb + 1) * V], axis=1,
                        keepdims=True) * inv_v                         # (HID, 1) pooled feature
            qsm_ref[bb] = jnp.dot(w_sm_ref[...], g,
                                  preferred_element_type=jnp.float32)  # (NSMALL, 1)

    return kernel


def _fused_voxelize_qnet(vals_cm, prm, ctxb, w_in_t, w_tr_t, w_sm_t, *, block_b):
    b, _, n = vals_cm.shape
    bb = block_b
    assert b % bb == 0, "batch must be divisible by block_b"
    grid = (b // bb,)

    out_shape = (
        jax.ShapeDtypeStruct((b, VOX_C, V), jnp.float32),   # voxel features, channel-first
        jax.ShapeDtypeStruct((b, 2, V), jnp.float32),       # q_trans (row 0 = right, 1 = left)
        jax.ShapeDtypeStruct((b, NSMALL, 1), jnp.float32),  # packed rot/grip + collision heads
    )
    in_specs = [
        pl.BlockSpec((bb, VALS_C, n), lambda i: (i, 0, 0)),            # packed point values (channel-major)
        pl.BlockSpec(memory_space=pltpu.MemorySpace.SMEM),             # per-batch [bmin, 1/res] scalars
        pl.BlockSpec((bb, HID, 1), lambda i: (i, 0, 0)),               # per-batch context/bias column
        pl.BlockSpec((HID, VOX_C), lambda i: (0, 0)),                  # w_in^T
        pl.BlockSpec((2, HID), lambda i: (0, 0)),                      # packed translation heads^T
        pl.BlockSpec((NSMALL, HID), lambda i: (0, 0)),                 # packed rot/grip/collision heads^T
    ]
    out_specs = (
        pl.BlockSpec((bb, VOX_C, V), lambda i: (i, 0, 0)),
        pl.BlockSpec((bb, 2, V), lambda i: (i, 0, 0)),
        pl.BlockSpec((bb, NSMALL, 1), lambda i: (i, 0, 0)),
    )
    return pl.pallas_call(
        _make_kernel(bb, n),
        out_shape=out_shape,
        grid=grid,
        in_specs=in_specs,
        out_specs=out_specs,
        compiler_params=pltpu.CompilerParams(dimension_semantics=("parallel",)),
    )(vals_cm, prm, ctxb, w_in_t, w_tr_t, w_sm_t)


# ------------------------- parameters (deterministic) -------------------
def init_params(key):
    ks = jax.random.split(key, 12)

    def w(k, shape, scale=0.02):
        return scale * jax.random.normal(k, shape, dtype=jnp.float32)

    return {
        "w_in": w(ks[0], (VOX_C, HID)),
        "b_in": jnp.zeros((1, HID), jnp.float32),
        "wp_r": w(ks[1], (PROP, HID)),
        "wp_l": w(ks[2], (PROP, HID)),
        "wl":   w(ks[3], (LANG, HID)),
        "wt":   w(ks[4], (LANG, HID)),
        "wtr_r": w(ks[5], (HID, 1)),
        "wrg_r": w(ks[6], (HID, RG_DIM)),
        "wc_r":  w(ks[7], (HID, 2)),
        "wtr_l": w(ks[8], (HID, 1)),
        "wrg_l": w(ks[9], (HID, RG_DIM)),
        "wc_l":  w(ks[10], (HID, 2)),
    }


# ------------------------------ forward ---------------------------------
def qfunction2robots_forward(params, rgb_pcd, proprio_right, proprio_left, pcd,
                             lang_goal_emb, lang_token_embs, bounds, block_b=None):
    b = rgb_pcd[0][0].shape[0]
    rgb = [rp[0] for rp in rgb_pcd]
    feat_size = rgb[0].shape[1]

    # channel-major packed point values (free reshapes from NCHW; no point-major copies)
    pcd_cm = jnp.concatenate([p.reshape(b, 3, -1) for p in pcd], axis=2)          # (b, 3, N)
    rgb_cm = jnp.concatenate([r.reshape(b, feat_size, -1) for r in rgb], axis=2)  # (b, 3, N)
    n = pcd_cm.shape[2]
    ones_cm = jnp.ones((b, 1, n), jnp.float32)
    zero_cm = jnp.zeros((b, 1, n), jnp.float32)
    vals_cm = jnp.concatenate([pcd_cm, rgb_cm, ones_cm, zero_cm], axis=1)         # (b, 8, N)

    # per-batch voxelization scalars [bmin(3), 1/res(3), pad(2)] -> tiny SMEM table
    bounds_b = jnp.tile(bounds, (b, 1)) if bounds.shape[0] != b else bounds
    bmin = bounds_b[:, 0:3]
    bmax = bounds_b[:, 3:6]
    inv_res = float(VOX) / jnp.maximum(bmax - bmin, 1e-6)      # degenerate-bounds guard
    prm = jnp.concatenate([bmin, inv_res, jnp.zeros((b, 2), jnp.float32)], axis=1)  # (b, 8)

    # conditioning (proprio / language) folded into a single per-batch bias column
    lt_mean = jnp.mean(lang_token_embs, axis=1)                                   # (b, LANG)
    ctx = (proprio_right @ params["wp_r"] + proprio_left @ params["wp_l"]
           + lang_goal_emb @ params["wl"] + lt_mean @ params["wt"]
           + params["b_in"])                                                      # (b, HID)
    ctxb = ctx[:, :, None]                                                        # (b, HID, 1)

    # packed / transposed weights for the channel-major kernel
    w_in_t = params["w_in"].T                                                     # (HID, VOX_C)
    w_tr_t = jnp.concatenate([params["wtr_r"], params["wtr_l"]], axis=1).T        # (2, HID)
    w_sm_t = jnp.concatenate([params["wrg_r"], params["wc_r"],
                              params["wrg_l"], params["wc_l"]], axis=1).T         # (NSMALL, HID)

    # batches per grid step: BB=2 amortizes pipeline-step overhead on v5e/v6e;
    # pass block_b=1 to expose the batch axis as a parallel grid for v7x's 2 TCs.
    bb = block_b if block_b is not None else (2 if b % 2 == 0 else 1)

    vox_cm, qtr, qsm = _fused_voxelize_qnet(vals_cm, prm, ctxb,
                                            w_in_t, w_tr_t, w_sm_t, block_b=bb)

    # (b, C, V) -> NCDHW directly (channel-first slab makes torch's permute a free reshape)
    voxel_grid = vox_cm.reshape(b, VOX_C, VOX, VOX, VOX)
    q_trans_right = qtr[:, 0, :].reshape(b, 1, VOX, VOX, VOX)
    q_trans_left = qtr[:, 1, :].reshape(b, 1, VOX, VOX, VOX)

    qsm2 = qsm.reshape(b, NSMALL)
    q_rot_and_grip_right = qsm2[:, 0:RG_DIM]
    q_ignore_collisions_right = qsm2[:, RG_DIM:RG_DIM + 2]
    q_rot_and_grip_left = qsm2[:, RG_DIM + 2:2 * RG_DIM + 2]
    q_ignore_collisions_left = qsm2[:, 2 * RG_DIM + 2:NSMALL]

    return (q_trans_right, q_rot_and_grip_right, q_ignore_collisions_right,
            voxel_grid,
            q_trans_left, q_rot_and_grip_left, q_ignore_collisions_left)


if __name__ == "__main__":
    key = jax.random.PRNGKey(0)
    kp, k1, k2, k3, k4, k5, k6, k7, k8 = jax.random.split(key, 9)
    B, IMG = 2, 16

    params = init_params(kp)

    rgb0 = jax.random.normal(k1, (B, FEAT, IMG, IMG), jnp.float32)
    rgb1 = jax.random.normal(k2, (B, FEAT, IMG, IMG), jnp.float32)
    pcd0 = jax.random.uniform(k3, (B, 3, IMG, IMG), jnp.float32, minval=-1.0, maxval=1.0)
    pcd1 = jax.random.uniform(k4, (B, 3, IMG, IMG), jnp.float32, minval=-1.0, maxval=1.0)

    rgb_pcd = [(rgb0, pcd0), (rgb1, pcd1)]
    pcd = [pcd0, pcd1]
    proprio_right = jax.random.normal(k5, (B, PROP), jnp.float32)
    proprio_left = jax.random.normal(k6, (B, PROP), jnp.float32)
    lang_goal_emb = jax.random.normal(k7, (B, LANG), jnp.float32)
    lang_token_embs = jax.random.normal(k8, (B, NTOK, LANG), jnp.float32)
    bounds = jnp.array([[-1.0, -1.0, -1.0, 1.0, 1.0, 1.0]], jnp.float32)   # (1, 6)

    fwd = jax.jit(qfunction2robots_forward)
    outs = fwd(params, rgb_pcd, proprio_right, proprio_left,
               pcd, lang_goal_emb, lang_token_embs, bounds)
    jax.block_until_ready(outs)

    assert outs[0].shape == (B, 1, VOX, VOX, VOX)          # q_trans_right
    assert outs[1].shape == (B, RG_DIM)                    # q_rot_and_grip_right
    assert outs[2].shape == (B, 2)                         # q_ignore_collisions_right
    assert outs[3].shape == (B, VOX_C, VOX, VOX, VOX)      # voxel_grid (NCDHW)
    assert outs[4].shape == (B, 1, VOX, VOX, VOX)          # q_trans_left
    assert outs[5].shape == (B, RG_DIM)                    # q_rot_and_grip_left
    assert outs[6].shape == (B, 2)                         # q_ignore_collisions_left
    print("KERNEL_OK")
</pallas_src>

<mosaic_0001>
module attributes {stable_mosaic.version = 11 : i64} {
  func.func @kernel(%arg0: i32, %arg1: memref<2x8x512xf32, #tpu.memory_space<vmem>>, %arg2: memref<2x8xf32, #tpu.memory_space<smem>>, %arg3: memref<2x32x1xf32, #tpu.memory_space<vmem>>, %arg4: memref<32x10xf32, #tpu.memory_space<vmem>>, %arg5: memref<2x32xf32, #tpu.memory_space<vmem>>, %arg6: memref<56x32xf32, #tpu.memory_space<vmem>>, %arg7: memref<2x10x512xf32, #tpu.memory_space<vmem>>, %arg8: memref<2x2x512xf32, #tpu.memory_space<vmem>>, %arg9: memref<2x56x1xf32, #tpu.memory_space<vmem>>) attributes {dimension_semantics = [#tpu.dimension_semantics<parallel>], iteration_bounds = array<i64: 1>, scalar_prefetch = 0 : i64, scratch_operands = 0 : i64, tpu.core_type = #tpu.core_type<tc>, window_params = [{transform_indices = @transform_0, window_bounds = array<i64: 2, 8, 512>}, {transform_indices = @transform_1, window_bounds = array<i64: 2, 8>}, {transform_indices = @transform_2, window_bounds = array<i64: 2, 32, 1>}, {pipeline_mode = #tpu.pipeline_mode<synchronous>, transform_indices = @transform_3, window_bounds = array<i64: 32, 10>}, {pipeline_mode = #tpu.pipeline_mode<synchronous>, transform_indices = @transform_4, window_bounds = array<i64: 2, 32>}, {pipeline_mode = #tpu.pipeline_mode<synchronous>, transform_indices = @transform_5, window_bounds = array<i64: 56, 32>}, {transform_indices = @transform_6, window_bounds = array<i64: 2, 10, 512>}, {transform_indices = @transform_7, window_bounds = array<i64: 2, 2, 512>}, {transform_indices = @transform_8, window_bounds = array<i64: 2, 56, 1>}]} {
    %c2_i32 = arith.constant 2 : i32
    %0 = arith.muli %arg0, %c2_i32 : i32
    %1 = tpu.iota {dimensions = array<i32: 0>} : vector<512x512xi32>
    %2 = tpu.iota {dimensions = array<i32: 1>} : vector<1x512xi32>
    %c6_i32 = arith.constant 6 : i32
    %3 = vector.broadcast %c6_i32 : i32 to vector<1x512xi32>
    %4 = arith.shrsi %2, %3 : vector<1x512xi32>
    %5 = arith.sitofp %4 : vector<1x512xi32> to vector<1x512xf32>
    %c3_i32 = arith.constant 3 : i32
    %6 = vector.broadcast %c3_i32 : i32 to vector<1x512xi32>
    %7 = arith.shrsi %2, %6 : vector<1x512xi32>
    %c7_i32 = arith.constant 7 : i32
    %8 = vector.broadcast %c7_i32 : i32 to vector<1x512xi32>
    %9 = arith.andi %7, %8 : vector<1x512xi32>
    %10 = arith.sitofp %9 : vector<1x512xi32> to vector<1x512xf32>
    %c7_i32_0 = arith.constant 7 : i32
    %11 = vector.broadcast %c7_i32_0 : i32 to vector<1x512xi32>
    %12 = arith.andi %2, %11 : vector<1x512xi32>
    %13 = arith.sitofp %12 : vector<1x512xi32> to vector<1x512xf32>
    %14 = tpu.concatenate %5, %10, %13 in 0 : vector<1x512xf32>, vector<1x512xf32>, vector<1x512xf32> -> vector<3x512xf32>
    %cst = arith.constant 0.142857149 : f32
    %15 = vector.broadcast %cst : f32 to vector<3x512xf32>
    %16 = arith.mulf %14, %15 : vector<3x512xf32>
    %c0 = arith.constant 0 : index
    %c0_1 = arith.constant 0 : index
    %c0_2 = arith.constant 0 : index
    %17 = vector.load %arg1[%c0, %c0_1, %c0_2] : memref<2x8x512xf32, #tpu.memory_space<vmem>>, vector<1x8x512xf32>
    %18 = vector.shape_cast %17 : vector<1x8x512xf32> to vector<8x512xf32>
    %c0_i32 = arith.constant 0 : i32
    %19 = arith.addi %0, %c0_i32 : i32
    %20 = arith.index_cast %19 : i32 to index
    %c0_3 = arith.constant 0 : index
    %21 = memref.load %arg2[%20, %c0_3] : memref<2x8xf32, #tpu.memory_space<smem>>
    %22 = arith.index_cast %19 : i32 to index
    %c1 = arith.constant 1 : index
    %23 = memref.load %arg2[%22, %c1] : memref<2x8xf32, #tpu.memory_space<smem>>
    %24 = arith.index_cast %19 : i32 to index
    %c2 = arith.constant 2 : index
    %25 = memref.load %arg2[%24, %c2] : memref<2x8xf32, #tpu.memory_space<smem>>
    %26 = arith.index_cast %19 : i32 to index
    %c3 = arith.constant 3 : index
    %27 = memref.load %arg2[%26, %c3] : memref<2x8xf32, #tpu.memory_space<smem>>
    %28 = arith.index_cast %19 : i32 to index
    %c4 = arith.constant 4 : index
    %29 = memref.load %arg2[%28, %c4] : memref<2x8xf32, #tpu.memory_space<smem>>
    %30 = arith.index_cast %19 : i32 to index
    %c5 = arith.constant 5 : index
    %31 = memref.load %arg2[%30, %c5] : memref<2x8xf32, #tpu.memory_space<smem>>
    %32 = vector.extract_strided_slice %18 {offsets = [0, 0], sizes = [1, 512], strides = [1, 1]} : vector<8x512xf32> to vector<1x512xf32>
    %33 = vector.broadcast %21 : f32 to vector<1x512xf32>
    %34 = arith.subf %32, %33 : vector<1x512xf32>
    %35 = vector.broadcast %27 : f32 to vector<1x512xf32>
    %36 = arith.mulf %34, %35 : vector<1x512xf32>
    %37 = vector.extract_strided_slice %18 {offsets = [1, 0], sizes = [1, 512], strides = [1, 1]} : vector<8x512xf32> to vector<1x512xf32>
    %38 = vector.broadcast %23 : f32 to vector<1x512xf32>
    %39 = arith.subf %37, %38 : vector<1x512xf32>
    %40 = vector.broadcast %29 : f32 to vector<1x512xf32>
    %41 = arith.mulf %39, %40 : vector<1x512xf32>
    %42 = vector.extract_strided_slice %18 {offsets = [2, 0], sizes = [1, 512], strides = [1, 1]} : vector<8x512xf32> to vector<1x512xf32>
    %43 = vector.broadcast %25 : f32 to vector<1x512xf32>
    %44 = arith.subf %42, %43 : vector<1x512xf32>
    %45 = vector.broadcast %31 : f32 to vector<1x512xf32>
    %46 = arith.mulf %44, %45 : vector<1x512xf32>
    %cst_4 = arith.constant 0.000000e+00 : f32
    %47 = vector.broadcast %cst_4 : f32 to vector<1x512xf32>
    %48 = arith.cmpf oge, %36, %47 : vector<1x512xf32>
    %cst_5 = arith.constant 8.000000e+00 : f32
    %49 = vector.broadcast %cst_5 : f32 to vector<1x512xf32>
    %50 = arith.cmpf olt, %36, %49 : vector<1x512xf32>
    %51 = arith.andi %48, %50 : vector<1x512xi1>
    %cst_6 = arith.constant 0.000000e+00 : f32
    %52 = vector.broadcast %cst_6 : f32 to vector<1x512xf32>
    %53 = arith.cmpf oge, %41, %52 : vector<1x512xf32>
    %54 = arith.andi %51, %53 : vector<1x512xi1>
    %cst_7 = arith.constant 8.000000e+00 : f32
    %55 = vector.broadcast %cst_7 : f32 to vector<1x512xf32>
    %56 = arith.cmpf olt, %41, %55 : vector<1x512xf32>
    %57 = arith.andi %54, %56 : vector<1x512xi1>
    %cst_8 = arith.constant 0.000000e+00 : f32
    %58 = vector.broadcast %cst_8 : f32 to vector<1x512xf32>
    %59 = arith.cmpf oge, %46, %58 : vector<1x512xf32>
    %60 = arith.andi %57, %59 : vector<1x512xi1>
    %cst_9 = arith.constant 8.000000e+00 : f32
    %61 = vector.broadcast %cst_9 : f32 to vector<1x512xf32>
    %62 = arith.cmpf olt, %46, %61 : vector<1x512xf32>
    %63 = arith.andi %60, %62 : vector<1x512xi1>
    %64 = arith.fptosi %36 : vector<1x512xf32> to vector<1x512xi32>
    %c64_i32 = arith.constant 64 : i32
    %65 = vector.broadcast %c64_i32 : i32 to vector<1x512xi32>
    %66 = arith.muli %64, %65 : vector<1x512xi32>
    %67 = arith.fptosi %41 : vector<1x512xf32> to vector<1x512xi32>
    %c8_i32 = arith.constant 8 : i32
    %68 = vector.broadcast %c8_i32 : i32 to vector<1x512xi32>
    %69 = arith.muli %67, %68 : vector<1x512xi32>
    %70 = arith.addi %66, %69 : vector<1x512xi32>
    %71 = arith.fptosi %46 : vector<1x512xf32> to vector<1x512xi32>
    %72 = arith.addi %70, %71 : vector<1x512xi32>
    %c-1_i32 = arith.constant -1 : i32
    %73 = vector.broadcast %c-1_i32 : i32 to vector<1x512xi32>
    %74 = arith.select %63, %72, %73 : vector<1x512xi1>, vector<1x512xi32>
    %75 = vector.broadcast %74 : vector<1x512xi32> to vector<512x512xi32>
    %76 = arith.cmpi eq, %1, %75 : vector<512x512xi32>
    %77 = arith.extui %76 : vector<512x512xi1> to vector<512x512xi32>
    %78 = arith.sitofp %77 : vector<512x512xi32> to vector<512x512xf32>
    %cst_10 = arith.constant dense<0.000000e+00> : vector<8x512xf32>
    %79 = tpu.matmul %18, %78, %cst_10 {dimension_numbers = #tpu.dot_dimension_numbers<[1], [1], [0], [0], [0, 0, 1, 0], [], []>} : vector<8x512xf32>, vector<512x512xf32>, vector<8x512xf32> -> vector<8x512xf32>
    %80 = vector.extract_strided_slice %79 {offsets = [6, 0], sizes = [1, 512], strides = [1, 1]} : vector<8x512xf32> to vector<1x512xf32>
    %cst_11 = arith.constant 1.000000e+00 : f32
    %81 = vector.broadcast %cst_11 : f32 to vector<1x512xf32>
    %82 = arith.maximumf %80, %81 : vector<1x512xf32>
    %cst_12 = arith.constant 1.000000e+00 : f32
    %83 = vector.broadcast %cst_12 : f32 to vector<1x512xf32>
    %84 = arith.divf %83, %82 : vector<1x512xf32>
    %85 = vector.extract_strided_slice %79 {offsets = [0, 0], sizes = [6, 512], strides = [1, 1]} : vector<8x512xf32> to vector<6x512xf32>
    %86 = vector.broadcast %84 : vector<1x512xf32> to vector<6x512xf32>
    %87 = arith.mulf %85, %86 : vector<6x512xf32>
    %cst_13 = arith.constant 0.000000e+00 : f32
    %88 = vector.broadcast %cst_13 : f32 to vector<1x512xf32>
    %89 = arith.cmpf ogt, %80, %88 : vector<1x512xf32>
    %90 = arith.extui %89 : vector<1x512xi1> to vector<1x512xi32>
    %91 = arith.sitofp %90 : vector<1x512xi32> to vector<1x512xf32>
    %92 = tpu.concatenate %87, %91, %16 in 0 : vector<6x512xf32>, vector<1x512xf32>, vector<3x512xf32> -> vector<10x512xf32>
    %c0_14 = arith.constant 0 : index
    %c0_15 = arith.constant 0 : index
    %c0_16 = arith.constant 0 : index
    %93 = vector.load %arg7[%c0_14, %c0_15, %c0_16] : memref<2x10x512xf32, #tpu.memory_space<vmem>>, vector<1x10x512xf32>
    %94 = vector.shape_cast %93 : vector<1x10x512xf32> to vector<10x512xf32>
    %95 = vector.shape_cast %92 : vector<10x512xf32> to vector<1x10x512xf32>
    tpu.vector_store %arg7[%c0_14, %c0_15, %c0_16], %95 {strides = array<i32>} : memref<2x10x512xf32, #tpu.memory_space<vmem>>, vector<1x10x512xf32>,
    %c1_17 = arith.constant 1 : index
    %c0_18 = arith.constant 0 : index
    %c0_19 = arith.constant 0 : index
    %96 = vector.load %arg1[%c1_17, %c0_18, %c0_19] : memref<2x8x512xf32, #tpu.memory_space<vmem>>, vector<1x8x512xf32>
    %97 = vector.shape_cast %96 : vector<1x8x512xf32> to vector<8x512xf32>
    %c1_i32 = arith.constant 1 : i32
    %98 = arith.addi %0, %c1_i32 : i32
    %99 = arith.index_cast %98 : i32 to index
    %c0_20 = arith.constant 0 : index
    %100 = memref.load %arg2[%99, %c0_20] : memref<2x8xf32, #tpu.memory_space<smem>>
    %101 = arith.index_cast %98 : i32 to index
    %c1_21 = arith.constant 1 : index
    %102 = memref.load %arg2[%101, %c1_21] : memref<2x8xf32, #tpu.memory_space<smem>>
    %103 = arith.index_cast %98 : i32 to index
    %c2_22 = arith.constant 2 : index
    %104 = memref.load %arg2[%103, %c2_22] : memref<2x8xf32, #tpu.memory_space<smem>>
    %105 = arith.index_cast %98 : i32 to index
    %c3_23 = arith.constant 3 : index
    %106 = memref.load %arg2[%105, %c3_23] : memref<2x8xf32, #tpu.memory_space<smem>>
    %107 = arith.index_cast %98 : i32 to index
    %c4_24 = arith.constant 4 : index
    %108 = memref.load %arg2[%107, %c4_24] : memref<2x8xf32, #tpu.memory_space<smem>>
    %109 = arith.index_cast %98 : i32 to index
    %c5_25 = arith.constant 5 : index
    %110 = memref.load %arg2[%109, %c5_25] : memref<2x8xf32, #tpu.memory_space<smem>>
    %111 = vector.extract_strided_slice %97 {offsets = [0, 0], sizes = [1, 512], strides = [1, 1]} : vector<8x512xf32> to vector<1x512xf32>
    %112 = vector.broadcast %100 : f32 to vector<1x512xf32>
    %113 = arith.subf %111, %112 : vector<1x512xf32>
    %114 = vector.broadcast %106 : f32 to vector<1x512xf32>
    %115 = arith.mulf %113, %114 : vector<1x512xf32>
    %116 = vector.extract_strided_slice %97 {offsets = [1, 0], sizes = [1, 512], strides = [1, 1]} : vector<8x512xf32> to vector<1x512xf32>
    %117 = vector.broadcast %102 : f32 to vector<1x512xf32>
    %118 = arith.subf %116, %117 : vector<1x512xf32>
    %119 = vector.broadcast %108 : f32 to vector<1x512xf32>
    %120 = arith.mulf %118, %119 : vector<1x512xf32>
    %121 = vector.extract_strided_slice %97 {offsets = [2, 0], sizes = [1, 512], strides = [1, 1]} : vector<8x512xf32> to vector<1x512xf32>
    %122 = vector.broadcast %104 : f32 to vector<1x512xf32>
    %123 = arith.subf %121, %122 : vector<1x512xf32>
    %124 = vector.broadcast %110 : f32 to vector<1x512xf32>
    %125 = arith.mulf %123, %124 : vector<1x512xf32>
    %cst_26 = arith.constant 0.000000e+00 : f32
    %126 = vector.broadcast %cst_26 : f32 to vector<1x512xf32>
    %127 = arith.cmpf oge, %115, %126 : vector<1x512xf32>
    %cst_27 = arith.constant 8.000000e+00 : f32
    %128 = vector.broadcast %cst_27 : f32 to vector<1x512xf32>
    %129 = arith.cmpf olt, %115, %128 : vector<1x512xf32>
    %130 = arith.andi %127, %129 : vector<1x512xi1>
    %cst_28 = arith.constant 0.000000e+00 : f32
    %131 = vector.broadcast %cst_28 : f32 to vector<1x512xf32>
    %132 = arith.cmpf oge, %120, %131 : vector<1x512xf32>
    %133 = arith.andi %130, %132 : vector<1x512xi1>
    %cst_29 = arith.constant 8.000000e+00 : f32
    %134 = vector.broadcast %cst_29 : f32 to vector<1x512xf32>
    %135 = arith.cmpf olt, %120, %134 : vector<1x512xf32>
    %136 = arith.andi %133, %135 : vector<1x512xi1>
    %cst_30 = arith.constant 0.000000e+00 : f32
    %137 = vector.broadcast %cst_30 : f32 to vector<1x512xf32>
    %138 = arith.cmpf oge, %125, %137 : vector<1x512xf32>
    %139 = arith.andi %136, %138 : vector<1x512xi1>
    %cst_31 = arith.constant 8.000000e+00 : f32
    %140 = vector.broadcast %cst_31 : f32 to vector<1x512xf32>
    %141 = arith.cmpf olt, %125, %140 : vector<1x512xf32>
    %142 = arith.andi %139, %141 : vector<1x512xi1>
    %143 = arith.fptosi %115 : vector<1x512xf32> to vector<1x512xi32>
    %c64_i32_32 = arith.constant 64 : i32
    %144 = vector.broadcast %c64_i32_32 : i32 to vector<1x512xi32>
    %145 = arith.muli %143, %144 : vector<1x512xi32>
    %146 = arith.fptosi %120 : vector<1x512xf32> to vector<1x512xi32>
    %c8_i32_33 = arith.constant 8 : i32
    %147 = vector.broadcast %c8_i32_33 : i32 to vector<1x512xi32>
    %148 = arith.muli %146, %147 : vector<1x512xi32>
    %149 = arith.addi %145, %148 : vector<1x512xi32>
    %150 = arith.fptosi %125 : vector<1x512xf32> to vector<1x512xi32>
    %151 = arith.addi %149, %150 : vector<1x512xi32>
    %c-1_i32_34 = arith.constant -1 : i32
    %152 = vector.broadcast %c-1_i32_34 : i32 to vector<1x512xi32>
    %153 = arith.select %142, %151, %152 : vector<1x512xi1>, vector<1x512xi32>
    %154 = vector.broadcast %153 : vector<1x512xi32> to vector<512x512xi32>
    %155 = arith.cmpi eq, %1, %154 : vector<512x512xi32>
    %156 = arith.extui %155 : vector<512x512xi1> to vector<512x512xi32>
    %157 = arith.sitofp %156 : vector<512x512xi32> to vector<512x512xf32>
    %cst_35 = arith.constant dense<0.000000e+00> : vector<8x512xf32>
    %158 = tpu.matmul %97, %157, %cst_35 {dimension_numbers = #tpu.dot_dimension_numbers<[1], [1], [0], [0], [0, 0, 1, 0], [], []>} : vector<8x512xf32>, vector<512x512xf32>, vector<8x512xf32> -> vector<8x512xf32>
    %159 = vector.extract_strided_slice %158 {offsets = [6, 0], sizes = [1, 512], strides = [1, 1]} : vector<8x512xf32> to vector<1x512xf32>
    %cst_36 = arith.constant 1.000000e+00 : f32
    %160 = vector.broadcast %cst_36 : f32 to vector<1x512xf32>
    %161 = arith.maximumf %159, %160 : vector<1x512xf32>
    %cst_37 = arith.constant 1.000000e+00 : f32
    %162 = vector.broadcast %cst_37 : f32 to vector<1x512xf32>
    %163 = arith.divf %162, %161 : vector<1x512xf32>
    %164 = vector.extract_strided_slice %158 {offsets = [0, 0], sizes = [6, 512], strides = [1, 1]} : vector<8x512xf32> to vector<6x512xf32>
    %165 = vector.broadcast %163 : vector<1x512xf32> to vector<6x512xf32>
    %166 = arith.mulf %164, %165 : vector<6x512xf32>
    %cst_38 = arith.constant 0.000000e+00 : f32
    %167 = vector.broadcast %cst_38 : f32 to vector<1x512xf32>
    %168 = arith.cmpf ogt, %159, %167 : vector<1x512xf32>
    %169 = arith.extui %168 : vector<1x512xi1> to vector<1x512xi32>
    %170 = arith.sitofp %169 : vector<1x512xi32> to vector<1x512xf32>
    %171 = tpu.concatenate %166, %170, %16 in 0 : vector<6x512xf32>, vector<1x512xf32>, vector<3x512xf32> -> vector<10x512xf32>
    %c1_39 = arith.constant 1 : index
    %c0_40 = arith.constant 0 : index
    %c0_41 = arith.constant 0 : index
    %172 = vector.load %arg7[%c1_39, %c0_40, %c0_41] : memref<2x10x512xf32, #tpu.memory_space<vmem>>, vector<1x10x512xf32>
    %173 = vector.shape_cast %172 : vector<1x10x512xf32> to vector<10x512xf32>
    %174 = vector.shape_cast %171 : vector<10x512xf32> to vector<1x10x512xf32>
    tpu.vector_store %arg7[%c1_39, %c0_40, %c0_41], %174 {strides = array<i32>} : memref<2x10x512xf32, #tpu.memory_space<vmem>>, vector<1x10x512xf32>,
    %175 = tpu.concatenate %92, %171 in 1 : vector<10x512xf32>, vector<10x512xf32> -> vector<10x1024xf32>
    %c0_42 = arith.constant 0 : index
    %c0_43 = arith.constant 0 : index
    %c0_44 = arith.constant 0 : index
    %176 = vector.load %arg3[%c0_42, %c0_43, %c0_44] : memref<2x32x1xf32, #tpu.memory_space<vmem>>, vector<1x32x1xf32>
    %177 = vector.shape_cast %176 : vector<1x32x1xf32> to vector<32x1xf32>
    %178 = vector.shape_cast %177 : vector<32x1xf32> to vector<32x1xf32>
    %179 = vector.broadcast %178 : vector<32x1xf32> to vector<32x512xf32>
    %c1_45 = arith.constant 1 : index
    %c0_46 = arith.constant 0 : index
    %c0_47 = arith.constant 0 : index
    %180 = vector.load %arg3[%c1_45, %c0_46, %c0_47] : memref<2x32x1xf32, #tpu.memory_space<vmem>>, vector<1x32x1xf32>
    %181 = vector.shape_cast %180 : vector<1x32x1xf32> to vector<32x1xf32>
    %182 = vector.shape_cast %181 : vector<32x1xf32> to vector<32x1xf32>
    %183 = vector.broadcast %182 : vector<32x1xf32> to vector<32x512xf32>
    %184 = tpu.concatenate %179, %183 in 1 : vector<32x512xf32>, vector<32x512xf32> -> vector<32x1024xf32>
    %c0_48 = arith.constant 0 : index
    %c0_49 = arith.constant 0 : index
    %185 = vector.load %arg4[%c0_48, %c0_49] : memref<32x10xf32, #tpu.memory_space<vmem>>, vector<32x10xf32>
    %cst_50 = arith.constant dense<0.000000e+00> : vector<32x1024xf32>
    %186 = tpu.matmul %185, %175, %cst_50 {dimension_numbers = #tpu.dot_dimension_numbers<[1], [0], [0], [1], [0, 0, 1, 1], [], []>} : vector<32x10xf32>, vector<10x1024xf32>, vector<32x1024xf32> -> vector<32x1024xf32>
    %187 = arith.addf %186, %184 : vector<32x1024xf32>
    %cst_51 = arith.constant 0.000000e+00 : f32
    %188 = vector.broadcast %cst_51 : f32 to vector<32x1024xf32>
    %189 = arith.maximumf %187, %188 : vector<32x1024xf32>
    %c0_52 = arith.constant 0 : index
    %c0_53 = arith.constant 0 : index
    %190 = vector.load %arg5[%c0_52, %c0_53] : memref<2x32xf32, #tpu.memory_space<vmem>>, vector<2x32xf32>
    %cst_54 = arith.constant dense<0.000000e+00> : vector<2x1024xf32>
    %191 = tpu.matmul %190, %189, %cst_54 {dimension_numbers = #tpu.dot_dimension_numbers<[1], [0], [0], [1], [0, 0, 1, 1], [], []>} : vector<2x32xf32>, vector<32x1024xf32>, vector<2x1024xf32> -> vector<2x1024xf32>
    %192 = vector.extract_strided_slice %191 {offsets = [0, 0], sizes = [2, 512], strides = [1, 1]} : vector<2x1024xf32> to vector<2x512xf32>
    %c0_55 = arith.constant 0 : index
    %c0_56 = arith.constant 0 : index
    %c0_57 = arith.constant 0 : index
    %193 = vector.load %arg8[%c0_55, %c0_56, %c0_57] : memref<2x2x512xf32, #tpu.memory_space<vmem>>, vector<1x2x512xf32>
    %194 = vector.shape_cast %193 : vector<1x2x512xf32> to vector<2x512xf32>
    %195 = vector.shape_cast %192 : vector<2x512xf32> to vector<1x2x512xf32>
    tpu.vector_store %arg8[%c0_55, %c0_56, %c0_57], %195 {strides = array<i32>} : memref<2x2x512xf32, #tpu.memory_space<vmem>>, vector<1x2x512xf32>,
    %196 = vector.extract_strided_slice %189 {offsets = [0, 0], sizes = [32, 512], strides = [1, 1]} : vector<32x1024xf32> to vector<32x512xf32>
    %cst_58 = arith.constant dense<0.000000e+00> : vector<32xf32>
    %197 = vector.multi_reduction <add>, %196, %cst_58 [1] : vector<32x512xf32> to vector<32xf32>
    %198 = vector.shape_cast %197 : vector<32xf32> to vector<32x1xf32>
    %cst_59 = arith.constant 0.001953125 : f32
    %199 = vector.broadcast %cst_59 : f32 to vector<32x1xf32>
    %200 = arith.mulf %198, %199 : vector<32x1xf32>
    %c0_60 = arith.constant 0 : index
    %c0_61 = arith.constant 0 : index
    %201 = vector.load %arg6[%c0_60, %c0_61] : memref<56x32xf32, #tpu.memory_space<vmem>>, vector<56x32xf32>
    %cst_62 = arith.constant dense<0.000000e+00> : vector<56x1xf32>
    %202 = tpu.matmul %201, %200, %cst_62 {dimension_numbers = #tpu.dot_dimension_numbers<[1], [0], [0], [1], [0, 0, 1, 1], [], []>} : vector<56x32xf32>, vector<32x1xf32>, vector<56x1xf32> -> vector<56x1xf32>
    %c0_63 = arith.constant 0 : index
    %c0_64 = arith.constant 0 : index
    %c0_65 = arith.constant 0 : index
    %203 = vector.load %arg9[%c0_63, %c0_64, %c0_65] : memref<2x56x1xf32, #tpu.memory_space<vmem>>, vector<1x56x1xf32>
    %204 = vector.shape_cast %203 : vector<1x56x1xf32> to vector<56x1xf32>
    %205 = vector.shape_cast %202 : vector<56x1xf32> to vector<1x56x1xf32>
    tpu.vector_store %arg9[%c0_63, %c0_64, %c0_65], %205 {strides = array<i32>} : memref<2x56x1xf32, #tpu.memory_space<vmem>>, vector<1x56x1xf32>,
    %206 = vector.extract_strided_slice %191 {offsets = [0, 512], sizes = [2, 512], strides = [1, 1]} : vector<2x1024xf32> to vector<2x512xf32>
    %c1_66 = arith.constant 1 : index
    %c0_67 = arith.constant 0 : index
    %c0_68 = arith.constant 0 : index
    %207 = vector.load %arg8[%c1_66, %c0_67, %c0_68] : memref<2x2x512xf32, #tpu.memory_space<vmem>>, vector<1x2x512xf32>
    %208 = vector.shape_cast %207 : vector<1x2x512xf32> to vector<2x512xf32>
    %209 = vector.shape_cast %206 : vector<2x512xf32> to vector<1x2x512xf32>
    tpu.vector_store %arg8[%c1_66, %c0_67, %c0_68], %209 {strides = array<i32>} : memref<2x2x512xf32, #tpu.memory_space<vmem>>, vector<1x2x512xf32>,
    %210 = vector.extract_strided_slice %189 {offsets = [0, 512], sizes = [32, 512], strides = [1, 1]} : vector<32x1024xf32> to vector<32x512xf32>
    %cst_69 = arith.constant dense<0.000000e+00> : vector<32xf32>
    %211 = vector.multi_reduction <add>, %210, %cst_69 [1] : vector<32x512xf32> to vector<32xf32>
    %212 = vector.shape_cast %211 : vector<32xf32> to vector<32x1xf32>
    %cst_70 = arith.constant 0.001953125 : f32
    %213 = vector.broadcast %cst_70 : f32 to vector<32x1xf32>
    %214 = arith.mulf %212, %213 : vector<32x1xf32>
    %c0_71 = arith.constant 0 : index
    %c0_72 = arith.constant 0 : index
    %215 = vector.load %arg6[%c0_71, %c0_72] : memref<56x32xf32, #tpu.memory_space<vmem>>, vector<56x32xf32>
    %cst_73 = arith.constant dense<0.000000e+00> : vector<56x1xf32>
    %216 = tpu.matmul %215, %214, %cst_73 {dimension_numbers = #tpu.dot_dimension_numbers<[1], [0], [0], [1], [0, 0, 1, 1], [], []>} : vector<56x32xf32>, vector<32x1xf32>, vector<56x1xf32> -> vector<56x1xf32>
    %c1_74 = arith.constant 1 : index
    %c0_75 = arith.constant 0 : index
    %c0_76 = arith.constant 0 : index
    %217 = vector.load %arg9[%c1_74, %c0_75, %c0_76] : memref<2x56x1xf32, #tpu.memory_space<vmem>>, vector<1x56x1xf32>
    %218 = vector.shape_cast %217 : vector<1x56x1xf32> to vector<56x1xf32>
    %219 = vector.shape_cast %216 : vector<56x1xf32> to vector<1x56x1xf32>
    tpu.vector_store %arg9[%c1_74, %c0_75, %c0_76], %219 {strides = array<i32>} : memref<2x56x1xf32, #tpu.memory_space<vmem>>, vector<1x56x1xf32>,
    return
  }
  func.func @transform_0(%arg0: i32) -> (i32, i32, i32) {
    %c0_i32 = arith.constant 0 : i32
    %c0_i32_0 = arith.constant 0 : i32
    %c0_i32_1 = arith.constant 0 : i32
    return %arg0, %c0_i32, %c0_i32_0 : i32, i32, i32
  }
  func.func @transform_1(%arg0: i32) -> (i32, i32) {
    %c0_i32 = arith.constant 0 : i32
    %c0_i32_0 = arith.constant 0 : i32
    %c0_i32_1 = arith.constant 0 : i32
    return %c0_i32, %c0_i32_0 : i32, i32
  }
  func.func @transform_2(%arg0: i32) -> (i32, i32, i32) {
    %c0_i32 = arith.constant 0 : i32
    %c0_i32_0 = arith.constant 0 : i32
    %c0_i32_1 = arith.constant 0 : i32
    return %arg0, %c0_i32, %c0_i32_0 : i32, i32, i32
  }
  func.func @transform_3(%arg0: i32) -> (i32, i32) {
    %c0_i32 = arith.constant 0 : i32
    %c0_i32_0 = arith.constant 0 : i32
    %c0_i32_1 = arith.constant 0 : i32
    return %c0_i32, %c0_i32_0 : i32, i32
  }
  func.func @transform_4(%arg0: i32) -> (i32, i32) {
    %c0_i32 = arith.constant 0 : i32
    %c0_i32_0 = arith.constant 0 : i32
    %c0_i32_1 = arith.constant 0 : i32
    return %c0_i32, %c0_i32_0 : i32, i32
  }
  func.func @transform_5(%arg0: i32) -> (i32, i32) {
    %c0_i32 = arith.constant 0 : i32
    %c0_i32_0 = arith.constant 0 : i32
    %c0_i32_1 = arith.constant 0 : i32
    return %c0_i32, %c0_i32_0 : i32, i32
  }
  func.func @transform_6(%arg0: i32) -> (i32, i32, i32) {
    %c0_i32 = arith.constant 0 : i32
    %c0_i32_0 = arith.constant 0 : i32
    %c0_i32_1 = arith.constant 0 : i32
    return %arg0, %c0_i32, %c0_i32_0 : i32, i32, i32
  }
  func.func @transform_7(%arg0: i32) -> (i32, i32, i32) {
    %c0_i32 = arith.constant 0 : i32
    %c0_i32_0 = arith.constant 0 : i32
    %c0_i32_1 = arith.constant 0 : i32
    return %arg0, %c0_i32, %c0_i32_0 : i32, i32, i32
  }
  func.func @transform_8(%arg0: i32) -> (i32, i32, i32) {
    %c0_i32 = arith.constant 0 : i32
    %c0_i32_0 = arith.constant 0 : i32
    %c0_i32_1 = arith.constant 0 : i32
    return %arg0, %c0_i32, %c0_i32_0 : i32, i32, i32
  }
}

</mosaic_0001>

<bundles_post_ra>
// kernel: squeeze.2
= control target key start
LH: loop header
LB: loop body
LE: loop exit
PB: predicated region body
PF: predicated region fallthrough
CT: control target
= control target key end

     0   :  { %s460_s0 = inlined_call_operand.vmem [shape: f32[2,512], index: 0, kind: input, shape index: {}]   ;;  %s461_s1 = inlined_call_operand.hbm [shape: f32[2,1,8,8,8], index: 1, kind: output, shape index: {}]  }
   0x1   :  { %v299_v0 = vld [vmem:[%s460_s0 + $0x6] sm:$0x3]  ;;  %v300_v1 = vld [vmem:[%s460_s0 + $0x4] sm:$0x3]  ;;  %v301_v2 = vld [vmem:[%s460_s0 + $0x2] sm:$0x3] }
   0x2   :  { %9 = vst [vmem:[#allocation2 + $0x18] sm:$0x3] %v299_v0  ;;  %14 = vst [vmem:[#allocation2 + $0x10] sm:$0x3] %v300_v1  ;;  %v19_v3 = vld [vmem:[%s460_s0] sm:$0x3] }
   0x3   :  { %18 = vst [vmem:[#allocation2 + $0x8] sm:$0x3] %v301_v2  ;;  %20 = vst [vmem:[#allocation2] sm:$0x3] %v19_v3 }
   0x4   :  { %2 = vsyncpa [#allocation1], 0  ;;  %vm50_vm0 = vcmask 1047556   ;;  %s342_s0 = smov 120   ;;  %s343_s14 = smov 104   ;;  %vm22_vm1 = vcmask 64512  }
   0x5   :  { %s344_s15 = smov 112   ;;  %s345_s16 = smov 96  }
   0x6   :  { %s346_s17 = smov 88   ;;  %s347_s18 = smov 80  }
   0x7   :  { %s348_s19 = smov 72   ;;  %s349_s20 = smov 64  }
   0x8   :  { %s350_s21 = smov 56   ;;  %s351_s22 = smov 48  }
   0x9   :  { %v49_v4 = vld.sshfl [vmem:[#allocation2 + $0x10] sm:$0xff pattern:$0x91800000]   ;;  %s352_s23 = smov 40   ;;  %s353_s24 = smov 32  }
   0xa   :  { %v47_v5 = vld.sshfl [vmem:[#allocation2] sm:$0xff pattern:$0x99999180]   ;;  %v34_v9 = vld [vmem:[#allocation2 + $0x10] sm:$0x3]   ;;  %s354_s25 = smov 24  }
   0xb   :  { %v51_v6 = vsel %vm50_vm0, %v49_v4, %v47_v5  ;;  %v21_v7 = vld [vmem:[#allocation2] sm:$0x3]   ;;  %v27_v8 = vld [vmem:[#allocation2 + $0x8] sm:$0x3]   ;;  %37 = vst.msk [vmem:[#allocation0 + $0x20] sm:$0x1] %vm22_vm1, %v34_v9  }
   0xc   :  { %52 = vrot.lane.b32.xlu0 %v51_v6, %s342_s0  ;;  %84 = vrot.lane.b32.xlu1 %v51_v6, %s343_s14  ;;  %23 = vst.msk [vmem:[#allocation0] sm:$0x1] %vm22_vm1, %v21_v7   ;;  %25 = vst.msk [vmem:[#allocation0 + $0x3f] sm:$0x2] %vm22_vm1, %v21_v7   ;;  %v41_v10 = vld [vmem:[#allocation2 + $0x18] sm:$0x3]  }
   0xd   :  { %30 = vst.msk [vmem:[#allocation0 + $0x10] sm:$0x1] %vm22_vm1, %v27_v8   ;;  %32 = vst.msk [vmem:[#allocation0 + $0x4f] sm:$0x2] %vm22_vm1, %v27_v8   ;;  %s355_s26 = smov 16   ;;  %s356_s27 = smov 8  }
   0xe   :  { %39 = vst.msk [vmem:[#allocation0 + $0x5f] sm:$0x2] %vm22_vm1, %v34_v9   ;;  %44 = vst.msk [vmem:[#allocation0 + $0x30] sm:$0x1] %vm22_vm1, %v41_v10   ;;  %s357_s28 = smov [#allocation0]  }
   0xf   :  { %46 = vst.msk [vmem:[#allocation0 + $0x6f] sm:$0x2] %vm22_vm1, %v41_v10   ;;  %s291_s29 = sshll.u32 %s357_s28, 4  ;;  %s292_s29 = int_to_ptr.vmem [resolvable:$true] %s291_s29 }
  0x10   :  { %68 = vrot.lane.b32.xlu0 %v51_v6, %s344_s15  ;;  %100 = vrot.lane.b32.xlu1 %v51_v6, %s345_s16  ;;  %s318_s30 = scalar_lea.vmem %s292_s29, 2048  ;;  %p323_p1 = scmp.lt.s32.totalorder %s292_s29, %s292_s29 }
  0x11   :  { %p319_p0 = scmp.ne.s32.totalorder %s292_s29, %s318_s30  ;;  %p324_p2 = scmp.lt.s32.totalorder %s318_s30, %s318_s30 }
  0x13   :  { %p325_p3 = por %p324_p2, %p323_p1 }
  0x14   :  { %116 = vrot.lane.b32.xlu0 %v51_v6, %s346_s17  ;;  %132 = vrot.lane.b32.xlu1 %v51_v6, %s347_s18 }
  0x15   :  { %p326_p4 = pnand %p325_p3, %p319_p0 }
  0x18   :  { %148 = vrot.lane.b32.xlu0 %v51_v6, %s348_s19  ;;  %164 = vrot.lane.b32.xlu1 %v51_v6, %s349_s20 }
  0x1c   :  { %180 = vrot.lane.b32.xlu0 %v51_v6, %s350_s21  ;;  %196 = vrot.lane.b32.xlu1 %v51_v6, %s351_s22 }
  0x20   :  { %212 = vrot.lane.b32.xlu0 %v51_v6, %s352_s23  ;;  %228 = vrot.lane.b32.xlu1 %v51_v6, %s353_s24 }
  0x24   :  { %244 = vrot.lane.b32.xlu0 %v51_v6, %s354_s25  ;;  %260 = vrot.lane.b32.xlu1 %v51_v6, %s355_s26 }
  0x28   :  { %276 = vrot.lane.b32.xlu0 %v51_v6, %s356_s27 }
  0x7e   :  { %v53_v11 = vpop.permute.xlu0 %52   ;;  %v85_v12 = vpop.permute.xlu1 %84  }
  0x7f   :  { %56 = vst.msk [vmem:[#allocation0 + $0x1] ss:$16 sm:$0x3] %vm22_vm1, %v53_v11   ;;  %58 = vst.msk [vmem:[#allocation0 + $0x21] ss:$16 sm:$0xc] %vm22_vm1, %v53_v11  }
  0x80   :  { %60 = vst.msk [vmem:[#allocation0 - $0x1f] ss:$16 sm:$0x30] %vm22_vm1, %v53_v11   ;;  %62 = vst.msk [vmem:[#allocation0 + $0x1] ss:$16 sm:$0xc0] %vm22_vm1, %v53_v11  }
  0x81   :  { %88 = vst.msk [vmem:[#allocation0 + $0x3] ss:$16 sm:$0x3] %vm22_vm1, %v85_v12   ;;  %90 = vst.msk [vmem:[#allocation0 + $0x23] ss:$16 sm:$0xc] %vm22_vm1, %v85_v12  }
  0x82   :  { %92 = vst.msk [vmem:[#allocation0 - $0x1d] ss:$16 sm:$0x30] %vm22_vm1, %v85_v12   ;;  %94 = vst.msk [vmem:[#allocation0 + $0x3] ss:$16 sm:$0xc0] %vm22_vm1, %v85_v12   ;;  %v69_v13 = vpop.permute.xlu0 %68   ;;  %v101_v14 = vpop.permute.xlu1 %100  }
  0x83   :  { %72 = vst.msk [vmem:[#allocation0 + $0x2] ss:$16 sm:$0x3] %vm22_vm1, %v69_v13   ;;  %74 = vst.msk [vmem:[#allocation0 + $0x22] ss:$16 sm:$0xc] %vm22_vm1, %v69_v13  }
  0x84   :  { %76 = vst.msk [vmem:[#allocation0 - $0x1e] ss:$16 sm:$0x30] %vm22_vm1, %v69_v13   ;;  %78 = vst.msk [vmem:[#allocation0 + $0x2] ss:$16 sm:$0xc0] %vm22_vm1, %v69_v13  }
  0x85   :  { %104 = vst.msk [vmem:[#allocation0 + $0x4] ss:$16 sm:$0x3] %vm22_vm1, %v101_v14   ;;  %106 = vst.msk [vmem:[#allocation0 + $0x24] ss:$16 sm:$0xc] %vm22_vm1, %v101_v14  }
  0x86   :  { %108 = vst.msk [vmem:[#allocation0 - $0x1c] ss:$16 sm:$0x30] %vm22_vm1, %v101_v14   ;;  %110 = vst.msk [vmem:[#allocation0 + $0x4] ss:$16 sm:$0xc0] %vm22_vm1, %v101_v14   ;;  %v117_v15 = vpop.permute.xlu0 %116   ;;  %v133_v16 = vpop.permute.xlu1 %132  }
  0x87   :  { %120 = vst.msk [vmem:[#allocation0 + $0x5] ss:$16 sm:$0x3] %vm22_vm1, %v117_v15   ;;  %122 = vst.msk [vmem:[#allocation0 + $0x25] ss:$16 sm:$0xc] %vm22_vm1, %v117_v15  }
  0x88   :  { %124 = vst.msk [vmem:[#allocation0 - $0x1b] ss:$16 sm:$0x30] %vm22_vm1, %v117_v15   ;;  %126 = vst.msk [vmem:[#allocation0 + $0x5] ss:$16 sm:$0xc0] %vm22_vm1, %v117_v15  }
  0x89   :  { %136 = vst.msk [vmem:[#allocation0 + $0x6] ss:$16 sm:$0x3] %vm22_vm1, %v133_v16   ;;  %138 = vst.msk [vmem:[#allocation0 + $0x26] ss:$16 sm:$0xc] %vm22_vm1, %v133_v16  }
  0x8a   :  { %140 = vst.msk [vmem:[#allocation0 - $0x1a] ss:$16 sm:$0x30] %vm22_vm1, %v133_v16   ;;  %142 = vst.msk [vmem:[#allocation0 + $0x6] ss:$16 sm:$0xc0] %vm22_vm1, %v133_v16   ;;  %v149_v17 = vpop.permute.xlu0 %148   ;;  %v165_v18 = vpop.permute.xlu1 %164  }
  0x8b   :  { %152 = vst.msk [vmem:[#allocation0 + $0x7] ss:$16 sm:$0x3] %vm22_vm1, %v149_v17   ;;  %154 = vst.msk [vmem:[#allocation0 + $0x27] ss:$16 sm:$0xc] %vm22_vm1, %v149_v17  }
  0x8c   :  { %156 = vst.msk [vmem:[#allocation0 - $0x19] ss:$16 sm:$0x30] %vm22_vm1, %v149_v17   ;;  %158 = vst.msk [vmem:[#allocation0 + $0x7] ss:$16 sm:$0xc0] %vm22_vm1, %v149_v17  }
  0x8d   :  { %168 = vst.msk [vmem:[#allocation0 + $0x8] ss:$16 sm:$0x3] %vm22_vm1, %v165_v18   ;;  %170 = vst.msk [vmem:[#allocation0 + $0x28] ss:$16 sm:$0xc] %vm22_vm1, %v165_v18  }
  0x8e   :  { %172 = vst.msk [vmem:[#allocation0 - $0x18] ss:$16 sm:$0x30] %vm22_vm1, %v165_v18   ;;  %174 = vst.msk [vmem:[#allocation0 + $0x8] ss:$16 sm:$0xc0] %vm22_vm1, %v165_v18   ;;  %v181_v19 = vpop.permute.xlu0 %180   ;;  %v197_v20 = vpop.permute.xlu1 %196  }
  0x8f   :  { %184 = vst.msk [vmem:[#allocation0 + $0x9] ss:$16 sm:$0x3] %vm22_vm1, %v181_v19   ;;  %186 = vst.msk [vmem:[#allocation0 + $0x29] ss:$16 sm:$0xc] %vm22_vm1, %v181_v19  }
  0x90   :  { %188 = vst.msk [vmem:[#allocation0 - $0x17] ss:$16 sm:$0x30] %vm22_vm1, %v181_v19   ;;  %190 = vst.msk [vmem:[#allocation0 + $0x9] ss:$16 sm:$0xc0] %vm22_vm1, %v181_v19  }
  0x91   :  { %200 = vst.msk [vmem:[#allocation0 + $0xa] ss:$16 sm:$0x3] %vm22_vm1, %v197_v20   ;;  %202 = vst.msk [vmem:[#allocation0 + $0x2a] ss:$16 sm:$0xc] %vm22_vm1, %v197_v20  }
  0x92   :  { %204 = vst.msk [vmem:[#allocation0 - $0x16] ss:$16 sm:$0x30] %vm22_vm1, %v197_v20   ;;  %206 = vst.msk [vmem:[#allocation0 + $0xa] ss:$16 sm:$0xc0] %vm22_vm1, %v197_v20   ;;  %v213_v21 = vpop.permute.xlu0 %212   ;;  %v229_v22 = vpop.permute.xlu1 %228  }
  0x93   :  { %216 = vst.msk [vmem:[#allocation0 + $0xb] ss:$16 sm:$0x3] %vm22_vm1, %v213_v21   ;;  %218 = vst.msk [vmem:[#allocation0 + $0x2b] ss:$16 sm:$0xc] %vm22_vm1, %v213_v21  }
  0x94   :  { %220 = vst.msk [vmem:[#allocation0 - $0x15] ss:$16 sm:$0x30] %vm22_vm1, %v213_v21   ;;  %222 = vst.msk [vmem:[#allocation0 + $0xb] ss:$16 sm:$0xc0] %vm22_vm1, %v213_v21  }
  0x95   :  { %232 = vst.msk [vmem:[#allocation0 + $0xc] ss:$16 sm:$0x3] %vm22_vm1, %v229_v22   ;;  %234 = vst.msk [vmem:[#allocation0 + $0x2c] ss:$16 sm:$0xc] %vm22_vm1, %v229_v22  }
  0x96   :  { %236 = vst.msk [vmem:[#allocation0 - $0x14] ss:$16 sm:$0x30] %vm22_vm1, %v229_v22   ;;  %238 = vst.msk [vmem:[#allocation0 + $0xc] ss:$16 sm:$0xc0] %vm22_vm1, %v229_v22   ;;  %v245_v23 = vpop.permute.xlu0 %244   ;;  %v261_v24 = vpop.permute.xlu1 %260  }
  0x97   :  { %248 = vst.msk [vmem:[#allocation0 + $0xd] ss:$16 sm:$0x3] %vm22_vm1, %v245_v23   ;;  %250 = vst.msk [vmem:[#allocation0 + $0x2d] ss:$16 sm:$0xc] %vm22_vm1, %v245_v23  }
  0x98   :  { %252 = vst.msk [vmem:[#allocation0 - $0x13] ss:$16 sm:$0x30] %vm22_vm1, %v245_v23   ;;  %254 = vst.msk [vmem:[#allocation0 + $0xd] ss:$16 sm:$0xc0] %vm22_vm1, %v245_v23  }
  0x99   :  { %264 = vst.msk [vmem:[#allocation0 + $0xe] ss:$16 sm:$0x3] %vm22_vm1, %v261_v24   ;;  %266 = vst.msk [vmem:[#allocation0 + $0x2e] ss:$16 sm:$0xc] %vm22_vm1, %v261_v24  }
  0x9a   :  { %268 = vst.msk [vmem:[#allocation0 - $0x12] ss:$16 sm:$0x30] %vm22_vm1, %v261_v24   ;;  %270 = vst.msk [vmem:[#allocation0 + $0xe] ss:$16 sm:$0xc0] %vm22_vm1, %v261_v24   ;;  %v277_v25 = vpop.permute.xlu0 %276  }
  0x9b   :  { %280 = vst.msk [vmem:[#allocation0 + $0xf] ss:$16 sm:$0x3] %vm22_vm1, %v277_v25   ;;  %282 = vst.msk [vmem:[#allocation0 + $0x2f] ss:$16 sm:$0xc] %vm22_vm1, %v277_v25  }
  0x9c   :  { %284 = vst.msk [vmem:[#allocation0 - $0x11] ss:$16 sm:$0x30] %vm22_vm1, %v277_v25   ;;  %286 = vst.msk [vmem:[#allocation0 + $0xf] ss:$16 sm:$0xc0] %vm22_vm1, %v277_v25  }
  0x9d   :  { %329 = shalt.err (!%p326_p4)
}
  0x9e   :  { %s330_s4 = scalar_lea.hbm %s461_s1, 2048 }
  0x9f   :  { %p331_p5 = scmp.ne.s32.totalorder %s461_s1, %s330_s4  ;;  %p334_p6 = scmp.lt.u32.totalorder %s330_s4, %s461_s1 }
  0xa1   :  { %p336_p7 = pnand %p334_p6, %p331_p5 }
  0xa3   :  { %339 = shalt.err (!%p336_p7)
}
  0xa4   :  { %294 = dma.vmem_to_hbm [thread:$0]  %s292_s29, 2048, %s461_s1, [#allocation1]  }
  0xa5   :  { %340 = dma.done.wait [#allocation1], 2048  }
  0xa6   :  { %341 = vsyncadd [#allocation1], 4294965248 }
  0xa7   :  { %296 = vsyncpa [#allocation1], 1 }

// kernel: qfunction2robots_forward.1
= control target key start
LH: loop header
LB: loop body
LE: loop exit
PB: predicated region body
PF: predicated region fallthrough
CT: control target
= control target key end

     0   :  { %14 = vsyncpa [#allocation3], 0  ;;  %s8915_s0 = inlined_call_operand.vmem [shape: f32[2,8,512], index: 0, kind: input, shape index: {}]   ;;  %s8916_s1 = inlined_call_operand.vmem [shape: f32[2,8], index: 1, kind: input, shape index: {}]   ;;  %s8917_s2 = inlined_call_operand.vmem [shape: f32[2,32,1], index: 2, kind: input, shape index: {}]   ;;  %s8918_s3 = inlined_call_operand.vmem [shape: f32[32,10], index: 3, kind: input, shape index: {}]   ;;  %s8919_s4 = inlined_call_operand.vmem [shape: f32[2,32], index: 4, kind: input, shape index: {}]   ;;  %s8920_s5 = inlined_call_operand.vmem [shape: f32[56,32], index: 5, kind: input, shape index: {}]   ;;  %s8921_s6 = inlined_call_operand.vmem [shape: f32[2,10,512], index: 6, kind: output, shape index: {0}]   ;;  %s8922_s7 = inlined_call_operand.vmem [shape: f32[2,2,512], index: 7, kind: output, shape index: {1}]   ;;  %s8923_s8 = inlined_call_operand.vmem [shape: f32[2,56,1], index: 8, kind: output, shape index: {2}]  }
   0x1   :  { %s23_s29 = sshll.u32 %s8916_s1, 4  ;;  %s24_s29 = int_to_ptr.vmem [resolvable:$true] %s23_s29 }
   0x2   :  { %s5767_s30 = scalar_lea.vmem %s24_s29, 32  ;;  %p5772_p1 = scmp.lt.s32.totalorder %s24_s29, %s24_s29 }
   0x3   :  { %p5768_p0 = scmp.ne.s32.totalorder %s24_s29, %s5767_s30  ;;  %p5773_p2 = scmp.lt.s32.totalorder %s5767_s30, %s5767_s30 }
   0x5   :  { %p5774_p3 = por %p5773_p2, %p5772_p1 }
   0x7   :  { %p5775_p4 = pnand %p5774_p3, %p5768_p0 }
   0x9   :  { %5778 = shalt.err (!%p5775_p4)
}
   0xa   :  { %s5781_s9 = smov [#allocation2]  }
   0xb   :  { %26 = dma.vmem_to_smem %s24_s29, 32, %s5781_s9, [#allocation3]  }
   0xc   :  { %5779 = dma.done.wait [#allocation3], 32  }
   0xd   :  { %5780 = vsyncadd [#allocation3], 4294967264 }
   0xe   :  { %38 = sfence }
   0xf   :  { %v153_v0 = vld [vmem:[%s8915_s0 + $0x8] sm:$0xff]  ;;  %s157_s12 = sld [smem:[#allocation2]]  ;;  %s3912_s13 = sld [smem:[#allocation2 + $0x1]]  ;;  %v8924_v1 = vlaneseq  ;;  %v8925_v2 = vmov 0   ;;  %v152_v10 = vld [vmem:[%s8915_s0] sm:$0xff] }
  0x10   :  { %s3913_s1 = sld [smem:[#allocation2 + $0x2]]  ;;  %s3914_s14 = sld [smem:[#allocation2 + $0x3]]  ;;  %1178 = vmatprep.mubr.f32.mxu0 %v153_v0  ;;  %1320 = vmatprep.mubr.f32.mxu1 %v153_v0 }
  0x11   :  { %s3915_s15 = sld [smem:[#allocation2 + $0x4]]  ;;  %s3916_s16 = sld [smem:[#allocation2 + $0x5]]  ;;  %5746 = vset.pattern.permute.xlu1 %v8925_v2  ;;  %5745 = vset.pattern.permute.xlu0 %v8925_v2  ;;  %v5843_v3 = vshrl.u32 %v8924_v1, 7 }
  0x12   :  { %s4438_s25 = sld [smem:[#allocation2 + $0x81]]  ;;  %s4437_s26 = sld [smem:[#allocation2 + $0x80]] }
  0x13   :  { %v5867_v17 = vsub.s32 0, %v5843_v3  ;;  %v5958_v24 = vadd.s32 272, %v5843_v3  ;;  %v6020_v35 = vadd.s32 56, %v5843_v3  ;;  %v6024_v36 = vadd.s32 304, %v5843_v3  ;;  %s4439_s27 = sld [smem:[#allocation2 + $0x82]]  ;;  %s4441_s28 = sld [smem:[#allocation2 + $0x84]] }
  0x14   :  { %v6052_v39 = vadd.s32 72, %v5843_v3  ;;  %v6120_v48 = vadd.s32 352, %v5843_v3  ;;  %v6180_v55 = vadd.s32 136, %v5843_v3  ;;  %v6209_v58 = vadd.s32 144, %v5843_v3  ;;  %s4440_s29 = sld [smem:[#allocation2 + $0x83]]  ;;  %s4442_s10 = sld [smem:[#allocation2 + $0x85]] }
  0x15   :  { %v5845_v4 = vstv %s157_s12  ;;  %v5847_v5 = vstv %s3912_s13  ;;  %9098 = vst [vmem:[#allocation6_spill] sm:$0xff] %v6020_v35  ;;  %9099 = vst [vmem:[#allocation7_spill] sm:$0xff] %v6024_v36  ;;  %v6244_v63 = vadd.s32 168, %v5843_v3 }
  0x16   :  { %v170_v6 = vsub.f32 %v153_v0, %v5845_v4  ;;  %v5850_v7 = vstv %s3914_s14  ;;  %v180_v8 = vsub.f32 %v153_v0, %v5847_v5  ;;  %v5853_v9 = vstv %s3913_s1  ;;  %9102 = vst [vmem:[#allocation10_spill] sm:$0xff] %v6052_v39  ;;  %9111 = vst [vmem:[#allocation19_spill] sm:$0xff] %v6120_v48 }
  0x17   :  { %v5858_v11 = vstv %s3915_s15  ;;  %v190_v12 = vsub.f32 %v153_v0, %v5853_v9  ;;  %v5861_v13 = vstv %s3916_s16  ;;  %v169_v14 = vsub.f32 %v152_v10, %v5845_v4  ;;  %9118 = vst [vmem:[#allocation26_spill] sm:$0xff] %v6180_v55  ;;  %9121 = vst [vmem:[#allocation29_spill] sm:$0xff] %v6209_v58 }
  0x18   :  { %v175_v15 = vmul.f32 %v5850_v7, %v170_v6  ;;  %v185_v16 = vmul.f32 %v5858_v11, %v180_v8  ;;  %v179_v20 = vsub.f32 %v152_v10, %v5847_v5  ;;  %v189_v21 = vsub.f32 %v152_v10, %v5853_v9  ;;  %9126 = vst [vmem:[#allocation34_spill] sm:$0xff] %v6244_v63 }
  0x19   :  { %v195_v18 = vmul.f32 %v5861_v13, %v190_v12  ;;  %v174_v19 = vmul.f32 %v5850_v7, %v169_v14  ;;  %v5926_v6 = vadd.s32 8, %v5843_v3  ;;  %v5929_v8 = vadd.s32 256, %v5843_v3 }
  0x1a   :  { %vm199_vm0 = vcmp.ge.f32.partialorder %v175_v15, 0.0  ;;  %vm203_vm1 = vcmp.lt.f32.partialorder %v175_v15, 8.0  ;;  %vm211_vm2 = vcmp.ge.f32.partialorder %v185_v16, 0.0  ;;  %vm231_vm3 = vcmp.lt.f32.partialorder %v185_v16, 8.0 }
  0x1b   :  { %v215_v22 = vsel %vm211_vm2, 1, %v8925_v2  ;;  %v235_v23 = vsel %vm231_vm3, 1, %v8925_v2  ;;  %vm251_vm4 = vcmp.ge.f32.partialorder %v195_v18, 0.0  ;;  %vm271_vm5 = vcmp.lt.f32.partialorder %v195_v18, 8.0  ;;  %vm5875_vm6 = vmand %vm199_vm0, %vm203_vm1 }
  0x1c   :  { %v219_v25 = vrot.slane %v215_v22, 1  ;;  %v239_v26 = vrot.slane %v235_v23, 1  ;;  %v255_v27 = vsel %vm251_vm4, 1, %v8925_v2  ;;  %v275_v28 = vsel %vm271_vm5, 1, %v8925_v2 }
  0x1d   :  { %v259_v29 = vrot.slane %v255_v27, 2  ;;  %v279_v30 = vrot.slane %v275_v28, 2  ;;  %v5691_v31 = vtrunc.f32 %v175_v15  ;;  %v5699_v32 = vtrunc.f32 %v185_v16 }
  0x1e   :  { %vm223_vm7 = vcmp.ne.s32.totalorder %v219_v25, 0  ;;  %vm243_vm8 = vcmp.ne.s32.totalorder %v239_v26, 0  ;;  %v5707_v33 = vtrunc.f32 %v195_v18  ;;  %v184_v34 = vmul.f32 %v5858_v11, %v179_v20 }
  0x1f   :  { %vm227_vm9 = vmand %vm5875_vm6, %vm223_vm7  ;;  %vm5884_vm10 = vcmp.ne.s32.totalorder %v259_v29, 0  ;;  %vm5888_vm11 = vcmp.ne.s32.totalorder %v279_v30, 0  ;;  %v5692_v37 = vcvt.f32.s32 %v5691_v31  ;;  %v5700_v38 = vcvt.f32.s32 %v5699_v32 }
  0x20   :  { %vm5892_vm12 = vmand %vm227_vm9, %vm243_vm8  ;;  %v5708_v40 = vcvt.f32.s32 %v5707_v33  ;;  %v194_v41 = vmul.f32 %v5861_v13, %v189_v21  ;;  %vm198_vm13 = vcmp.ge.f32.partialorder %v174_v19, 0.0  ;;  %vm202_vm14 = vcmp.lt.f32.partialorder %v174_v19, 8.0 }
  0x21   :  { %v295_v42 = vmul.u32 64, %v5692_v37  ;;  %v303_v43 = vmul.u32 8, %v5700_v38  ;;  %vm210_vm15 = vcmp.ge.f32.partialorder %v184_v34, 0.0  ;;  %vm230_vm0 = vcmp.lt.f32.partialorder %v184_v34, 8.0  ;;  %vm267_vm1 = vmand %vm5892_vm12, %vm5884_vm10 }
  0x22   :  { %v319_v44 = vrot.slane %v5708_v40, 2  ;;  %v214_v45 = vsel %vm210_vm15, 1, %v8925_v2  ;;  %v234_v46 = vsel %vm230_vm0, 1, %v8925_v2  ;;  %vm250_vm2 = vcmp.ge.f32.partialorder %v194_v41, 0.0  ;;  %vm5903_vm3 = vmand %vm198_vm13, %vm202_vm14 }
  0x23   :  { %v307_v47 = vrot.slane %v303_v43, 1  ;;  %v218_v49 = vrot.slane %v214_v45, 1  ;;  %v238_v50 = vrot.slane %v234_v46, 1  ;;  %v254_v51 = vsel %vm250_vm2, 1, %v8925_v2  ;;  %vm5910_vm5 = vmand %vm267_vm1, %vm5888_vm11 }
  0x24   :  { %v258_v52 = vrot.slane %v254_v51, 2  ;;  %vm270_vm4 = vcmp.lt.f32.partialorder %v194_v41, 8.0  ;;  %v5689_v53 = vtrunc.f32 %v174_v19  ;;  %v5697_v54 = vtrunc.f32 %v184_v34 }
  0x25   :  { %v311_v56 = vadd.s32 %v307_v47, %v295_v42  ;;  %vm222_vm6 = vcmp.ne.s32.totalorder %v218_v49, 0  ;;  %vm242_vm7 = vcmp.ne.s32.totalorder %v238_v50, 0  ;;  %v274_v57 = vsel %vm270_vm4, 1, %v8925_v2 }
  0x26   :  { %vm226_vm8 = vmand %vm5903_vm3, %vm222_vm6  ;;  %vm5917_vm9 = vcmp.ne.s32.totalorder %v258_v52, 0  ;;  %v278_v59 = vrot.slane %v274_v57, 2  ;;  %v5690_v60 = vcvt.f32.s32 %v5689_v53  ;;  %v5698_v61 = vcvt.f32.s32 %v5697_v54 }
  0x27   :  { %v323_v62 = vadd.s32 %v319_v44, %v311_v56  ;;  %vm5921_vm10 = vmand %vm226_vm8, %vm242_vm7  ;;  %v5705_v0 = vtrunc.f32 %v194_v41  ;;  %v5932_v10 = vadd.s32 264, %v5843_v3  ;;  %v5944_v21 = vadd.s32 16, %v5843_v3 }
  0x28   :  { %v302_v12 = vmul.u32 8, %v5698_v61  ;;  %vm266_vm11 = vmand %vm5921_vm10, %vm5917_vm9  ;;  %vm282_vm12 = vcmp.ne.s32.totalorder %v278_v59, 0  ;;  %v294_v15 = vmul.u32 64, %v5690_v60  ;;  %v5947_v22 = vadd.s32 24, %v5843_v3 }
  0x29   :  { %v327_v14 = vsel %vm5910_vm5, %v323_v62, 4294967295  ;;  %v5706_v16 = vcvt.f32.s32 %v5705_v0  ;;  %vm286_vm1 = vmand %vm266_vm11, %vm282_vm12  ;;  %v5961_v25 = vadd.s32 280, %v5843_v3  ;;  %v8927_v26 = vmov 1.0|1.0  }
  0x2a   :  { %v5941_v18 = vrot.slane %v327_v14, %v5867_v17  ;;  %v306_v19 = vrot.slane %v302_v12, 1  ;;  %v5977_v30 = vadd.s32 32, %v5843_v3  ;;  %v5980_v31 = vadd.s32 40, %v5843_v3 }
  0x2b   :  { %v318_v20 = vrot.slane %v5706_v16, 2  ;;  %v5992_v32 = vadd.s32 288, %v5843_v3  ;;  %v5995_v33 = vadd.s32 296, %v5843_v3  ;;  %v6017_v34 = vadd.s32 48, %v5843_v3 }
  0x2c   :  { %vm347_vm13 = vcmp.eq.s32.totalorder %v5843_v3, %v5941_v18  ;;  %vm351_vm14 = vcmp.eq.s32.totalorder %v5926_v6, %v5941_v18  ;;  %vm475_vm15 = vcmp.eq.s32.totalorder %v5929_v8, %v5941_v18  ;;  %vm479_vm0 = vcmp.eq.s32.totalorder %v5932_v10, %v5941_v18 }
  0x2d   :  { %vm5101_vm2 = vmpackc.low %vm351_vm14, %vm347_vm13  ;;  %v310_v23 = vadd.s32 %v306_v19, %v294_v15  ;;  %vm355_vm4 = vcmp.eq.s32.totalorder %v5944_v21, %v5941_v18  ;;  %vm359_vm5 = vcmp.eq.s32.totalorder %v5947_v22, %v5941_v18  ;;  %vm483_vm6 = vcmp.eq.s32.totalorder %v5958_v24, %v5941_v18  ;;  %9097 = vst [vmem:[#allocation5_spill] sm:$0xff] %v6017_v34 }
  0x2e   :  { %5102 = vmatprep.subr.msk.bf16.mxu0 %vm5101_vm2, %v8927_v26  ;;  %vm5229_vm3 = vmpackc.low %vm479_vm0, %vm475_vm15  ;;  %vm487_vm7 = vcmp.eq.s32.totalorder %v5961_v25, %v5941_v18  ;;  %vm363_vm0 = vcmp.eq.s32.totalorder %v5977_v30, %v5941_v18  ;;  %v6027_v37 = vadd.s32 312, %v5843_v3  ;;  %v6049_v38 = vadd.s32 64, %v5843_v3 }
  0x2f   :  { %5230 = vmatprep.subr.msk.bf16.mxu1 %vm5229_vm3, %v8927_v26  ;;  %v322_v27 = vadd.s32 %v318_v20, %v310_v23  ;;  %vm5105_vm8 = vmpackc.low %vm359_vm5, %vm355_vm4  ;;  %v6056_v40 = vadd.s32 320, %v5843_v3  ;;  %v6059_v41 = vadd.s32 328, %v5843_v3  ;;  %v6081_v42 = vadd.s32 80, %v5843_v3  ;;  %v6294_v20 = vld [vmem:[%s8915_s0 + $0x18] sm:$0xff] }
  0x30   :  { %vm5233_vm13 = vmpackc.low %vm487_vm7, %vm483_vm6  ;;  %vm491_vm7 = vcmp.eq.s32.totalorder %v5992_v32, %v5941_v18  ;;  %9100 = vst [vmem:[#allocation8_spill] sm:$0xff] %v6027_v37  ;;  %v6084_v43 = vadd.s32 88, %v5843_v3  ;;  %v6088_v44 = vadd.s32 336, %v5843_v3  ;;  %v6091_v45 = vadd.s32 344, %v5843_v3 }
  0x31   :  { %v326_v28 = vsel %vm286_vm1, %v322_v27, 4294967295  ;;  %vm367_vm1 = vcmp.eq.s32.totalorder %v5980_v31, %v5941_v18  ;;  %9101 = vst [vmem:[#allocation9_spill] sm:$0xff] %v6049_v38  ;;  %9103 = vst [vmem:[#allocation11_spill] sm:$0xff] %v6056_v40  ;;  %v6113_v46 = vadd.s32 96, %v5843_v3  ;;  %v6116_v47 = vadd.s32 104, %v5843_v3 }
  0x32   :  { %v5974_v29 = vrot.slane %v326_v28, %v5867_v17  ;;  %vm5109_vm6 = vmpackc.low %vm367_vm1, %vm363_vm0  ;;  %9104 = vst [vmem:[#allocation12_spill] sm:$0xff] %v6059_v41  ;;  %v6123_v49 = vadd.s32 360, %v5843_v3  ;;  %v6145_v50 = vadd.s32 112, %v5843_v3  ;;  %v6148_v51 = vadd.s32 120, %v5843_v3 }
  0x33   :  { %9105 = vst [vmem:[#allocation13_spill] sm:$0xff] %v6081_v42  ;;  %9106 = vst [vmem:[#allocation14_spill] sm:$0xff] %v6084_v43  ;;  %v6152_v52 = vadd.s32 368, %v5843_v3  ;;  %v6155_v53 = vadd.s32 376, %v5843_v3  ;;  %v6177_v54 = vadd.s32 128, %v5843_v3  ;;  %v6184_v56 = vadd.s32 384, %v5843_v3 }
  0x34   :  { %vm346_vm9 = vcmp.eq.s32.totalorder %v5843_v3, %v5974_v29  ;;  %vm350_vm10 = vcmp.eq.s32.totalorder %v5926_v6, %v5974_v29  ;;  %vm474_vm11 = vcmp.eq.s32.totalorder %v5929_v8, %v5974_v29  ;;  %vm478_vm12 = vcmp.eq.s32.totalorder %v5932_v10, %v5974_v29  ;;  %9107 = vst [vmem:[#allocation15_spill] sm:$0xff] %v6088_v44 }
  0x35   :  { %vm5103_vm14 = vmpackc.low %vm350_vm10, %vm346_vm9  ;;  %vm354_vm2 = vcmp.eq.s32.totalorder %v5944_v21, %v5974_v29  ;;  %vm358_vm3 = vcmp.eq.s32.totalorder %v5947_v22, %v5974_v29  ;;  %vm482_vm4 = vcmp.eq.s32.totalorder %v5958_v24, %v5974_v29  ;;  %vm486_vm5 = vcmp.eq.s32.totalorder %v5961_v25, %v5974_v29  ;;  %9108 = vst [vmem:[#allocation16_spill] sm:$0xff] %v6091_v45 }
  0x36   :  { %5104 = vmatpush1.bf16.xpose.msk.msra.mxu0 %vm5103_vm14, %v8927_v26  ;;  %vm5231_vm15 = vmpackc.low %vm478_vm12, %vm474_vm11  ;;  %vm371_vm12 = vcmp.eq.s32.totalorder %v6017_v34, %v5941_v18  ;;  %vm362_vm14 = vcmp.eq.s32.totalorder %v5977_v30, %v5974_v29  ;;  %vm490_vm0 = vcmp.eq.s32.totalorder %v5992_v32, %v5974_v29  ;;  %vm494_vm1 = vcmp.eq.s32.totalorder %v5995_v33, %v5974_v29 }
  0x37   :  { %5232 = vmatpush1.bf16.xpose.msk.msra.mxu1 %vm5231_vm15, %v8927_v26  ;;  %5106 = vmatprep.subr.msk.bf16.mxu0 %vm5105_vm8, %v8927_v26  ;;  %vm495_vm8 = vcmp.eq.s32.totalorder %v5995_v33, %v5941_v18  ;;  %vm5107_vm9 = vmpackc.low %vm358_vm3, %vm354_vm2  ;;  %vm366_vm15 = vcmp.eq.s32.totalorder %v5980_v31, %v5974_v29  ;;  %vm499_vm3 = vcmp.eq.s32.totalorder %v6024_v36, %v5941_v18  ;;  %v6187_v57 = vadd.s32 392, %v5843_v3 }
  0x38   :  { %5234 = vmatprep.subr.msk.bf16.mxu1 %vm5233_vm13, %v8927_v26  ;;  %vm5235_vm10 = vmpackc.low %vm486_vm5, %vm482_vm4  ;;  %vm375_vm13 = vcmp.eq.s32.totalorder %v6020_v35, %v5941_v18  ;;  %vm503_vm4 = vcmp.eq.s32.totalorder %v6027_v37, %v5941_v18  ;;  %9109 = vst [vmem:[#allocation17_spill] sm:$0xff] %v6113_v46  ;;  %v6212_v59 = vadd.s32 152, %v5843_v3  ;;  %v6216_v60 = vadd.s32 400, %v5843_v3 }
  0x39   :  { %vm5237_vm11 = vmpackc.low %vm495_vm8, %vm491_vm7  ;;  %vm370_vm8 = vcmp.eq.s32.totalorder %v6017_v34, %v5974_v29  ;;  %9110 = vst [vmem:[#allocation18_spill] sm:$0xff] %v6116_v47  ;;  %v6219_v61 = vadd.s32 408, %v5843_v3  ;;  %v6241_v62 = vadd.s32 160, %v5843_v3  ;;  %v6248_v0 = vadd.s32 416, %v5843_v3 }
  0x3a   :  { %vm5113_vm2 = vmpackc.low %vm375_vm13, %vm371_vm12  ;;  %vm379_vm12 = vcmp.eq.s32.totalorder %v6049_v38, %v5941_v18  ;;  %vm383_vm13 = vcmp.eq.s32.totalorder %v6052_v39, %v5941_v18  ;;  %9112 = vst [vmem:[#allocation20_spill] sm:$0xff] %v6123_v49  ;;  %v6251_v12 = vadd.s32 424, %v5843_v3  ;;  %v6273_v14 = vadd.s32 176, %v5843_v3 }
  0x3b   :  { %vm5111_vm5 = vmpackc.low %vm366_vm15, %vm362_vm14  ;;  %vm507_vm15 = vcmp.eq.s32.totalorder %v6056_v40, %v5941_v18  ;;  %9113 = vst [vmem:[#allocation21_spill] sm:$0xff] %v6145_v50  ;;  %v6276_v15 = vadd.s32 184, %v5843_v3  ;;  %v6280_v16 = vadd.s32 432, %v5843_v3  ;;  %v6283_v19 = vadd.s32 440, %v5843_v3 }
  0x3c   :  { %vm5241_vm7 = vmpackc.low %vm503_vm4, %vm499_vm3  ;;  %vm378_vm4 = vcmp.eq.s32.totalorder %v6049_v38, %v5974_v29  ;;  %9114 = vst [vmem:[#allocation22_spill] sm:$0xff] %v6148_v51  ;;  %v6306_v23 = vadd.s32 192, %v5843_v3  ;;  %v6317_v28 = vadd.s32 200, %v5843_v3  ;;  %v182_v1 = vsub.f32 %v6294_v20, %v5847_v5 }
  0x3d   :  { %9115 = vst [vmem:[#allocation23_spill] sm:$0xff] %v6152_v52  ;;  %9116 = vst [vmem:[#allocation24_spill] sm:$0xff] %v6155_v53  ;;  %v6388_v2 = vadd.s32 464, %v5843_v3 }
  0x3e   :  { %5108 = vmatpush1.bf16.xpose.msk.msra.mxu0 %vm5107_vm9, %v8927_v26  ;;  %vm374_vm9 = vcmp.eq.s32.totalorder %v6020_v35, %v5974_v29  ;;  %9117 = vst [vmem:[#allocation25_spill] sm:$0xff] %v6177_v54  ;;  %9119 = vst [vmem:[#allocation27_spill] sm:$0xff] %v6184_v56 }
  0x3f   :  { %5236 = vmatpush1.bf16.xpose.msk.msra.mxu1 %vm5235_vm10, %v8927_v26  ;;  %5110 = vmatprep.subr.msk.bf16.mxu0 %vm5109_vm6, %v8927_v26  ;;  %vm5239_vm6 = vmpackc.low %vm494_vm1, %vm490_vm0  ;;  %vm498_vm10 = vcmp.eq.s32.totalorder %v6024_v36, %v5974_v29  ;;  %vm511_vm0 = vcmp.eq.s32.totalorder %v6059_v41, %v5941_v18  ;;  %9120 = vst [vmem:[#allocation28_spill] sm:$0xff] %v6187_v57 }
  0x40   :  { %5238 = vmatprep.subr.msk.bf16.mxu1 %vm5237_vm11, %v8927_v26  ;;  %vm502_vm11 = vcmp.eq.s32.totalorder %v6027_v37, %v5974_v29  ;;  %vm5115_vm14 = vmpackc.low %vm374_vm9, %vm370_vm8  ;;  %vm387_vm8 = vcmp.eq.s32.totalorder %v6081_v42, %v5941_v18  ;;  %vm391_vm9 = vcmp.eq.s32.totalorder %v6084_v43, %v5941_v18  ;;  %9122 = vst [vmem:[#allocation30_spill] sm:$0xff] %v6212_v59 }
  0x41   :  { %vm5243_vm1 = vmpackc.low %vm502_vm11, %vm498_vm10  ;;  %vm515_vm11 = vcmp.eq.s32.totalorder %v6088_v44, %v5941_v18  ;;  %9123 = vst [vmem:[#allocation31_spill] sm:$0xff] %v6216_v60 }
  0x42   :  { %vm5245_vm3 = vmpackc.low %vm511_vm0, %vm507_vm15  ;;  %vm386_vm0 = vcmp.eq.s32.totalorder %v6081_v42, %v5974_v29  ;;  %9124 = vst [vmem:[#allocation32_spill] sm:$0xff] %v6219_v61 }
  0x43   :  { %9125 = vst [vmem:[#allocation33_spill] sm:$0xff] %v6241_v62  ;;  %9127 = vst [vmem:[#allocation35_spill] sm:$0xff] %v6248_v0 }
  0x44   :  { %9128 = vst [vmem:[#allocation36_spill] sm:$0xff] %v6251_v12  ;;  %9129 = vst [vmem:[#allocation37_spill] sm:$0xff] %v6273_v14 }
  0x45   :  { %9130 = vst [vmem:[#allocation38_spill] sm:$0xff] %v6276_v15  ;;  %9131 = vst [vmem:[#allocation39_spill] sm:$0xff] %v6280_v16 }
  0x46   :  { %5112 = vmatpush1.bf16.xpose.msk.msra.mxu0 %vm5111_vm5, %v8927_v26  ;;  %vm382_vm5 = vcmp.eq.s32.totalorder %v6052_v39, %v5974_v29  ;;  %9132 = vst [vmem:[#allocation40_spill] sm:$0xff] %v6283_v19  ;;  %9133 = vst [vmem:[#allocation41_spill] sm:$0xff] %v6306_v23 }
  0x47   :  { %5240 = vmatpush1.bf16.xpose.msk.msra.mxu1 %vm5239_vm6, %v8927_v26  ;;  %5114 = vmatprep.subr.msk.bf16.mxu0 %vm5113_vm2, %v8927_v26  ;;  %vm5117_vm2 = vmpackc.low %vm383_vm13, %vm379_vm12  ;;  %vm506_vm6 = vcmp.eq.s32.totalorder %v6056_v40, %v5974_v29  ;;  %vm519_vm12 = vcmp.eq.s32.totalorder %v6091_v45, %v5941_v18  ;;  %9136 = vst [vmem:[#allocation42_spill] sm:$0xff] %v6317_v28 }
  0x48   :  { %5242 = vmatprep.subr.msk.bf16.mxu1 %vm5241_vm7, %v8927_v26  ;;  %vm510_vm7 = vcmp.eq.s32.totalorder %v6059_v41, %v5974_v29  ;;  %vm5119_vm10 = vmpackc.low %vm382_vm5, %vm378_vm4  ;;  %vm395_vm4 = vcmp.eq.s32.totalorder %v6113_v46, %v5941_v18  ;;  %vm399_vm5 = vcmp.eq.s32.totalorder %v6116_v47, %v5941_v18 }
  0x49   :  { %vm5247_vm13 = vmpackc.low %vm510_vm7, %vm506_vm6  ;;  %vm523_vm7 = vcmp.eq.s32.totalorder %v6120_v48, %v5941_v18 }
  0x4a   :  { %vm5249_vm15 = vmpackc.low %vm519_vm12, %vm515_vm11  ;;  %vm394_vm12 = vcmp.eq.s32.totalorder %v6113_v46, %v5974_v29 }
  0x4e   :  { %5116 = vmatpush1.bf16.xpose.msk.msra.mxu0 %vm5115_vm14, %v8927_v26  ;;  %vm5121_vm14 = vmpackc.low %vm391_vm9, %vm387_vm8  ;;  %vm527_vm8 = vcmp.eq.s32.totalorder %v6123_v49, %v5941_v18 }
  0x4f   :  { %5244 = vmatpush1.bf16.xpose.msk.msra.mxu1 %vm5243_vm1, %v8927_v26  ;;  %5118 = vmatprep.subr.msk.bf16.mxu0 %vm5117_vm2, %v8927_v26  ;;  %vm390_vm1 = vcmp.eq.s32.totalorder %v6084_v43, %v5974_v29  ;;  %vm514_vm2 = vcmp.eq.s32.totalorder %v6088_v44, %v5974_v29  ;;  %vm5253_vm11 = vmpackc.low %vm527_vm8, %vm523_vm7  ;;  %vm402_vm8 = vcmp.eq.s32.totalorder %v6145_v50, %v5974_v29 }
  0x50   :  { %5246 = vmatprep.subr.msk.bf16.mxu1 %vm5245_vm3, %v8927_v26  ;;  %vm518_vm3 = vcmp.eq.s32.totalorder %v6091_v45, %v5974_v29  ;;  %vm5123_vm6 = vmpackc.low %vm390_vm1, %vm386_vm0  ;;  %vm403_vm0 = vcmp.eq.s32.totalorder %v6145_v50, %v5941_v18  ;;  %vm407_vm1 = vcmp.eq.s32.totalorder %v6148_v51, %v5941_v18 }
  0x51   :  { %vm5251_vm9 = vmpackc.low %vm518_vm3, %vm514_vm2  ;;  %vm531_vm3 = vcmp.eq.s32.totalorder %v6152_v52, %v5941_v18 }
  0x56   :  { %5120 = vmatpush1.bf16.xpose.msk.msra.mxu0 %vm5119_vm10, %v8927_v26  ;;  %vm5125_vm10 = vmpackc.low %vm399_vm5, %vm395_vm4  ;;  %vm535_vm4 = vcmp.eq.s32.totalorder %v6155_v53, %v5941_v18 }
  0x57   :  { %5248 = vmatpush1.bf16.xpose.msk.msra.mxu1 %vm5247_vm13, %v8927_v26  ;;  %5122 = vmatprep.subr.msk.bf16.mxu0 %vm5121_vm14, %v8927_v26  ;;  %vm398_vm13 = vcmp.eq.s32.totalorder %v6116_v47, %v5974_v29  ;;  %vm522_vm14 = vcmp.eq.s32.totalorder %v6120_v48, %v5974_v29  ;;  %vm5257_vm7 = vmpackc.low %vm535_vm4, %vm531_vm3  ;;  %vm410_vm4 = vcmp.eq.s32.totalorder %v6177_v54, %v5974_v29 }
  0x58   :  { %5250 = vmatprep.subr.msk.bf16.mxu1 %vm5249_vm15, %v8927_v26  ;;  %vm526_vm15 = vcmp.eq.s32.totalorder %v6123_v49, %v5974_v29  ;;  %vm5127_vm2 = vmpackc.low %vm398_vm13, %vm394_vm12  ;;  %vm411_vm12 = vcmp.eq.s32.totalorder %v6177_v54, %v5941_v18  ;;  %vm415_vm13 = vcmp.eq.s32.totalorder %v6180_v55, %v5941_v18 }
  0x59   :  { %vm5255_vm5 = vmpackc.low %vm526_vm15, %vm522_vm14  ;;  %vm539_vm15 = vcmp.eq.s32.totalorder %v6184_v56, %v5941_v18 }
  0x5e   :  { %5124 = vmatpush1.bf16.xpose.msk.msra.mxu0 %vm5123_vm6, %v8927_v26  ;;  %vm5129_vm6 = vmpackc.low %vm407_vm1, %vm403_vm0  ;;  %vm543_vm0 = vcmp.eq.s32.totalorder %v6187_v57, %v5941_v18 }
  0x5f   :  { %5252 = vmatpush1.bf16.xpose.msk.msra.mxu1 %vm5251_vm9, %v8927_v26  ;;  %5126 = vmatprep.subr.msk.bf16.mxu0 %vm5125_vm10, %v8927_v26  ;;  %vm406_vm9 = vcmp.eq.s32.totalorder %v6148_v51, %v5974_v29  ;;  %vm530_vm10 = vcmp.eq.s32.totalorder %v6152_v52, %v5974_v29  ;;  %vm5261_vm3 = vmpackc.low %vm543_vm0, %vm539_vm15  ;;  %vm418_vm0 = vcmp.eq.s32.totalorder %v6209_v58, %v5974_v29 }
  0x60   :  { %5254 = vmatprep.subr.msk.bf16.mxu1 %vm5253_vm11, %v8927_v26  ;;  %vm534_vm11 = vcmp.eq.s32.totalorder %v6155_v53, %v5974_v29  ;;  %vm5131_vm14 = vmpackc.low %vm406_vm9, %vm402_vm8  ;;  %vm419_vm8 = vcmp.eq.s32.totalorder %v6209_v58, %v5941_v18  ;;  %vm423_vm9 = vcmp.eq.s32.totalorder %v6212_v59, %v5941_v18  ;;  %v192_v58 = vsub.f32 %v6294_v20, %v5853_v9 }
  0x61   :  { %vm5259_vm1 = vmpackc.low %vm534_vm11, %vm530_vm10  ;;  %vm547_vm11 = vcmp.eq.s32.totalorder %v6216_v60, %v5941_v18 }
  0x66   :  { %5128 = vmatpush1.bf16.xpose.msk.msra.mxu0 %vm5127_vm2, %v8927_v26  ;;  %vm5133_vm2 = vmpackc.low %vm415_vm13, %vm411_vm12  ;;  %vm551_vm12 = vcmp.eq.s32.totalorder %v6219_v61, %v5941_v18 }
  0x67   :  { %5256 = vmatpush1.bf16.xpose.msk.msra.mxu1 %vm5255_vm5, %v8927_v26  ;;  %5130 = vmatprep.subr.msk.bf16.mxu0 %vm5129_vm6, %v8927_v26  ;;  %vm414_vm5 = vcmp.eq.s32.totalorder %v6180_v55, %v5974_v29  ;;  %vm538_vm6 = vcmp.eq.s32.totalorder %v6184_v56, %v5974_v29  ;;  %vm5265_vm15 = vmpackc.low %vm551_vm12, %vm547_vm11  ;;  %vm426_vm12 = vcmp.eq.s32.totalorder %v6241_v62, %v5974_v29 }
  0x68   :  { %5258 = vmatprep.subr.msk.bf16.mxu1 %vm5257_vm7, %v8927_v26  ;;  %vm542_vm7 = vcmp.eq.s32.totalorder %v6187_v57, %v5974_v29  ;;  %vm5135_vm10 = vmpackc.low %vm414_vm5, %vm410_vm4  ;;  %vm427_vm4 = vcmp.eq.s32.totalorder %v6241_v62, %v5941_v18  ;;  %vm431_vm5 = vcmp.eq.s32.totalorder %v6244_v63, %v5941_v18  ;;  %v6350_v62 = vadd.s32 208, %v5843_v3  ;;  %v154_v57 = vld [vmem:[%s8915_s0 + $0x10] sm:$0xff] }
  0x69   :  { %vm5263_vm13 = vmpackc.low %vm542_vm7, %vm538_vm6  ;;  %vm555_vm7 = vcmp.eq.s32.totalorder %v6248_v0, %v5941_v18  ;;  %v6410_v55 = vmul.f32 %v5861_v13, %v192_v58  ;;  %v6429_v58 = vadd.s32 224, %v5843_v3  ;;  %v171_v52 = vsub.f32 %v154_v57, %v5845_v4 }
  0x6a   :  { %9145 = vst [vmem:[#allocation45_spill] sm:$0xff] %v6350_v62  ;;  %v191_v50 = vsub.f32 %v154_v57, %v5853_v9 }
  0x6e   :  { %5132 = vmatpush1.bf16.xpose.msk.msra.mxu0 %vm5131_vm14, %v8927_v26  ;;  %vm5137_vm14 = vmpackc.low %vm423_vm9, %vm419_vm8  ;;  %vm559_vm8 = vcmp.eq.s32.totalorder %v6251_v12, %v5941_v18 }
  0x6f   :  { %5260 = vmatpush1.bf16.xpose.msk.msra.mxu1 %vm5259_vm1, %v8927_v26  ;;  %5134 = vmatprep.subr.msk.bf16.mxu0 %vm5133_vm2, %v8927_v26  ;;  %vm422_vm1 = vcmp.eq.s32.totalorder %v6212_v59, %v5974_v29  ;;  %vm546_vm2 = vcmp.eq.s32.totalorder %v6216_v60, %v5974_v29  ;;  %vm5269_vm11 = vmpackc.low %vm559_vm8, %vm555_vm7  ;;  %vm434_vm7 = vcmp.eq.s32.totalorder %v6273_v14, %v5974_v29 }
  0x70   :  { %5262 = vmatprep.subr.msk.bf16.mxu1 %vm5261_vm3, %v8927_v26  ;;  %vm550_vm3 = vcmp.eq.s32.totalorder %v6219_v61, %v5974_v29  ;;  %vm5139_vm6 = vmpackc.low %vm422_vm1, %vm418_vm0  ;;  %vm435_vm0 = vcmp.eq.s32.totalorder %v6273_v14, %v5941_v18  ;;  %vm439_vm1 = vcmp.eq.s32.totalorder %v6276_v15, %v5941_v18  ;;  %vm438_vm8 = vcmp.eq.s32.totalorder %v6276_v15, %v5974_v29 }
  0x71   :  { %vm5267_vm9 = vmpackc.low %vm550_vm3, %vm546_vm2  ;;  %vm563_vm3 = vcmp.eq.s32.totalorder %v6280_v16, %v5941_v18  ;;  %v9146_v61 = vmov 1.0|1.0   ;;  %v172_v60 = vsub.f32 %v6294_v20, %v5845_v4  ;;  %v187_v59 = vmul.f32 %v5858_v11, %v182_v1 }
  0x72   :  { %v6378_v1 = vadd.s32 216, %v5843_v3  ;;  %v176_v14 = vmul.f32 %v5850_v7, %v171_v52  ;;  %v9211_v52 = vld [vmem:[#allocation26_spill] sm:$0xff] }
  0x73   :  { %v177_v56 = vmul.f32 %v5850_v7, %v172_v60  ;;  %v5703_v54 = vtrunc.f32 %v187_v59  ;;  %v5711_v60 = vtrunc.f32 %v6410_v55  ;;  %v6521_v7 = vadd.s32 480, %v5843_v3 }
  0x74   :  { %9147 = vst [vmem:[#allocation46_spill] sm:$0xff] %v6378_v1 }
  0x75   :  { %v5704_v49 = vcvt.f32.s32 %v5703_v54  ;;  %v9218_v54 = vld [vmem:[#allocation33_spill] sm:$0xff] }
  0x76   :  { %5136 = vmatpush1.bf16.xpose.msk.msra.mxu0 %vm5135_vm10, %v8927_v26  ;;  %vm5141_vm10 = vmpackc.low %vm431_vm5, %vm427_vm4  ;;  %vm567_vm4 = vcmp.eq.s32.totalorder %v6283_v19, %v5941_v18 }
  0x77   :  { %5264 = vmatpush1.bf16.xpose.msk.msra.mxu1 %vm5263_vm13, %v8927_v26  ;;  %5138 = vmatprep.subr.msk.bf16.mxu0 %vm5137_vm14, %v8927_v26  ;;  %vm430_vm13 = vcmp.eq.s32.totalorder %v6244_v63, %v5974_v29  ;;  %vm554_vm14 = vcmp.eq.s32.totalorder %v6248_v0, %v5974_v29  ;;  %v6337_v0 = vadd.s32 456, %v5843_v3  ;;  %v181_v63 = vsub.f32 %v154_v57, %v5847_v5 }
  0x78   :  { %5266 = vmatprep.subr.msk.bf16.mxu1 %vm5265_vm15, %v8927_v26  ;;  %vm558_vm15 = vcmp.eq.s32.totalorder %v6251_v12, %v5974_v29  ;;  %vm6308_vm2 = vmpackc.low %vm430_vm13, %vm426_vm12  ;;  %vm443_vm12 = vcmp.eq.s32.totalorder %v6306_v23, %v5941_v18  ;;  %vm447_vm13 = vcmp.eq.s32.totalorder %v6317_v28, %v5941_v18  ;;  %v6391_v12 = vadd.s32 472, %v5843_v3 }
  0x79   :  { %vm6321_vm5 = vmpackc.low %vm558_vm15, %vm554_vm14  ;;  %9142 = vst [vmem:[#allocation44_spill] sm:$0xff] %v6337_v0  ;;  %vm442_vm15 = vcmp.eq.s32.totalorder %v6306_v23, %v5974_v29  ;;  %v186_v51 = vmul.f32 %v5858_v11, %v181_v63  ;;  %v305_v5 = vmul.u32 8, %v5704_v49 }
  0x7a   :  { %9148 = vst [vmem:[#allocation47_spill] sm:$0xff] %v6391_v12 }
  0x7e   :  { %5140 = vmatpush1.bf16.xpose.msk.msra.mxu0 %vm5139_vm6, %v8927_v26  ;;  %vm6328_vm6 = vmpackc.low %vm439_vm1, %vm435_vm0  ;;  %vm446_vm0 = vcmp.eq.s32.totalorder %v6317_v28, %v5974_v29  ;;  %vm575_vm1 = vcmp.eq.s32.totalorder %v6337_v0, %v5941_v18 }
  0x7f   :  { %5268 = vmatpush1.bf16.xpose.msk.msra.mxu1 %vm5267_vm9, %v8927_v26  ;;  %5142 = vmatprep.subr.msk.bf16.mxu0 %vm5141_vm10, %v8927_v26  ;;  %vm6339_vm9 = vmpackc.low %vm567_vm4, %vm563_vm3  ;;  %vm562_vm10 = vcmp.eq.s32.totalorder %v6280_v16, %v5974_v29  ;;  %vm454_vm3 = vcmp.eq.s32.totalorder %v6378_v1, %v5974_v29  ;;  %v9155_v16 = vmov 0  }
  0x80   :  { %5270 = vmatprep.subr.msk.bf16.mxu1 %vm5269_vm11, %v8927_v26  ;;  %v6326_v26 = vadd.s32 448, %v5843_v3  ;;  %vm566_vm11 = vcmp.eq.s32.totalorder %v6283_v19, %v5974_v29  ;;  %v6446_v19 = vadd.s32 232, %v5843_v3 }
  0x81   :  { %vm6418_vm4 = vmpackc.low %vm566_vm11, %vm562_vm10  ;;  %vm579_vm11 = vcmp.eq.s32.totalorder %v6388_v2, %v5941_v18 }
  0x82   :  { %9139 = vst [vmem:[#allocation43_spill] sm:$0xff] %v6326_v26  ;;  %vm571_vm14 = vcmp.eq.s32.totalorder %v6326_v26, %v5941_v18  ;;  %vm6437_vm10 = vmpackc.low %vm447_vm13, %vm443_vm12  ;;  %vm578_vm13 = vcmp.eq.s32.totalorder %v6388_v2, %v5974_v29 }
  0x83   :  { %vm6456_vm12 = vmpackc.low %vm575_vm1, %vm571_vm14  ;;  %vm253_vm14 = vcmp.ge.f32.partialorder %v6410_v55, 0.0 }
  0x84   :  { %v257_v57 = vsel %vm253_vm14, 1, %v9155_v16 }
  0x86   :  { %5144 = vmatpush1.bf16.xpose.msk.msra.mxu0 %vm6308_vm2, %v9146_v61  ;;  %vm570_vm2 = vcmp.eq.s32.totalorder %v6326_v26, %v5974_v29  ;;  %v5693_v26 = vtrunc.f32 %v176_v14 }
  0x87   :  { %5272 = vmatpush1.bf16.xpose.msk.msra.mxu1 %vm6321_vm5, %v9146_v61  ;;  %5146 = vmatprep.subr.msk.bf16.mxu0 %vm6328_vm6, %v9146_v61  ;;  %vm213_vm5 = vcmp.ge.f32.partialorder %v187_v59, 0.0  ;;  %vm6404_vm6 = vmpackc.low %vm438_vm8, %vm434_vm7  ;;  %vm455_vm7 = vcmp.eq.s32.totalorder %v6378_v1, %v5941_v18  ;;  %vm583_vm8 = vcmp.eq.s32.totalorder %v6391_v12, %v5941_v18  ;;  %v5712_v1 = vcvt.f32.s32 %v5711_v60 }
  0x88   :  { %5274 = vmatprep.subr.msk.bf16.mxu1 %vm6339_vm9, %v9146_v61  ;;  %vm233_vm9 = vcmp.lt.f32.partialorder %v187_v59, 8.0  ;;  %v217_v15 = vsel %vm213_vm5, 1, %v9155_v16  ;;  %v5695_v59 = vtrunc.f32 %v177_v56  ;;  %vm212_vm5 = vcmp.ge.f32.partialorder %v186_v51, 0.0 }
  0x89   :  { %v237_v53 = vsel %vm233_vm9, 1, %v9155_v16  ;;  %v221_v4 = vrot.slane %v217_v15, 1  ;;  %vm205_vm9 = vcmp.lt.f32.partialorder %v177_v56, 8.0  ;;  %v5701_v15 = vtrunc.f32 %v186_v51 }
  0x8a   :  { %v241_v11 = vrot.slane %v237_v53, 1  ;;  %v196_v53 = vmul.f32 %v5861_v13, %v191_v50  ;;  %v5696_v27 = vcvt.f32.s32 %v5695_v59  ;;  %v6524_v13 = vadd.s32 488, %v5843_v3  ;;  %v9206_v50 = vld [vmem:[#allocation21_spill] sm:$0xff] }
  0x8b   :  { %v216_v49 = vsel %vm212_vm5, 1, %v9155_v16  ;;  %v261_v59 = vrot.slane %v257_v57, 2  ;;  %vm9174_vm5 = vcmp.eq.s32.totalorder %v6350_v62, %v5974_v29  ;;  %v5702_v28 = vcvt.f32.s32 %v5701_v15  ;;  %v9219_v15 = vld [vmem:[#allocation34_spill] sm:$0xff] }
  0x8c   :  { %v309_v57 = vrot.slane %v305_v5, 1 }
  0x8e   :  { %5148 = vmatpush1.bf16.xpose.msk.msra.mxu0 %vm6404_vm6, %v9146_v61  ;;  %vm201_vm6 = vcmp.ge.f32.partialorder %v177_v56, 0.0 }
  0x8f   :  { %5276 = vmatpush1.bf16.xpose.msk.msra.mxu1 %vm6418_vm4, %v9146_v61  ;;  %5150 = vmatprep.subr.msk.bf16.mxu0 %vm6437_vm10, %v9146_v61  ;;  %vm6489_vm4 = vmpackc.low %vm446_vm0, %vm442_vm15  ;;  %vm273_vm10 = vcmp.lt.f32.partialorder %v6410_v55, 8.0  ;;  %vm9163_vm15 = vcmp.eq.s32.totalorder %v6350_v62, %v5941_v18  ;;  %v297_v55 = vmul.u32 64, %v5696_v27  ;;  %v220_v62 = vrot.slane %v216_v49, 1 }
  0x90   :  { %5278 = vmatprep.subr.msk.bf16.mxu1 %vm6456_vm12, %v9146_v61  ;;  %vm9160_vm12 = vcmp.eq.s32.totalorder %v6337_v0, %v5974_v29  ;;  %vm6515_vm0 = vmpackc.low %vm455_vm7, %vm9163_vm15  ;;  %vm6532_vm7 = vcmp.ne.s32.totalorder %v221_v4, 0  ;;  %v277_v4 = vsel %vm273_vm10, 1, %v9155_v16  ;;  %vm587_vm15 = vcmp.eq.s32.totalorder %v6521_v7, %v5941_v18  ;;  %v9216_v0 = vld [vmem:[#allocation31_spill] sm:$0xff] }
  0x91   :  { %vm6500_vm1 = vmpackc.low %vm9160_vm12, %vm570_vm2  ;;  %vm232_vm2 = vcmp.lt.f32.partialorder %v186_v51, 8.0  ;;  %v281_v63 = vrot.slane %v277_v4, 2  ;;  %v5694_v49 = vcvt.f32.s32 %v5693_v26  ;;  %v304_v51 = vmul.u32 8, %v5702_v28  ;;  %v9207_v26 = vld [vmem:[#allocation22_spill] sm:$0xff] }
  0x92   :  { %vm6528_vm14 = vmand %vm201_vm6, %vm205_vm9  ;;  %vm463_vm6 = vcmp.eq.s32.totalorder %v6446_v19, %v5941_v18  ;;  %vm6549_vm9 = vcmp.ne.s32.totalorder %v241_v11, 0  ;;  %v236_v11 = vsel %vm232_vm2, 1, %v9155_v16  ;;  %vm200_vm2 = vcmp.ge.f32.partialorder %v176_v14, 0.0 }
  0x93   :  { %vm6543_vm12 = vmpackc.low %vm583_vm8, %vm579_vm11  ;;  %vm252_vm11 = vcmp.ge.f32.partialorder %v196_v53, 0.0  ;;  %v240_v27 = vrot.slane %v236_v11, 1  ;;  %v313_v4 = vadd.s32 %v309_v57, %v297_v55  ;;  %v321_v11 = vrot.slane %v5712_v1, 2  ;;  %v9208_v1 = vld [vmem:[#allocation23_spill] sm:$0xff] }
  0x94   :  { %vm6562_vm8 = vmpackc.low %vm454_vm3, %vm9174_vm5  ;;  %vm9177_vm3 = vcmp.eq.s32.totalorder %v6391_v12, %v5974_v29  ;;  %vm204_vm5 = vcmp.lt.f32.partialorder %v176_v14, 8.0  ;;  %v256_v5 = vsel %vm252_vm11, 1, %v9155_v16  ;;  %vm6629_vm11 = vcmp.ne.s32.totalorder %v220_v62, 0 }
  0x95   :  { %vm229_vm10 = vmand %vm6528_vm14, %vm6532_vm7  ;;  %vm458_vm7 = vcmp.eq.s32.totalorder %v6429_v58, %v5974_v29  ;;  %v6646_v28 = vadd.s32 240, %v5843_v3  ;;  %v6649_v62 = vadd.s32 248, %v5843_v3  ;;  %v260_v14 = vrot.slane %v256_v5, 2 }
  0x96   :  { %5152 = vmatpush1.bf16.xpose.msk.msra.mxu0 %vm6489_vm4, %v9146_v61  ;;  %vm6586_vm4 = vmpackc.low %vm9177_vm3, %vm578_vm13  ;;  %vm6607_vm3 = vcmp.ne.s32.totalorder %v261_v59, 0  ;;  %v5709_v59 = vtrunc.f32 %v196_v53  ;;  %v296_v56 = vmul.u32 64, %v5694_v49  ;;  %v308_v55 = vrot.slane %v304_v51, 1 }
  0x97   :  { %5280 = vmatpush1.bf16.xpose.msk.msra.mxu1 %vm6500_vm1, %v9146_v61  ;;  %5154 = vmatprep.subr.msk.bf16.mxu0 %vm6515_vm0, %v9146_v61  ;;  %vm591_vm1 = vcmp.eq.s32.totalorder %v6524_v13, %v5941_v18  ;;  %vm9180_vm0 = vcmp.eq.s32.totalorder %v6429_v58, %v5941_v18  ;;  %v6677_v5 = vadd.s32 504, %v5843_v3 }
  0x98   :  { %5282 = vmatprep.subr.msk.bf16.mxu1 %vm6543_vm12, %v9146_v61  ;;  %vm6603_vm13 = vmpackc.low %vm463_vm6, %vm9180_vm0  ;;  %vm272_vm6 = vcmp.lt.f32.partialorder %v196_v53, 8.0  ;;  %v5710_v57 = vcvt.f32.s32 %v5709_v59  ;;  %v312_v12 = vadd.s32 %v308_v55, %v296_v56  ;;  %v9212_v56 = vld [vmem:[#allocation27_spill] sm:$0xff]  ;;  %v9213_v55 = vld [vmem:[#allocation28_spill] sm:$0xff] }
  0x99   :  { %vm6620_vm12 = vmand %vm229_vm10, %vm6549_vm9  ;;  %vm6655_vm10 = vcmp.ne.s32.totalorder %v281_v63, 0  ;;  %v276_v53 = vsel %vm272_vm6, 1, %v9155_v16  ;;  %v6674_v63 = vadd.s32 496, %v5843_v3 }
  0x9a   :  { %vm6625_vm0 = vmand %vm200_vm2, %vm204_vm5  ;;  %vm462_vm2 = vcmp.eq.s32.totalorder %v6446_v19, %v5974_v29  ;;  %vm590_vm5 = vcmp.eq.s32.totalorder %v6524_v13, %v5974_v29  ;;  %v280_v9 = vrot.slane %v276_v53, 2  ;;  %v320_v60 = vrot.slane %v5710_v57, 2  ;;  %v9210_v53 = vld [vmem:[#allocation25_spill] sm:$0xff] }
  0x9b   :  { %vm6639_vm14 = vmpackc.low %vm591_vm1, %vm587_vm15  ;;  %vm6664_vm1 = vcmp.ne.s32.totalorder %v240_v27, 0  ;;  %v325_v27 = vadd.s32 %v321_v11, %v313_v4  ;;  %v5763_v11 = vld [vmem:[%s8915_s0] sm:$0xff] }
  0x9c   :  { %vm269_vm9 = vmand %vm6620_vm12, %vm6607_vm3  ;;  %vm467_vm12 = vcmp.eq.s32.totalorder %v6646_v28, %v5941_v18  ;;  %v324_v59 = vadd.s32 %v320_v60, %v312_v12  ;;  %v9214_v57 = vld [vmem:[#allocation29_spill] sm:$0xff]  ;;  %v9220_v12 = vld [vmem:[#allocation35_spill] sm:$0xff] }
  0x9d   :  { %vm228_vm15 = vmand %vm6625_vm0, %vm6629_vm11  ;;  %vm595_vm11 = vcmp.eq.s32.totalorder %v6674_v63, %v5941_v18  ;;  %v9221_v60 = vld [vmem:[#allocation36_spill] sm:$0xff]  ;;  %v9223_v4 = vld [vmem:[#allocation37_spill] sm:$0xff] }
  0x9e   :  { %5156 = vmatpush1.bf16.xpose.msk.msra.mxu0 %vm6562_vm8, %v9146_v61  ;;  %vm586_vm8 = vcmp.eq.s32.totalorder %v6521_v7, %v5974_v29  ;;  %vm6696_vm6 = vmand %vm269_vm9, %vm6655_vm10  ;;  %vm599_vm9 = vcmp.eq.s32.totalorder %v6677_v5, %v5941_v18  ;;  %vm284_vm10 = vcmp.ne.s32.totalorder %v280_v9, 0  ;;  %v9217_v9 = vld [vmem:[#allocation32_spill] sm:$0xff] }
  0x9f   :  { %5284 = vmatpush1.bf16.xpose.msk.msra.mxu1 %vm6586_vm4, %v9146_v61  ;;  %5158 = vmatprep.subr.msk.bf16.mxu0 %vm6603_vm13, %v9146_v61  ;;  %vm6710_vm4 = vmand %vm228_vm15, %vm6664_vm1  ;;  %vm6714_vm13 = vcmp.ne.s32.totalorder %v260_v14, 0  ;;  %v329_v49 = vsel %vm6696_vm6, %v325_v27, 4294967295  ;;  %vm594_vm6 = vcmp.eq.s32.totalorder %v6674_v63, %v5974_v29  ;;  %v9209_v14 = vld [vmem:[#allocation24_spill] sm:$0xff]  ;;  %v9215_v27 = vld [vmem:[#allocation30_spill] sm:$0xff] }
  0xa0   :  { %5286 = vmatprep.subr.msk.bf16.mxu1 %vm6639_vm14, %v9146_v61  ;;  %vm5159_vm3 = vmpackc.low %vm462_vm2, %vm458_vm7  ;;  %vm471_vm14 = vcmp.eq.s32.totalorder %v6649_v62, %v5941_v18  ;;  %v6736_v51 = vrot.slane %v329_v49, %v5867_v17  ;;  %v6982_v49 = vld [vmem:[%s8915_s0 + $0x28] sm:$0xff] }
  0xa1   :  { %vm5287_vm0 = vmpackc.low %vm590_vm5, %vm586_vm8  ;;  %vm466_vm8 = vcmp.eq.s32.totalorder %v6646_v28, %v5974_v29  ;;  %vm470_vm5 = vcmp.eq.s32.totalorder %v6649_v62, %v5974_v29 }
  0xa2   :  { %vm268_vm7 = vmand %vm6710_vm4, %vm6714_vm13  ;;  %vm598_vm4 = vcmp.eq.s32.totalorder %v6677_v5, %v5974_v29  ;;  %vm349_vm13 = vcmp.eq.s32.totalorder %v5843_v3, %v6736_v51 }
  0xa3   :  { %vm5161_vm15 = vmpackc.low %vm471_vm14, %vm467_vm12  ;;  %vm477_vm14 = vcmp.eq.s32.totalorder %v5929_v8, %v6736_v51 }
  0xa4   :  { %vm5289_vm1 = vmpackc.low %vm599_vm9, %vm595_vm11 }
  0xa5   :  { %vm6739_vm2 = vmand %vm268_vm7, %vm284_vm10  ;;  %vm357_vm10 = vcmp.eq.s32.totalorder %v5944_v21, %v6736_v51 }
  0xa6   :  { %5160 = vmatpush1.bf16.xpose.msk.msra.mxu0 %vm5159_vm3, %v9146_v61  ;;  %vm353_vm3 = vcmp.eq.s32.totalorder %v5926_v6, %v6736_v51  ;;  %v328_v18 = vsel %vm6739_vm2, %v324_v59, 4294967295  ;;  %vm5163_vm12 = vmpackc.low %vm470_vm5, %vm466_vm8  ;;  %v6984_v59 = vstv %s4438_s25 }
  0xa7   :  { %5288 = vmatpush1.bf16.xpose.msk.msra.mxu1 %vm5287_vm0, %v9146_v61  ;;  %5162 = vmatprep.subr.msk.bf16.mxu0 %vm5161_vm15, %v9146_v61  ;;  %vm481_vm0 = vcmp.eq.s32.totalorder %v5932_v10, %v6736_v51  ;;  %vm5291_vm11 = vmpackc.low %vm598_vm4, %vm594_vm6  ;;  %v6765_v29 = vrot.slane %v328_v18, %v5867_v17  ;;  %vm361_vm15 = vcmp.eq.s32.totalorder %v5947_v22, %v6736_v51  ;;  %v9224_v18 = vld [vmem:[#allocation38_spill] sm:$0xff] }
  0xa8   :  { %5290 = vmatprep.subr.msk.bf16.mxu1 %vm5289_vm1, %v9146_v61  ;;  %vm5165_vm9 = vmpackc.low %vm353_vm3, %vm349_vm13  ;;  %vm485_vm4 = vcmp.eq.s32.totalorder %v5958_v24, %v6736_v51  ;;  %vm489_vm13 = vcmp.eq.s32.totalorder %v5961_v25, %v6736_v51  ;;  %9222 = vst [vmem:[#allocation48_spill] sm:$0xff] %v6984_v59 }
  0xa9   :  { %vm5293_vm7 = vmpackc.low %vm481_vm0, %vm477_vm14  ;;  %vm348_vm1 = vcmp.eq.s32.totalorder %v5843_v3, %v6765_v29  ;;  %vm352_vm2 = vcmp.eq.s32.totalorder %v5926_v6, %v6765_v29  ;;  %vm476_vm8 = vcmp.eq.s32.totalorder %v5929_v8, %v6765_v29  ;;  %vm480_vm5 = vcmp.eq.s32.totalorder %v5932_v10, %v6765_v29 }
  0xaa   :  { %vm5169_vm6 = vmpackc.low %vm361_vm15, %vm357_vm10  ;;  %vm365_vm0 = vcmp.eq.s32.totalorder %v5977_v30, %v6736_v51  ;;  %vm484_vm10 = vcmp.eq.s32.totalorder %v5958_v24, %v6765_v29  ;;  %vm488_vm15 = vcmp.eq.s32.totalorder %v5961_v25, %v6765_v29 }
  0xab   :  { %vm5167_vm3 = vmpackc.low %vm352_vm2, %vm348_vm1  ;;  %vm493_vm2 = vcmp.eq.s32.totalorder %v5992_v32, %v6736_v51 }
  0xac   :  { %vm5297_vm14 = vmpackc.low %vm489_vm13, %vm485_vm4  ;;  %vm364_vm13 = vcmp.eq.s32.totalorder %v5977_v30, %v6765_v29 }
  0xae   :  { %5164 = vmatpush1.bf16.xpose.msk.msra.mxu0 %vm5163_vm12, %v9146_v61  ;;  %vm5295_vm12 = vmpackc.low %vm480_vm5, %vm476_vm8  ;;  %vm497_vm8 = vcmp.eq.s32.totalorder %v5995_v33, %v6736_v51 }
  0xaf   :  { %5292 = vmatpush1.bf16.xpose.msk.msra.mxu1 %vm5291_vm11, %v9146_v61  ;;  %5166 = vmatprep.subr.msk.bf16.mxu0 %vm5165_vm9, %v9146_v61  ;;  %vm369_vm11 = vcmp.eq.s32.totalorder %v5980_v31, %v6736_v51  ;;  %vm356_vm9 = vcmp.eq.s32.totalorder %v5944_v21, %v6765_v29  ;;  %vm5301_vm4 = vmpackc.low %vm497_vm8, %vm493_vm2  ;;  %vm372_vm8 = vcmp.eq.s32.totalorder %v6017_v34, %v6765_v29 }
  0xb0   :  { %5294 = vmatprep.subr.msk.bf16.mxu1 %vm5293_vm7, %v9146_v61  ;;  %vm360_vm7 = vcmp.eq.s32.totalorder %v5947_v22, %v6765_v29  ;;  %vm5173_vm1 = vmpackc.low %vm369_vm11, %vm365_vm0  ;;  %vm373_vm0 = vcmp.eq.s32.totalorder %v6017_v34, %v6736_v51  ;;  %vm377_vm11 = vcmp.eq.s32.totalorder %v6020_v35, %v6736_v51 }
  0xb1   :  { %vm5171_vm5 = vmpackc.low %vm360_vm7, %vm356_vm9  ;;  %vm501_vm7 = vcmp.eq.s32.totalorder %v6024_v36, %v6736_v51 }
  0xb5   :  { %1179 = vmatmul.mubr.f32.vlgmr.msra.gmra.mrb[0].mxu0 %v5763_v11 }
  0xb6   :  { %5168 = vmatpush1.bf16.xpose.msk.msra.mxu0 %vm5167_vm3, %v9146_v61  ;;  %1321 = vmatmul.mubr.f32.vlgmr.msra.gmra.mrb[0].mxu1 %v5763_v11  ;;  %vm368_vm3 = vcmp.eq.s32.totalorder %v5980_v31, %v6765_v29  ;;  %v6995_v11 = vstv %s4437_s26 }
  0xb7   :  { %5296 = vmatpush1.bf16.xpose.msk.msra.mxu1 %vm5295_vm12, %v9146_v61  ;;  %5170 = vmatprep.subr.msk.bf16.mxu0 %vm5169_vm6, %v9146_v61  ;;  %vm5299_vm6 = vmpackc.low %vm488_vm15, %vm484_vm10  ;;  %vm492_vm12 = vcmp.eq.s32.totalorder %v5992_v32, %v6765_v29  ;;  %vm505_vm10 = vcmp.eq.s32.totalorder %v6027_v37, %v6736_v51  ;;  %9225 = vst [vmem:[#allocation49_spill] sm:$0xff] %v6995_v11 }
  0xb8   :  { %5298 = vmatprep.subr.msk.bf16.mxu1 %vm5297_vm14, %v9146_v61  ;;  %1249 = vmatprep.mubr.f32.mxu0 %v6294_v20  ;;  %vm496_vm14 = vcmp.eq.s32.totalorder %v5995_v33, %v6765_v29  ;;  %vm5175_vm9 = vmpackc.low %vm368_vm3, %vm364_vm13  ;;  %vm381_vm13 = vcmp.eq.s32.totalorder %v6049_v38, %v6736_v51  ;;  %vm385_vm3 = vcmp.eq.s32.totalorder %v6052_v39, %v6736_v51 }
  0xb9   :  { %1391 = vmatprep.mubr.f32.mxu1 %v6294_v20  ;;  %vm5303_vm15 = vmpackc.low %vm496_vm14, %vm492_vm12  ;;  %vm509_vm14 = vcmp.eq.s32.totalorder %v6056_v40, %v6736_v51  ;;  %v9205_v20 = vld [vmem:[#allocation20_spill] sm:$0xff] }
  0xba   :  { %vm5305_vm2 = vmpackc.low %vm505_vm10, %vm501_vm7  ;;  %vm380_vm10 = vcmp.eq.s32.totalorder %v6049_v38, %v6765_v29 }
  0xbe   :  { %5172 = vmatpush1.bf16.xpose.msk.msra.mxu0 %vm5171_vm5, %v9146_v61  ;;  %vm376_vm5 = vcmp.eq.s32.totalorder %v6020_v35, %v6765_v29 }
  0xbf   :  { %5300 = vmatpush1.bf16.xpose.msk.msra.mxu1 %vm5299_vm6, %v9146_v61  ;;  %5174 = vmatprep.subr.msk.bf16.mxu0 %vm5173_vm1, %v9146_v61  ;;  %vm5177_vm1 = vmpackc.low %vm377_vm11, %vm373_vm0  ;;  %vm500_vm6 = vcmp.eq.s32.totalorder %v6024_v36, %v6765_v29  ;;  %vm513_vm0 = vcmp.eq.s32.totalorder %v6059_v41, %v6736_v51 }
  0xc0   :  { %5302 = vmatprep.subr.msk.bf16.mxu1 %vm5301_vm4, %v9146_v61  ;;  %vm504_vm4 = vcmp.eq.s32.totalorder %v6027_v37, %v6765_v29  ;;  %vm5179_vm12 = vmpackc.low %vm376_vm5, %vm372_vm8  ;;  %vm389_vm8 = vcmp.eq.s32.totalorder %v6081_v42, %v6736_v51  ;;  %vm393_vm5 = vcmp.eq.s32.totalorder %v6084_v43, %v6736_v51 }
  0xc1   :  { %vm5307_vm11 = vmpackc.low %vm504_vm4, %vm500_vm6  ;;  %vm517_vm4 = vcmp.eq.s32.totalorder %v6088_v44, %v6736_v51 }
  0xc2   :  { %vm5309_vm7 = vmpackc.low %vm513_vm0, %vm509_vm14  ;;  %vm388_vm0 = vcmp.eq.s32.totalorder %v6081_v42, %v6765_v29 }
  0xc6   :  { %5176 = vmatpush1.bf16.xpose.msk.msra.mxu0 %vm5175_vm9, %v9146_v61  ;;  %vm5181_vm9 = vmpackc.low %vm385_vm3, %vm381_vm13  ;;  %vm521_vm13 = vcmp.eq.s32.totalorder %v6091_v45, %v6736_v51 }
  0xc7   :  { %5304 = vmatpush1.bf16.xpose.msk.msra.mxu1 %vm5303_vm15, %v9146_v61  ;;  %5178 = vmatprep.subr.msk.bf16.mxu0 %vm5177_vm1, %v9146_v61  ;;  %vm384_vm15 = vcmp.eq.s32.totalorder %v6052_v39, %v6765_v29  ;;  %vm508_vm1 = vcmp.eq.s32.totalorder %v6056_v40, %v6765_v29  ;;  %vm5313_vm14 = vmpackc.low %vm521_vm13, %vm517_vm4  ;;  %vm396_vm13 = vcmp.eq.s32.totalorder %v6113_v46, %v6765_v29 }
  0xc8   :  { %5306 = vmatprep.subr.msk.bf16.mxu1 %vm5305_vm2, %v9146_v61  ;;  %vm512_vm2 = vcmp.eq.s32.totalorder %v6059_v41, %v6765_v29  ;;  %vm5183_vm6 = vmpackc.low %vm384_vm15, %vm380_vm10  ;;  %vm397_vm10 = vcmp.eq.s32.totalorder %v6113_v46, %v6736_v51  ;;  %vm401_vm15 = vcmp.eq.s32.totalorder %v6116_v47, %v6736_v51 }
  0xc9   :  { %vm5311_vm3 = vmpackc.low %vm512_vm2, %vm508_vm1  ;;  %vm525_vm2 = vcmp.eq.s32.totalorder %v6120_v48, %v6736_v51 }
  0xce   :  { %5180 = vmatpush1.bf16.xpose.msk.msra.mxu0 %vm5179_vm12, %v9146_v61  ;;  %vm5185_vm12 = vmpackc.low %vm393_vm5, %vm389_vm8  ;;  %vm529_vm8 = vcmp.eq.s32.totalorder %v9205_v20, %v6736_v51 }
  0xcf   :  { %5308 = vmatpush1.bf16.xpose.msk.msra.mxu1 %vm5307_vm11, %v9146_v61  ;;  %5182 = vmatprep.subr.msk.bf16.mxu0 %vm5181_vm9, %v9146_v61  ;;  %vm392_vm11 = vcmp.eq.s32.totalorder %v6084_v43, %v6765_v29  ;;  %vm516_vm9 = vcmp.eq.s32.totalorder %v6088_v44, %v6765_v29  ;;  %vm5317_vm4 = vmpackc.low %vm529_vm8, %vm525_vm2  ;;  %vm404_vm8 = vcmp.eq.s32.totalorder %v9206_v50, %v6765_v29 }
  0xd0   :  { %5310 = vmatprep.subr.msk.bf16.mxu1 %vm5309_vm7, %v9146_v61  ;;  %vm520_vm7 = vcmp.eq.s32.totalorder %v6091_v45, %v6765_v29  ;;  %vm5187_vm1 = vmpackc.low %vm392_vm11, %vm388_vm0  ;;  %vm405_vm0 = vcmp.eq.s32.totalorder %v9206_v50, %v6736_v51  ;;  %vm409_vm11 = vcmp.eq.s32.totalorder %v9207_v26, %v6736_v51  ;;  %v9240_v50 = vld [vmem:[#allocation46_spill] sm:$0xff] }
  0xd1   :  { %vm5315_vm5 = vmpackc.low %vm520_vm7, %vm516_vm9  ;;  %vm533_vm7 = vcmp.eq.s32.totalorder %v9208_v1, %v6736_v51 }
  0xd6   :  { %5184 = vmatpush1.bf16.xpose.msk.msra.mxu0 %vm5183_vm6, %v9146_v61  ;;  %vm5189_vm6 = vmpackc.low %vm401_vm15, %vm397_vm10  ;;  %vm537_vm10 = vcmp.eq.s32.totalorder %v9209_v14, %v6736_v51 }
  0xd7   :  { %5312 = vmatpush1.bf16.xpose.msk.msra.mxu1 %vm5311_vm3, %v9146_v61  ;;  %5186 = vmatprep.subr.msk.bf16.mxu0 %vm5185_vm12, %v9146_v61  ;;  %vm400_vm3 = vcmp.eq.s32.totalorder %v6116_v47, %v6765_v29  ;;  %vm524_vm12 = vcmp.eq.s32.totalorder %v6120_v48, %v6765_v29  ;;  %vm5321_vm2 = vmpackc.low %vm537_vm10, %vm533_vm7  ;;  %vm412_vm10 = vcmp.eq.s32.totalorder %v9210_v53, %v6765_v29  ;;  %v9243_v47 = vld [vmem:[#allocation47_spill] sm:$0xff] }
  0xd8   :  { %5314 = vmatprep.subr.msk.bf16.mxu1 %vm5313_vm14, %v9146_v61  ;;  %vm528_vm14 = vcmp.eq.s32.totalorder %v9205_v20, %v6765_v29  ;;  %vm5191_vm9 = vmpackc.low %vm400_vm3, %vm396_vm13  ;;  %vm413_vm13 = vcmp.eq.s32.totalorder %v9210_v53, %v6736_v51  ;;  %vm417_vm3 = vcmp.eq.s32.totalorder %v9211_v52, %v6736_v51  ;;  %v9232_v53 = vld [vmem:[#allocation44_spill] sm:$0xff] }
  0xd9   :  { %vm5319_vm15 = vmpackc.low %vm528_vm14, %vm524_vm12  ;;  %vm541_vm14 = vcmp.eq.s32.totalorder %v9212_v56, %v6736_v51 }
  0xde   :  { %5188 = vmatpush1.bf16.xpose.msk.msra.mxu0 %vm5187_vm1, %v9146_v61  ;;  %vm5193_vm1 = vmpackc.low %vm409_vm11, %vm405_vm0  ;;  %vm545_vm0 = vcmp.eq.s32.totalorder %v9213_v55, %v6736_v51 }
  0xdf   :  { %5316 = vmatpush1.bf16.xpose.msk.msra.mxu1 %vm5315_vm5, %v9146_v61  ;;  %5190 = vmatprep.subr.msk.bf16.mxu0 %vm5189_vm6, %v9146_v61  ;;  %vm408_vm5 = vcmp.eq.s32.totalorder %v9207_v26, %v6765_v29  ;;  %vm532_vm6 = vcmp.eq.s32.totalorder %v9208_v1, %v6765_v29  ;;  %vm5325_vm7 = vmpackc.low %vm545_vm0, %vm541_vm14  ;;  %vm420_vm0 = vcmp.eq.s32.totalorder %v9214_v57, %v6765_v29  ;;  %v9306_v26 = vld [vmem:[#allocation32_spill] sm:$0xff] }
  0xe0   :  { %5318 = vmatprep.subr.msk.bf16.mxu1 %vm5317_vm4, %v9146_v61  ;;  %vm536_vm4 = vcmp.eq.s32.totalorder %v9209_v14, %v6765_v29  ;;  %vm5195_vm12 = vmpackc.low %vm408_vm5, %vm404_vm8  ;;  %vm421_vm8 = vcmp.eq.s32.totalorder %v9214_v57, %v6736_v51  ;;  %vm425_vm5 = vcmp.eq.s32.totalorder %v9215_v27, %v6736_v51 }
  0xe1   :  { %vm5323_vm11 = vmpackc.low %vm536_vm4, %vm532_vm6  ;;  %vm549_vm4 = vcmp.eq.s32.totalorder %v9216_v0, %v6736_v51 }
  0xe6   :  { %5192 = vmatpush1.bf16.xpose.msk.msra.mxu0 %vm5191_vm9, %v9146_v61  ;;  %vm5197_vm9 = vmpackc.low %vm417_vm3, %vm413_vm13  ;;  %vm553_vm13 = vcmp.eq.s32.totalorder %v9217_v9, %v6736_v51 }
  0xe7   :  { %5320 = vmatpush1.bf16.xpose.msk.msra.mxu1 %vm5319_vm15, %v9146_v61  ;;  %5194 = vmatprep.subr.msk.bf16.mxu0 %vm5193_vm1, %v9146_v61  ;;  %vm416_vm15 = vcmp.eq.s32.totalorder %v9211_v52, %v6765_v29  ;;  %vm540_vm1 = vcmp.eq.s32.totalorder %v9212_v56, %v6765_v29  ;;  %vm5329_vm14 = vmpackc.low %vm553_vm13, %vm549_vm4  ;;  %vm428_vm13 = vcmp.eq.s32.totalorder %v9218_v54, %v6765_v29  ;;  %v4433_v56 = vld [vmem:[%s8915_s0 + $0x20] sm:$0xff]  ;;  %v9230_v52 = vld [vmem:[#allocation42_spill] sm:$0xff] }
  0xe8   :  { %5322 = vmatprep.subr.msk.bf16.mxu1 %vm5321_vm2, %v9146_v61  ;;  %vm544_vm2 = vcmp.eq.s32.totalorder %v9213_v55, %v6765_v29  ;;  %vm5199_vm6 = vmpackc.low %vm416_vm15, %vm412_vm10  ;;  %vm429_vm10 = vcmp.eq.s32.totalorder %v9218_v54, %v6736_v51  ;;  %vm433_vm15 = vcmp.eq.s32.totalorder %v9219_v15, %v6736_v51  ;;  %v9227_v54 = vld [vmem:[#allocation40_spill] sm:$0xff]  ;;  %v1501_v14 = vsub.f32 %v4433_v56, %v6984_v59 }
  0xe9   :  { %vm5327_vm3 = vmpackc.low %vm544_vm2, %vm540_vm1  ;;  %vm557_vm2 = vcmp.eq.s32.totalorder %v9220_v12, %v6736_v51 }
  0xee   :  { %5196 = vmatpush1.bf16.xpose.msk.msra.mxu0 %vm5195_vm12, %v9146_v61  ;;  %vm5201_vm12 = vmpackc.low %vm425_vm5, %vm421_vm8  ;;  %vm561_vm8 = vcmp.eq.s32.totalorder %v9221_v60, %v6736_v51 }
  0xef   :  { %5324 = vmatpush1.bf16.xpose.msk.msra.mxu1 %vm5323_vm11, %v9146_v61  ;;  %5198 = vmatprep.subr.msk.bf16.mxu0 %vm5197_vm9, %v9146_v61  ;;  %vm424_vm11 = vcmp.eq.s32.totalorder %v9215_v27, %v6765_v29  ;;  %vm548_vm9 = vcmp.eq.s32.totalorder %v9216_v0, %v6765_v29  ;;  %vm5333_vm4 = vmpackc.low %vm561_vm8, %vm557_vm2  ;;  %v1492_v0 = vsub.f32 %v6982_v49, %v6995_v11  ;;  %v7009_v27 = vstv %s4440_s29 }
  0xf0   :  { %5326 = vmatprep.subr.msk.bf16.mxu1 %vm5325_vm7, %v9146_v61  ;;  %vm552_vm7 = vcmp.eq.s32.totalorder %v9217_v9, %v6765_v29  ;;  %vm5203_vm1 = vmpackc.low %vm424_vm11, %vm420_vm0  ;;  %vm437_vm0 = vcmp.eq.s32.totalorder %v9223_v4, %v6736_v51  ;;  %vm441_vm11 = vcmp.eq.s32.totalorder %v9224_v18, %v6736_v51  ;;  %v7005_v9 = vstv %s4439_s27  ;;  %9228 = vst [vmem:[#allocation50_spill] sm:$0xff] %v7009_v27 }
  0xf1   :  { %vm5331_vm5 = vmpackc.low %vm552_vm7, %vm548_vm9  ;;  %v1512_v55 = vsub.f32 %v6982_v49, %v7005_v9  ;;  %vm436_vm8 = vcmp.eq.s32.totalorder %v9223_v4, %v6765_v29  ;;  %v1497_v4 = vmul.f32 %v7009_v27, %v1492_v0  ;;  %v1511_v45 = vsub.f32 %v4433_v56, %v7005_v9 }
  0xf3   :  { %v5715_v48 = vtrunc.f32 %v1497_v4 }
  0xf6   :  { %5200 = vmatpush1.bf16.xpose.msk.msra.mxu0 %vm5199_vm6, %v9146_v61  ;;  %vm5205_vm6 = vmpackc.low %vm433_vm15, %vm429_vm10  ;;  %vm569_vm10 = vcmp.eq.s32.totalorder %v9227_v54, %v6736_v51 }
  0xf7   :  { %5328 = vmatpush1.bf16.xpose.msk.msra.mxu1 %vm5327_vm3, %v9146_v61  ;;  %5202 = vmatprep.subr.msk.bf16.mxu0 %vm5201_vm12, %v9146_v61  ;;  %vm432_vm3 = vcmp.eq.s32.totalorder %v9219_v15, %v6765_v29  ;;  %vm556_vm12 = vcmp.eq.s32.totalorder %v9220_v12, %v6765_v29  ;;  %v9226_v15 = vld [vmem:[#allocation39_spill] sm:$0xff]  ;;  %v1502_v12 = vsub.f32 %v6982_v49, %v6984_v59  ;;  %v9237_v59 = vld [vmem:[#allocation45_spill] sm:$0xff] }
  0xf8   :  { %5330 = vmatprep.subr.msk.bf16.mxu1 %vm5329_vm14, %v9146_v61  ;;  %vm560_vm14 = vcmp.eq.s32.totalorder %v9221_v60, %v6765_v29  ;;  %vm5207_vm9 = vmpackc.low %vm432_vm3, %vm428_vm13  ;;  %vm565_vm7 = vcmp.eq.s32.totalorder %v9226_v15, %v6736_v51  ;;  %v7003_v60 = vstv %s4441_s28  ;;  %vm445_vm13 = vcmp.eq.s32.totalorder %v6306_v23, %v6736_v51 }
  0xf9   :  { %vm5335_vm15 = vmpackc.low %vm560_vm14, %vm556_vm12  ;;  %v1507_v57 = vmul.f32 %v7003_v60, %v1502_v12  ;;  %v7026_v12 = vstv %s4442_s10  ;;  %vm449_vm3 = vcmp.eq.s32.totalorder %v9230_v52, %v6736_v51  ;;  %vm577_vm14 = vcmp.eq.s32.totalorder %v9232_v53, %v6736_v51 }
  0xfa   :  { %vm5337_vm2 = vmpackc.low %vm569_vm10, %vm565_vm7  ;;  %9229 = vst [vmem:[#allocation51_spill] sm:$0xff] %v7026_v12  ;;  %vm448_vm7 = vcmp.eq.s32.totalorder %v9230_v52, %v6765_v29  ;;  %v7050_v0 = vmul.f32 %v7026_v12, %v1512_v55  ;;  %v1491_v55 = vsub.f32 %v4433_v56, %v6995_v11  ;;  %v1506_v46 = vmul.f32 %v7003_v60, %v1501_v14  ;;  %v9295_v52 = vld [vmem:[#allocation21_spill] sm:$0xff] }
  0xfc   :  { %v1496_v56 = vmul.f32 %v7009_v27, %v1491_v55 }
  0xfe   :  { %5204 = vmatpush1.bf16.xpose.msk.msra.mxu0 %vm5203_vm1, %v9146_v61  ;;  %vm5209_vm1 = vmpackc.low %vm441_vm11, %vm437_vm0  ;;  %vm1533_vm0 = vcmp.ge.f32.partialorder %v1507_v57, 0.0  ;;  %v5713_v27 = vtrunc.f32 %v1496_v56 }
  0xff   :  { %5332 = vmatpush1.bf16.xpose.msk.msra.mxu1 %vm5331_vm5, %v9146_v61  ;;  %5206 = vmatprep.subr.msk.bf16.mxu0 %vm5205_vm6, %v9146_v61  ;;  %vm440_vm5 = vcmp.eq.s32.totalorder %v9224_v18, %v6765_v29  ;;  %vm564_vm6 = vcmp.eq.s32.totalorder %v9226_v15, %v6765_v29  ;;  %v9231_v18 = vld [vmem:[#allocation43_spill] sm:$0xff]  ;;  %v1537_v20 = vsel %vm1533_vm0, 1, %v9155_v16  ;;  %vm1573_vm0 = vcmp.ge.f32.partialorder %v7050_v0, 0.0 }
 0x100   :  { %5334 = vmatprep.subr.msk.bf16.mxu1 %vm5333_vm4, %v9146_v61  ;;  %vm568_vm4 = vcmp.eq.s32.totalorder %v9227_v54, %v6765_v29  ;;  %vm573_vm12 = vcmp.eq.s32.totalorder %v9231_v18, %v6736_v51  ;;  %vm7041_vm11 = vmpackc.low %vm440_vm5, %vm436_vm8  ;;  %v5723_v54 = vtrunc.f32 %v1507_v57  ;;  %vm457_vm5 = vcmp.eq.s32.totalorder %v9240_v50, %v6736_v51 }
 0x101   :  { %vm7055_vm10 = vmpackc.low %vm568_vm4, %vm564_vm6  ;;  %vm1553_vm6 = vcmp.lt.f32.partialorder %v1507_v57, 8.0  ;;  %v1541_v1 = vrot.slane %v1537_v20, 1  ;;  %v5716_v20 = vcvt.f32.s32 %v5715_v48  ;;  %v1516_v15 = vmul.f32 %v7026_v12, %v1511_v45  ;;  %v9294_v45 = vld [vmem:[#allocation20_spill] sm:$0xff]  ;;  %v9304_v12 = vld [vmem:[#allocation30_spill] sm:$0xff] }
 0x102   :  { %vm7072_vm8 = vmpackc.low %vm449_vm3, %vm445_vm13  ;;  %vm581_vm13 = vcmp.eq.s32.totalorder %v6388_v2, %v6736_v51  ;;  %vm585_vm3 = vcmp.eq.s32.totalorder %v9243_v47, %v6736_v51  ;;  %v5724_v44 = vcvt.f32.s32 %v5723_v54  ;;  %v1557_v14 = vsel %vm1553_vm6, 1, %v9155_v16 }
 0x103   :  { %vm7085_vm4 = vmpackc.low %vm577_vm14, %vm573_vm12  ;;  %vm452_vm12 = vcmp.eq.s32.totalorder %v9237_v59, %v6765_v29  ;;  %vm1532_vm6 = vcmp.ge.f32.partialorder %v1506_v46, 0.0  ;;  %v1577_v54 = vsel %vm1573_vm0, 1, %v9155_v16  ;;  %v5721_v48 = vtrunc.f32 %v1506_v46 }
 0x104   :  { %v1561_v55 = vrot.slane %v1557_v14, 1  ;;  %vm461_vm0 = vcmp.eq.s32.totalorder %v6429_v58, %v6736_v51  ;;  %v1617_v14 = vmul.u32 64, %v5716_v20 }
 0x106   :  { %5208 = vmatpush1.bf16.xpose.msk.msra.mxu0 %vm5207_vm9, %v9146_v61  ;;  %vm444_vm9 = vcmp.eq.s32.totalorder %v6306_v23, %v6765_v29 }
 0x107   :  { %5336 = vmatpush1.bf16.xpose.msk.msra.mxu1 %vm5335_vm15, %v9146_v61  ;;  %5210 = vmatprep.subr.msk.bf16.mxu0 %vm5209_vm1, %v9146_v61  ;;  %vm572_vm15 = vcmp.eq.s32.totalorder %v9231_v18, %v6765_v29  ;;  %vm576_vm1 = vcmp.eq.s32.totalorder %v9232_v53, %v6765_v29  ;;  %v1625_v53 = vmul.u32 8, %v5724_v44  ;;  %v5731_v18 = vtrunc.f32 %v7050_v0 }
 0x108   :  { %5338 = vmatprep.subr.msk.bf16.mxu1 %vm5337_vm2, %v9146_v61  ;;  %vm453_vm2 = vcmp.eq.s32.totalorder %v9237_v59, %v6736_v51  ;;  %v1536_v44 = vsel %vm1532_vm6, 1, %v9155_v16 }
 0x109   :  { %v1629_v20 = vrot.slane %v1625_v53, 1  ;;  %v1540_v59 = vrot.slane %v1536_v44, 1  ;;  %v5714_v44 = vcvt.f32.s32 %v5713_v27  ;;  %v7572_v53 = vld [vmem:[%s8915_s0 + $0x38] sm:$0xff] }
 0x10e   :  { %5212 = vmatpush1.bf16.xpose.msk.msra.mxu0 %vm7041_vm11, %v9146_v61  ;;  %vm1525_vm11 = vcmp.lt.f32.partialorder %v1497_v4, 8.0 }
 0x10f   :  { %5340 = vmatpush1.bf16.xpose.msk.msra.mxu1 %vm7055_vm10, %v9146_v61  ;;  %5214 = vmatprep.subr.msk.bf16.mxu0 %vm7072_vm8, %v9146_v61  ;;  %vm7123_vm10 = vmpackc.low %vm448_vm7, %vm444_vm9  ;;  %vm1521_vm8 = vcmp.ge.f32.partialorder %v1497_v4, 0.0  ;;  %vm1593_vm9 = vcmp.lt.f32.partialorder %v7050_v0, 8.0  ;;  %v1581_v4 = vrot.slane %v1577_v54, 2  ;;  %v5722_v54 = vcvt.f32.s32 %v5721_v48 }
 0x110   :  { %5342 = vmatprep.subr.msk.bf16.mxu1 %vm7085_vm4, %v9146_v61  ;;  %vm7133_vm4 = vmpackc.low %vm576_vm1, %vm572_vm15  ;;  %vm1552_vm15 = vcmp.lt.f32.partialorder %v1506_v46, 8.0  ;;  %vm584_vm1 = vcmp.eq.s32.totalorder %v9243_v47, %v6765_v29 }
 0x111   :  { %vm7148_vm7 = vmpackc.low %vm457_vm5, %vm453_vm2  ;;  %vm7163_vm2 = vcmp.ne.s32.totalorder %v1541_v1, 0  ;;  %v1597_v1 = vsel %vm1593_vm9, 1, %v9155_v16  ;;  %v1556_v23 = vsel %vm1552_vm15, 1, %v9155_v16  ;;  %vm7201_vm9 = vcmp.ne.s32.totalorder %v1561_v55, 0  ;;  %v9310_v55 = vld [vmem:[#allocation35_spill] sm:$0xff] }
 0x112   :  { %vm7159_vm14 = vmand %vm1521_vm8, %vm1525_vm11  ;;  %vm465_vm11 = vcmp.eq.s32.totalorder %v6446_v19, %v6736_v51  ;;  %vm9256_vm8 = vcmp.eq.s32.totalorder %v9240_v50, %v6765_v29  ;;  %v5732_v50 = vcvt.f32.s32 %v5731_v18  ;;  %vm589_vm15 = vcmp.eq.s32.totalorder %v6521_v7, %v6736_v51 }
 0x113   :  { %vm7174_vm5 = vmpackc.low %vm585_vm3, %vm581_vm13  ;;  %vm1572_vm13 = vcmp.ge.f32.partialorder %v1516_v15, 0.0  ;;  %vm1524_vm3 = vcmp.lt.f32.partialorder %v1496_v56, 8.0  ;;  %v1601_v57 = vrot.slane %v1597_v1, 2  ;;  %v1560_v48 = vrot.slane %v1556_v23, 1 }
 0x114   :  { %vm7189_vm6 = vmpackc.low %vm9256_vm8, %vm452_vm12  ;;  %vm9261_vm12 = vcmp.eq.s32.totalorder %v6388_v2, %v6765_v29  ;;  %vm1520_vm8 = vcmp.ge.f32.partialorder %v1496_v56, 0.0  ;;  %v1576_v11 = vsel %vm1572_vm13, 1, %v9155_v16  ;;  %v1624_v46 = vmul.u32 8, %v5722_v54  ;;  %v9299_v56 = vld [vmem:[#allocation25_spill] sm:$0xff] }
 0x115   :  { %v1633_v1 = vadd.s32 %v1629_v20, %v1617_v14  ;;  %v1641_v23 = vrot.slane %v5732_v50, 2  ;;  %vm7260_vm13 = vcmp.ne.s32.totalorder %v1540_v59, 0  ;;  %v1580_v27 = vrot.slane %v1576_v11, 2  ;;  %v9296_v50 = vld [vmem:[#allocation22_spill] sm:$0xff] }
 0x116   :  { %5216 = vmatpush1.bf16.xpose.msk.msra.mxu0 %vm7123_vm10, %v9146_v61  ;;  %vm7217_vm10 = vmpackc.low %vm584_vm1, %vm9261_vm12  ;;  %vm7238_vm1 = vcmp.ne.s32.totalorder %v1581_v4, 0  ;;  %v5729_v4 = vtrunc.f32 %v1516_v15  ;;  %v1628_v14 = vrot.slane %v1624_v46, 1  ;;  %v9290_v46 = vld [vmem:[#allocation16_spill] sm:$0xff] }
 0x117   :  { %5344 = vmatpush1.bf16.xpose.msk.msra.mxu1 %vm7133_vm4, %v9146_v61  ;;  %5218 = vmatprep.subr.msk.bf16.mxu0 %vm7148_vm7, %v9146_v61  ;;  %vm593_vm4 = vcmp.eq.s32.totalorder %v6524_v13, %v6736_v51  ;;  %vm7234_vm7 = vmpackc.low %vm465_vm11, %vm461_vm0  ;;  %vm1592_vm11 = vcmp.lt.f32.partialorder %v1516_v15, 8.0  ;;  %v1616_v15 = vmul.u32 64, %v5714_v44  ;;  %v1645_v0 = vadd.s32 %v1641_v23, %v1633_v1  ;;  %v5764_v44 = vld [vmem:[%s8915_s0 + $0x10] sm:$0xff]  ;;  %v9292_v1 = vld [vmem:[#allocation18_spill] sm:$0xff] }
 0x118   :  { %5346 = vmatprep.subr.msk.bf16.mxu1 %vm7174_vm5, %v9146_v61  ;;  %vm9268_vm5 = vmand %vm7159_vm14, %vm7163_vm2  ;;  %v1596_v59 = vsel %vm1592_vm11, 1, %v9155_v16  ;;  %v5730_v54 = vcvt.f32.s32 %v5729_v4  ;;  %v9291_v4 = vld [vmem:[#allocation17_spill] sm:$0xff]  ;;  %v9293_v23 = vld [vmem:[#allocation19_spill] sm:$0xff] }
 0x119   :  { %vm7251_vm0 = vmand %vm9268_vm5, %vm7201_vm9  ;;  %vm588_vm5 = vcmp.eq.s32.totalorder %v6521_v7, %v6765_v29  ;;  %v1600_v20 = vrot.slane %v1596_v59, 2  ;;  %v1632_v18 = vadd.s32 %v1628_v14, %v1616_v15  ;;  %v9298_v59 = vld [vmem:[#allocation24_spill] sm:$0xff]  ;;  %v9300_v15 = vld [vmem:[#allocation26_spill] sm:$0xff] }
 0x11a   :  { %vm7256_vm12 = vmand %vm1520_vm8, %vm1524_vm3  ;;  %vm7278_vm3 = vcmp.ne.s32.totalorder %v1601_v57, 0  ;;  %vm464_vm8 = vcmp.eq.s32.totalorder %v6446_v19, %v6765_v29  ;;  %v1640_v47 = vrot.slane %v5730_v54, 2  ;;  %v9301_v14 = vld [vmem:[#allocation27_spill] sm:$0xff]  ;;  %v9302_v54 = vld [vmem:[#allocation28_spill] sm:$0xff] }
 0x11b   :  { %vm7270_vm14 = vmpackc.low %vm593_vm4, %vm589_vm15  ;;  %vm7287_vm15 = vcmp.ne.s32.totalorder %v1560_v48, 0  ;;  %vm460_vm4 = vcmp.eq.s32.totalorder %v6429_v58, %v6765_v29 }
 0x11c   :  { %vm1589_vm2 = vmand %vm7251_vm0, %vm7238_vm1  ;;  %vm469_vm0 = vcmp.eq.s32.totalorder %v6646_v28, %v6736_v51  ;;  %v1644_v11 = vadd.s32 %v1640_v47, %v1632_v18  ;;  %v9307_v18 = vld [vmem:[#allocation33_spill] sm:$0xff]  ;;  %v9308_v47 = vld [vmem:[#allocation34_spill] sm:$0xff] }
 0x11d   :  { %vm1548_vm9 = vmand %vm7256_vm12, %vm7260_vm13  ;;  %vm597_vm12 = vcmp.eq.s32.totalorder %v6674_v63, %v6736_v51  ;;  %vm601_vm13 = vcmp.eq.s32.totalorder %v6677_v5, %v6736_v51 }
 0x11e   :  { %5220 = vmatpush1.bf16.xpose.msk.msra.mxu0 %vm7189_vm6, %v9146_v61  ;;  %vm592_vm6 = vcmp.eq.s32.totalorder %v6524_v13, %v6765_v29  ;;  %vm7315_vm11 = vmand %vm1589_vm2, %vm7278_vm3 }
 0x11f   :  { %5348 = vmatpush1.bf16.xpose.msk.msra.mxu1 %vm7217_vm10, %v9146_v61  ;;  %5222 = vmatprep.subr.msk.bf16.mxu0 %vm7234_vm7, %v9146_v61  ;;  %vm7329_vm10 = vmand %vm1548_vm9, %vm7287_vm15  ;;  %vm7333_vm7 = vcmp.ne.s32.totalorder %v1580_v27, 0  ;;  %v1649_v57 = vsel %vm7315_vm11, %v1645_v0, 4294967295  ;;  %vm1604_vm9 = vcmp.ne.s32.totalorder %v1600_v20, 0  ;;  %vm596_vm11 = vcmp.eq.s32.totalorder %v6674_v63, %v6765_v29  ;;  %v9297_v27 = vld [vmem:[#allocation23_spill] sm:$0xff]  ;;  %v9303_v0 = vld [vmem:[#allocation29_spill] sm:$0xff] }
 0x120   :  { %5350 = vmatprep.subr.msk.bf16.mxu1 %vm7270_vm14, %v9146_v61  ;;  %vm5223_vm1 = vmpackc.low %vm464_vm8, %vm460_vm4  ;;  %vm473_vm14 = vcmp.eq.s32.totalorder %v6649_v62, %v6736_v51  ;;  %v7352_v48 = vrot.slane %v1649_v57, %v5867_v17  ;;  %v9305_v20 = vld [vmem:[#allocation31_spill] sm:$0xff]  ;;  %v9309_v57 = vld [vmem:[#allocation48_spill] sm:$0xff] }
 0x121   :  { %vm5351_vm2 = vmpackc.low %vm592_vm6, %vm588_vm5  ;;  %vm468_vm5 = vcmp.eq.s32.totalorder %v6646_v28, %v6765_v29  ;;  %vm472_vm6 = vcmp.eq.s32.totalorder %v6649_v62, %v6765_v29 }
 0x122   :  { %vm1588_vm3 = vmand %vm7329_vm10, %vm7333_vm7  ;;  %vm600_vm10 = vcmp.eq.s32.totalorder %v6677_v5, %v6765_v29  ;;  %vm1669_vm7 = vcmp.eq.s32.totalorder %v5843_v3, %v7352_v48 }
 0x123   :  { %vm5225_vm15 = vmpackc.low %vm473_vm14, %vm469_vm0  ;;  %vm1797_vm14 = vcmp.eq.s32.totalorder %v5929_v8, %v7352_v48 }
 0x124   :  { %vm5353_vm4 = vmpackc.low %vm601_vm13, %vm597_vm12 }
 0x125   :  { %vm7355_vm8 = vmand %vm1588_vm3, %vm1604_vm9  ;;  %vm1677_vm9 = vcmp.eq.s32.totalorder %v5944_v21, %v7352_v48 }
 0x126   :  { %5224 = vmatpush1.bf16.xpose.msk.msra.mxu0 %vm5223_vm1, %v9146_v61  ;;  %vm1673_vm1 = vcmp.eq.s32.totalorder %v5926_v6, %v7352_v48  ;;  %v1648_v51 = vsel %vm7355_vm8, %v1644_v11, 4294967295  ;;  %vm5227_vm0 = vmpackc.low %vm472_vm6, %vm468_vm5  ;;  %v1504_v11 = vsub.f32 %v7572_v53, %v9309_v57 }
 0x127   :  { %5352 = vmatpush1.bf16.xpose.msk.msra.mxu1 %vm5351_vm2, %v9146_v61  ;;  %5226 = vmatprep.subr.msk.bf16.mxu0 %vm5225_vm15, %v9146_v61  ;;  %vm1801_vm2 = vcmp.eq.s32.totalorder %v5932_v10, %v7352_v48  ;;  %vm5355_vm12 = vmpackc.low %vm600_vm10, %vm596_vm11  ;;  %v7381_v29 = vrot.slane %v1648_v51, %v5867_v17  ;;  %vm1681_vm15 = vcmp.eq.s32.totalorder %v5947_v22, %v7352_v48  ;;  %v9311_v51 = vld [vmem:[#allocation36_spill] sm:$0xff] }
 0x128   :  { %5354 = vmatprep.subr.msk.bf16.mxu1 %vm5353_vm4, %v9146_v61  ;;  %vm5357_vm13 = vmpackc.low %vm1673_vm1, %vm1669_vm7  ;;  %vm1805_vm10 = vcmp.eq.s32.totalorder %v5958_v24, %v7352_v48  ;;  %vm1809_vm7 = vcmp.eq.s32.totalorder %v5961_v25, %v7352_v48 }
 0x129   :  { %vm5485_vm3 = vmpackc.low %vm1801_vm2, %vm1797_vm14  ;;  %vm1668_vm4 = vcmp.eq.s32.totalorder %v5843_v3, %v7381_v29  ;;  %vm1672_vm8 = vcmp.eq.s32.totalorder %v5926_v6, %v7381_v29  ;;  %vm1796_vm5 = vcmp.eq.s32.totalorder %v5929_v8, %v7381_v29  ;;  %vm1800_vm6 = vcmp.eq.s32.totalorder %v5932_v10, %v7381_v29 }
 0x12a   :  { %vm5361_vm11 = vmpackc.low %vm1681_vm15, %vm1677_vm9  ;;  %vm1685_vm2 = vcmp.eq.s32.totalorder %v5977_v30, %v7352_v48  ;;  %vm1804_vm9 = vcmp.eq.s32.totalorder %v5958_v24, %v7381_v29  ;;  %vm1808_vm15 = vcmp.eq.s32.totalorder %v5961_v25, %v7381_v29 }
 0x12b   :  { %vm5359_vm1 = vmpackc.low %vm1672_vm8, %vm1668_vm4  ;;  %vm1813_vm8 = vcmp.eq.s32.totalorder %v5992_v32, %v7352_v48 }
 0x12c   :  { %vm5489_vm14 = vmpackc.low %vm1809_vm7, %vm1805_vm10  ;;  %vm1684_vm7 = vcmp.eq.s32.totalorder %v5977_v30, %v7381_v29 }
 0x12e   :  { %5228 = vmatpush1.bf16.xpose.msk.msra.mxu0 %vm5227_vm0, %v9146_v61  ;;  %vm5487_vm0 = vmpackc.low %vm1800_vm6, %vm1796_vm5  ;;  %vm1817_vm5 = vcmp.eq.s32.totalorder %v5995_v33, %v7352_v48 }
 0x12f   :  { %5356 = vmatpush1.bf16.xpose.msk.msra.mxu1 %vm5355_vm12, %v9146_v61  ;;  %5358 = vmatprep.subr.msk.bf16.mxu0 %vm5357_vm13, %v9146_v61  ;;  %vm1689_vm12 = vcmp.eq.s32.totalorder %v5980_v31, %v7352_v48  ;;  %vm1676_vm13 = vcmp.eq.s32.totalorder %v5944_v21, %v7381_v29  ;;  %vm5493_vm10 = vmpackc.low %vm1817_vm5, %vm1813_vm8  ;;  %vm1692_vm5 = vcmp.eq.s32.totalorder %v6017_v34, %v7381_v29 }
 0x130   :  { %5486 = vmatprep.subr.msk.bf16.mxu1 %vm5485_vm3, %v9146_v61  ;;  %vm1680_vm3 = vcmp.eq.s32.totalorder %v5947_v22, %v7381_v29  ;;  %vm5365_vm4 = vmpackc.low %vm1689_vm12, %vm1685_vm2  ;;  %vm1693_vm2 = vcmp.eq.s32.totalorder %v6017_v34, %v7352_v48  ;;  %vm1697_vm12 = vcmp.eq.s32.totalorder %v6020_v35, %v7352_v48 }
 0x131   :  { %vm5363_vm6 = vmpackc.low %vm1680_vm3, %vm1676_vm13  ;;  %vm1821_vm3 = vcmp.eq.s32.totalorder %v6024_v36, %v7352_v48 }
 0x135   :  { %1250 = vmatmul.mubr.f32.vlgmr.msra.gmra.mrb[0].mxu0 %v5764_v44 }
 0x136   :  { %1392 = vmatmul.mubr.f32.vlgmr.msra.gmra.mrb[0].mxu1 %v5764_v44  ;;  %5360 = vmatpush1.bf16.xpose.msk.msra.mxu0 %vm5359_vm1, %v9146_v61  ;;  %vm1688_vm1 = vcmp.eq.s32.totalorder %v5980_v31, %v7381_v29  ;;  %v9312_v44 = vld [vmem:[#allocation49_spill] sm:$0xff] }
 0x137   :  { %5488 = vmatpush1.bf16.xpose.msk.msra.mxu1 %vm5487_vm0, %v9146_v61  ;;  %5362 = vmatprep.subr.msk.bf16.mxu0 %vm5361_vm11, %v9146_v61  ;;  %vm5491_vm11 = vmpackc.low %vm1808_vm15, %vm1804_vm9  ;;  %vm1812_vm0 = vcmp.eq.s32.totalorder %v5992_v32, %v7381_v29  ;;  %vm1825_vm9 = vcmp.eq.s32.totalorder %v6027_v37, %v7352_v48 }
 0x138   :  { %5490 = vmatprep.subr.msk.bf16.mxu1 %vm5489_vm14, %v9146_v61  ;;  %2500 = vmatprep.mubr.f32.mxu0 %v6982_v49  ;;  %vm1816_vm14 = vcmp.eq.s32.totalorder %v5995_v33, %v7381_v29  ;;  %vm5367_vm13 = vmpackc.low %vm1688_vm1, %vm1684_vm7  ;;  %vm1701_vm7 = vcmp.eq.s32.totalorder %v6049_v38, %v7352_v48  ;;  %vm1705_vm1 = vcmp.eq.s32.totalorder %v6052_v39, %v7352_v48 }
 0x139   :  { %2642 = vmatprep.mubr.f32.mxu1 %v6982_v49  ;;  %vm5495_vm15 = vmpackc.low %vm1816_vm14, %vm1812_vm0  ;;  %vm1829_vm14 = vcmp.eq.s32.totalorder %v6056_v40, %v7352_v48  ;;  %v9289_v49 = vld [vmem:[#allocation15_spill] sm:$0xff] }
 0x13a   :  { %vm5497_vm8 = vmpackc.low %vm1825_vm9, %vm1821_vm3  ;;  %vm1700_vm9 = vcmp.eq.s32.totalorder %v6049_v38, %v7381_v29 }
 0x13e   :  { %5364 = vmatpush1.bf16.xpose.msk.msra.mxu0 %vm5363_vm6, %v9146_v61  ;;  %vm1696_vm6 = vcmp.eq.s32.totalorder %v6020_v35, %v7381_v29 }
 0x13f   :  { %5492 = vmatpush1.bf16.xpose.msk.msra.mxu1 %vm5491_vm11, %v9146_v61  ;;  %5366 = vmatprep.subr.msk.bf16.mxu0 %vm5365_vm4, %v9146_v61  ;;  %vm5369_vm4 = vmpackc.low %vm1697_vm12, %vm1693_vm2  ;;  %vm1820_vm11 = vcmp.eq.s32.totalorder %v6024_v36, %v7381_v29  ;;  %vm1833_vm2 = vcmp.eq.s32.totalorder %v6059_v41, %v7352_v48 }
 0x140   :  { %5494 = vmatprep.subr.msk.bf16.mxu1 %vm5493_vm10, %v9146_v61  ;;  %vm1824_vm10 = vcmp.eq.s32.totalorder %v6027_v37, %v7381_v29  ;;  %vm5371_vm0 = vmpackc.low %vm1696_vm6, %vm1692_vm5  ;;  %vm1709_vm5 = vcmp.eq.s32.totalorder %v6081_v42, %v7352_v48  ;;  %vm1713_vm6 = vcmp.eq.s32.totalorder %v6084_v43, %v7352_v48 }
 0x141   :  { %vm5499_vm12 = vmpackc.low %vm1824_vm10, %vm1820_vm11  ;;  %vm1837_vm10 = vcmp.eq.s32.totalorder %v9289_v49, %v7352_v48 }
 0x142   :  { %vm5501_vm3 = vmpackc.low %vm1833_vm2, %vm1829_vm14  ;;  %vm1708_vm2 = vcmp.eq.s32.totalorder %v6081_v42, %v7381_v29 }
 0x146   :  { %5368 = vmatpush1.bf16.xpose.msk.msra.mxu0 %vm5367_vm13, %v9146_v61  ;;  %vm5373_vm13 = vmpackc.low %vm1705_vm1, %vm1701_vm7  ;;  %vm1841_vm7 = vcmp.eq.s32.totalorder %v9290_v46, %v7352_v48 }
 0x147   :  { %5496 = vmatpush1.bf16.xpose.msk.msra.mxu1 %vm5495_vm15, %v9146_v61  ;;  %5370 = vmatprep.subr.msk.bf16.mxu0 %vm5369_vm4, %v9146_v61  ;;  %vm1704_vm15 = vcmp.eq.s32.totalorder %v6052_v39, %v7381_v29  ;;  %vm1828_vm4 = vcmp.eq.s32.totalorder %v6056_v40, %v7381_v29  ;;  %vm5505_vm14 = vmpackc.low %vm1841_vm7, %vm1837_vm10  ;;  %vm1716_vm7 = vcmp.eq.s32.totalorder %v9291_v4, %v7381_v29 }
 0x148   :  { %5498 = vmatprep.subr.msk.bf16.mxu1 %vm5497_vm8, %v9146_v61  ;;  %vm1832_vm8 = vcmp.eq.s32.totalorder %v6059_v41, %v7381_v29  ;;  %vm5375_vm11 = vmpackc.low %vm1704_vm15, %vm1700_vm9  ;;  %vm1717_vm9 = vcmp.eq.s32.totalorder %v9291_v4, %v7352_v48  ;;  %vm1721_vm15 = vcmp.eq.s32.totalorder %v9292_v1, %v7352_v48 }
 0x149   :  { %vm5503_vm1 = vmpackc.low %vm1832_vm8, %vm1828_vm4  ;;  %vm1845_vm8 = vcmp.eq.s32.totalorder %v9293_v23, %v7352_v48 }
 0x14e   :  { %5372 = vmatpush1.bf16.xpose.msk.msra.mxu0 %vm5371_vm0, %v9146_v61  ;;  %vm5377_vm0 = vmpackc.low %vm1713_vm6, %vm1709_vm5  ;;  %vm1849_vm5 = vcmp.eq.s32.totalorder %v9294_v45, %v7352_v48 }
 0x14f   :  { %5500 = vmatpush1.bf16.xpose.msk.msra.mxu1 %vm5499_vm12, %v9146_v61  ;;  %5374 = vmatprep.subr.msk.bf16.mxu0 %vm5373_vm13, %v9146_v61  ;;  %vm1712_vm12 = vcmp.eq.s32.totalorder %v6084_v43, %v7381_v29  ;;  %vm1836_vm13 = vcmp.eq.s32.totalorder %v9289_v49, %v7381_v29  ;;  %vm5509_vm10 = vmpackc.low %vm1849_vm5, %vm1845_vm8  ;;  %vm1724_vm5 = vcmp.eq.s32.totalorder %v9295_v52, %v7381_v29 }
 0x150   :  { %5502 = vmatprep.subr.msk.bf16.mxu1 %vm5501_vm3, %v9146_v61  ;;  %vm1840_vm3 = vcmp.eq.s32.totalorder %v9290_v46, %v7381_v29  ;;  %vm5379_vm4 = vmpackc.low %vm1712_vm12, %vm1708_vm2  ;;  %vm1725_vm2 = vcmp.eq.s32.totalorder %v9295_v52, %v7352_v48  ;;  %vm1729_vm12 = vcmp.eq.s32.totalorder %v9296_v50, %v7352_v48 }
 0x151   :  { %vm5507_vm6 = vmpackc.low %vm1840_vm3, %vm1836_vm13  ;;  %vm1853_vm3 = vcmp.eq.s32.totalorder %v9297_v27, %v7352_v48 }
 0x156   :  { %5376 = vmatpush1.bf16.xpose.msk.msra.mxu0 %vm5375_vm11, %v9146_v61  ;;  %vm5381_vm11 = vmpackc.low %vm1721_vm15, %vm1717_vm9  ;;  %vm1857_vm9 = vcmp.eq.s32.totalorder %v9298_v59, %v7352_v48 }
 0x157   :  { %5504 = vmatpush1.bf16.xpose.msk.msra.mxu1 %vm5503_vm1, %v9146_v61  ;;  %5378 = vmatprep.subr.msk.bf16.mxu0 %vm5377_vm0, %v9146_v61  ;;  %vm1720_vm1 = vcmp.eq.s32.totalorder %v9292_v1, %v7381_v29  ;;  %vm1844_vm0 = vcmp.eq.s32.totalorder %v9293_v23, %v7381_v29  ;;  %vm5513_vm8 = vmpackc.low %vm1857_vm9, %vm1853_vm3  ;;  %vm1732_vm9 = vcmp.eq.s32.totalorder %v9299_v56, %v7381_v29  ;;  %v9327_v23 = vld [vmem:[#allocation43_spill] sm:$0xff]  ;;  %v9330_v1 = vld [vmem:[#allocation44_spill] sm:$0xff] }
 0x158   :  { %5506 = vmatprep.subr.msk.bf16.mxu1 %vm5505_vm14, %v9146_v61  ;;  %vm1848_vm14 = vcmp.eq.s32.totalorder %v9294_v45, %v7381_v29  ;;  %vm5383_vm13 = vmpackc.low %vm1720_vm1, %vm1716_vm7  ;;  %vm1733_vm7 = vcmp.eq.s32.totalorder %v9299_v56, %v7352_v48  ;;  %vm1737_vm1 = vcmp.eq.s32.totalorder %v9300_v15, %v7352_v48  ;;  %v9317_v56 = vld [vmem:[#allocation40_spill] sm:$0xff] }
 0x159   :  { %vm5511_vm15 = vmpackc.low %vm1848_vm14, %vm1844_vm0  ;;  %vm1861_vm14 = vcmp.eq.s32.totalorder %v9301_v14, %v7352_v48 }
 0x15e   :  { %5380 = vmatpush1.bf16.xpose.msk.msra.mxu0 %vm5379_vm4, %v9146_v61  ;;  %vm5385_vm4 = vmpackc.low %vm1729_vm12, %vm1725_vm2  ;;  %vm1865_vm2 = vcmp.eq.s32.totalorder %v9302_v54, %v7352_v48 }
 0x15f   :  { %5508 = vmatpush1.bf16.xpose.msk.msra.mxu1 %vm5507_vm6, %v9146_v61  ;;  %5382 = vmatprep.subr.msk.bf16.mxu0 %vm5381_vm11, %v9146_v61  ;;  %vm1728_vm6 = vcmp.eq.s32.totalorder %v9296_v50, %v7381_v29  ;;  %vm1852_vm11 = vcmp.eq.s32.totalorder %v9297_v27, %v7381_v29  ;;  %vm5517_vm3 = vmpackc.low %vm1865_vm2, %vm1861_vm14  ;;  %vm1740_vm2 = vcmp.eq.s32.totalorder %v9303_v0, %v7381_v29  ;;  %v9323_v50 = vld [vmem:[#allocation51_spill] sm:$0xff]  ;;  %v9333_v27 = vlaneseq }
 0x160   :  { %5510 = vmatprep.subr.msk.bf16.mxu1 %vm5509_vm10, %v9146_v61  ;;  %vm1856_vm10 = vcmp.eq.s32.totalorder %v9298_v59, %v7381_v29  ;;  %vm5387_vm0 = vmpackc.low %vm1728_vm6, %vm1724_vm5  ;;  %vm1741_vm5 = vcmp.eq.s32.totalorder %v9303_v0, %v7352_v48  ;;  %vm1745_vm6 = vcmp.eq.s32.totalorder %v9304_v12, %v7352_v48  ;;  %v9313_v0 = vld [vmem:[#allocation37_spill] sm:$0xff] }
 0x161   :  { %vm5515_vm12 = vmpackc.low %vm1856_vm10, %vm1852_vm11  ;;  %vm1869_vm10 = vcmp.eq.s32.totalorder %v9305_v20, %v7352_v48 }
 0x166   :  { %5384 = vmatpush1.bf16.xpose.msk.msra.mxu0 %vm5383_vm13, %v9146_v61  ;;  %vm5389_vm13 = vmpackc.low %vm1737_vm1, %vm1733_vm7  ;;  %vm1873_vm7 = vcmp.eq.s32.totalorder %v9306_v26, %v7352_v48 }
 0x167   :  { %5512 = vmatpush1.bf16.xpose.msk.msra.mxu1 %vm5511_vm15, %v9146_v61  ;;  %5386 = vmatprep.subr.msk.bf16.mxu0 %vm5385_vm4, %v9146_v61  ;;  %vm1736_vm15 = vcmp.eq.s32.totalorder %v9300_v15, %v7381_v29  ;;  %vm1860_vm4 = vcmp.eq.s32.totalorder %v9301_v14, %v7381_v29  ;;  %vm5521_vm14 = vmpackc.low %vm1873_vm7, %vm1869_vm10  ;;  %vm1748_vm7 = vcmp.eq.s32.totalorder %v9307_v18, %v7381_v29  ;;  %v9316_v15 = vld [vmem:[#allocation39_spill] sm:$0xff] }
 0x168   :  { %5514 = vmatprep.subr.msk.bf16.mxu1 %vm5513_vm8, %v9146_v61  ;;  %vm1864_vm8 = vcmp.eq.s32.totalorder %v9302_v54, %v7381_v29  ;;  %vm5391_vm11 = vmpackc.low %vm1736_vm15, %vm1732_vm9  ;;  %vm1749_vm9 = vcmp.eq.s32.totalorder %v9307_v18, %v7352_v48  ;;  %vm1753_vm15 = vcmp.eq.s32.totalorder %v9308_v47, %v7352_v48  ;;  %v9315_v54 = vld [vmem:[#allocation50_spill] sm:$0xff]  ;;  %v9322_v18 = vld [vmem:[#allocation41_spill] sm:$0xff] }
 0x169   :  { %vm5519_vm1 = vmpackc.low %vm1864_vm8, %vm1860_vm4  ;;  %vm1877_vm8 = vcmp.eq.s32.totalorder %v9310_v55, %v7352_v48 }
 0x16e   :  { %5388 = vmatpush1.bf16.xpose.msk.msra.mxu0 %vm5387_vm0, %v9146_v61  ;;  %vm5393_vm0 = vmpackc.low %vm1745_vm6, %vm1741_vm5  ;;  %vm1881_vm5 = vcmp.eq.s32.totalorder %v9311_v51, %v7352_v48 }
 0x16f   :  { %5516 = vmatpush1.bf16.xpose.msk.msra.mxu1 %vm5515_vm12, %v9146_v61  ;;  %5390 = vmatprep.subr.msk.bf16.mxu0 %vm5389_vm13, %v9146_v61  ;;  %vm1744_vm12 = vcmp.eq.s32.totalorder %v9304_v12, %v7381_v29  ;;  %vm1868_vm13 = vcmp.eq.s32.totalorder %v9305_v20, %v7381_v29  ;;  %vm5525_vm10 = vmpackc.low %vm1881_vm5, %vm1877_vm8  ;;  %v1509_v20 = vmul.f32 %v7003_v60, %v1504_v11  ;;  %v7612_v11 = vld [vmem:[%s8915_s0 + $0x30] sm:$0xff] }
 0x170   :  { %5518 = vmatprep.subr.msk.bf16.mxu1 %vm5517_vm3, %v9146_v61  ;;  %vm1872_vm3 = vcmp.eq.s32.totalorder %v9306_v26, %v7381_v29  ;;  %vm5395_vm4 = vmpackc.low %vm1744_vm12, %vm1740_vm2  ;;  %v1494_v26 = vsub.f32 %v7572_v53, %v9312_v44  ;;  %v1514_v12 = vsub.f32 %v7572_v53, %v7005_v9  ;;  %vm1757_vm2 = vcmp.eq.s32.totalorder %v9313_v0, %v7352_v48 }
 0x171   :  { %vm5523_vm6 = vmpackc.low %vm1872_vm3, %vm1868_vm13  ;;  %vm1885_vm13 = vcmp.eq.s32.totalorder %v9316_v15, %v7352_v48  ;;  %vm1889_vm3 = vcmp.eq.s32.totalorder %v9317_v56, %v7352_v48  ;;  %v5727_v59 = vtrunc.f32 %v1509_v20  ;;  %vm1884_vm8 = vcmp.eq.s32.totalorder %v9316_v15, %v7381_v29  ;;  %v9440_v15 = vld [vmem:[#allocation36_spill] sm:$0xff] }
 0x172   :  { %v7622_v14 = vmul.f32 %v9315_v54, %v1494_v26  ;;  %vm1535_vm5 = vcmp.ge.f32.partialorder %v1509_v20, 0.0  ;;  %v1503_v26 = vsub.f32 %v7612_v11, %v9309_v57  ;;  %v7655_v52 = vmul.f32 %v9323_v50, %v1514_v12 }
 0x173   :  { %v1493_v45 = vsub.f32 %v7612_v11, %v9312_v44  ;;  %v1539_v4 = vsel %vm1535_vm5, 1, %v9155_v16  ;;  %v5728_v46 = vcvt.f32.s32 %v5727_v59  ;;  %v9331_v59 = vld [vmem:[#allocation45_spill] sm:$0xff] }
 0x174   :  { %v5719_v12 = vtrunc.f32 %v7622_v14  ;;  %v7699_v49 = vmul.f32 %v7003_v60, %v1503_v26  ;;  %v7718_v26 = vand.u32 127, %v9333_v27  ;;  %v1543_v57 = vrot.slane %v1539_v4, 1 }
 0x175   :  { %v7715_v60 = vmul.f32 %v9315_v54, %v1493_v45  ;;  %v9334_v45 = vld [vmem:[#allocation47_spill] sm:$0xff]  ;;  %v1627_v54 = vmul.u32 8, %v5728_v46 }
 0x176   :  { %5392 = vmatpush1.bf16.xpose.msk.msra.mxu0 %vm5391_vm11, %v9146_v61  ;;  %vm5397_vm11 = vmpackc.low %vm1753_vm15, %vm1749_vm9  ;;  %vm1756_vm9 = vcmp.eq.s32.totalorder %v9313_v0, %v7381_v29  ;;  %v7724_v42 = vcvt.f32.s32 %v5719_v12  ;;  %v110_v27 = vshra.s32 %v7718_v26, 6  ;;  %v118_v44 = vshra.s32 %v7718_v26, 3 }
 0x177   :  { %5520 = vmatpush1.bf16.xpose.msk.msra.mxu1 %vm5519_vm1, %v9146_v61  ;;  %5394 = vmatprep.subr.msk.bf16.mxu0 %vm5393_vm0, %v9146_v61  ;;  %vm1752_vm1 = vcmp.eq.s32.totalorder %v9308_v47, %v7381_v29  ;;  %vm1876_vm0 = vcmp.eq.s32.totalorder %v9310_v55, %v7381_v29  ;;  %v9314_v47 = vld [vmem:[#allocation38_spill] sm:$0xff]  ;;  %v130_v4 = vand.u32 7, %v7718_v26  ;;  %v5735_v12 = vtrunc.f32 %v7655_v52 }
 0x178   :  { %5522 = vmatprep.subr.msk.bf16.mxu1 %vm5521_vm14, %v9146_v61  ;;  %vm1880_vm14 = vcmp.eq.s32.totalorder %v9311_v51, %v7381_v29  ;;  %vm1761_vm12 = vcmp.eq.s32.totalorder %v9314_v47, %v7352_v48  ;;  %vm7633_vm15 = vmpackc.low %vm1752_vm1, %vm1748_vm7  ;;  %v9326_v55 = vld [vmem:[#allocation42_spill] sm:$0xff]  ;;  %v5725_v0 = vtrunc.f32 %v7699_v49  ;;  %v122_v41 = vand.u32 7, %v118_v44 }
 0x179   :  { %vm7665_vm7 = vmpackc.low %vm1761_vm12, %vm1757_vm2  ;;  %vm1769_vm1 = vcmp.eq.s32.totalorder %v9326_v55, %v7352_v48  ;;  %vm1897_vm2 = vcmp.eq.s32.totalorder %v9330_v1, %v7352_v48  ;;  %vm1764_vm12 = vcmp.eq.s32.totalorder %v9322_v18, %v7381_v29  ;;  %v9332_v51 = vld [vmem:[#allocation46_spill] sm:$0xff]  ;;  %v1619_v44 = vmul.u32 64, %v7724_v42 }
 0x17a   :  { %vm1777_vm5 = vcmp.eq.s32.totalorder %v9332_v51, %v7352_v48  ;;  %v126_v42 = vcvt.s32.f32 %v122_v41  ;;  %v134_v39 = vcvt.s32.f32 %v130_v4  ;;  %v108_v36 = vadd.s32 256, %v7718_v26  ;;  %v9437_v4 = vld [vmem:[#allocation33_spill] sm:$0xff] }
 0x17c   :  { %v120_v40 = vshra.s32 %v108_v36, 3  ;;  %v132_v41 = vand.u32 7, %v108_v36 }
 0x17e   :  { %5396 = vmatpush1.bf16.xpose.msk.msra.mxu0 %vm5395_vm4, %v9146_v61  ;;  %vm1760_vm4 = vcmp.eq.s32.totalorder %v9314_v47, %v7381_v29  ;;  %v7847_v47 = vadd.s32 128, %v7718_v26 }
 0x17f   :  { %5524 = vmatpush1.bf16.xpose.msk.msra.mxu1 %vm5523_vm6, %v9146_v61  ;;  %5398 = vmatprep.subr.msk.bf16.mxu0 %vm5397_vm11, %v9146_v61  ;;  %vm7646_vm6 = vmpackc.low %vm1880_vm14, %vm1876_vm0  ;;  %vm1888_vm11 = vcmp.eq.s32.totalorder %v9317_v56, %v7381_v29  ;;  %vm1555_vm14 = vcmp.lt.f32.partialorder %v1509_v20, 8.0  ;;  %vm1768_vm0 = vcmp.eq.s32.totalorder %v9326_v55, %v7381_v29  ;;  %v1513_v20 = vsub.f32 %v7612_v11, %v7005_v9 }
 0x180   :  { %5526 = vmatprep.subr.msk.bf16.mxu1 %vm5525_vm10, %v9146_v61  ;;  %vm7680_vm10 = vmpackc.low %vm1889_vm3, %vm1885_vm13  ;;  %vm1892_vm13 = vcmp.eq.s32.totalorder %v9327_v23, %v7381_v29  ;;  %v1559_v43 = vsel %vm1555_vm14, 1, %v9155_v16  ;;  %vm1575_vm3 = vcmp.ge.f32.partialorder %v7655_v52, 0.0  ;;  %v111_v55 = vshra.s32 %v7847_v47, 6 }
 0x181   :  { %v1563_v46 = vrot.slane %v1559_v43, 1  ;;  %v1579_v11 = vsel %vm1575_vm3, 1, %v9155_v16  ;;  %v114_v43 = vcvt.s32.f32 %v110_v27  ;;  %vm9339_vm3 = vcmp.eq.s32.totalorder %v9322_v18, %v7352_v48 }
 0x182   :  { %vm7772_vm14 = vmpackc.low %vm1769_vm1, %vm9339_vm3  ;;  %vm9080_vm1 = vcmask 1040384   ;;  %vm9344_vm3 = vcmp.eq.s32.totalorder %v9327_v23, %v7352_v48  ;;  %v7812_v37 = vmul.f32 %v9323_v50, %v1513_v20  ;;  %v136_v18 = vcvt.s32.f32 %v132_v41 }
 0x183   :  { %v139_v50 = vsel %vm9080_vm1, %v114_v43, %v126_v42  ;;  %v112_v43 = vshra.s32 %v108_v36, 6  ;;  %v5717_v42 = vtrunc.f32 %v7715_v60  ;;  %v9435_v36 = vld [vmem:[#allocation31_spill] sm:$0xff] }
 0x184   :  { %v5733_v20 = vtrunc.f32 %v7812_v37 }
 0x186   :  { %5400 = vmatpush1.bf16.xpose.msk.msra.mxu0 %vm7633_vm15, %v9146_v61  ;;  %vm1773_vm15 = vcmp.eq.s32.totalorder %v9331_v59, %v7352_v48 }
 0x187   :  { %5528 = vmatpush1.bf16.xpose.msk.msra.mxu1 %vm7646_vm6, %v9146_v61  ;;  %5402 = vmatprep.subr.msk.bf16.mxu0 %vm7665_vm7, %v9146_v61  ;;  %vm1595_vm6 = vcmp.lt.f32.partialorder %v7655_v52, 8.0  ;;  %v1583_v52 = vrot.slane %v1579_v11, 2  ;;  %vm7807_vm7 = vcmp.ne.s32.totalorder %v1563_v46, 0  ;;  %v7868_v11 = vadd.s32 384, %v7718_v26 }
 0x188   :  { %5530 = vmatprep.subr.msk.bf16.mxu1 %vm7680_vm10, %v9146_v61  ;;  %vm7741_vm10 = vmpackc.low %vm1760_vm4, %vm1756_vm9  ;;  %vm7780_vm4 = vcmp.ne.s32.totalorder %v1543_v57, 0  ;;  %v7787_v27 = vsel %vm1595_vm6, 1, %v9155_v16  ;;  %v1631_v57 = vrot.slane %v1627_v54, 1  ;;  %v7823_v54 = vcvt.f32.s32 %v5735_v12 }
 0x189   :  { %vm7760_vm9 = vmpackc.low %vm1888_vm11, %vm1884_vm8  ;;  %v121_v34 = vshra.s32 %v7868_v11, 3 }
 0x18a   :  { %vm7796_vm8 = vmpackc.low %vm1897_vm2, %vm9344_vm3  ;;  %vm1534_vm2 = vcmp.ge.f32.partialorder %v7699_v49, 0.0  ;;  %vm143_vm3 = vcmask 1041408  }
 0x18b   :  { %v1538_v9 = vsel %vm1534_vm2, 1, %v9155_v16  ;;  %v144_v46 = vsel %vm143_vm3, %v139_v50, %v134_v39  ;;  %vm9358_vm2 = vcmp.lt.f32.partialorder %v7622_v14, 8.0  ;;  %v5726_v50 = vcvt.f32.s32 %v5725_v0  ;;  %v9425_v39 = vld [vmem:[#allocation21_spill] sm:$0xff] }
 0x18c   :  { %v1635_v0 = vadd.s32 %v1631_v57, %v1619_v44  ;;  %v9438_v57 = vld [vmem:[#allocation34_spill] sm:$0xff] }
 0x18e   :  { %5404 = vmatpush1.bf16.xpose.msk.msra.mxu0 %vm7741_vm10, %v9146_v61  ;;  %vm9359_vm10 = vcmp.ge.f32.partialorder %v7622_v14, 0.0  ;;  %v148_v14 = vmul.f32 0.14285715, %v144_v46  ;;  %v1542_v46 = vrot.slane %v1538_v9, 1 }
 0x18f   :  { %5532 = vmatpush1.bf16.xpose.msk.msra.mxu1 %vm7760_vm9, %v9146_v61  ;;  %5406 = vmatprep.subr.msk.bf16.mxu0 %vm7772_vm14, %v9146_v61  ;;  %vm7836_vm9 = vmpackc.low %vm1768_vm0, %vm1764_vm12  ;;  %vm9351_vm0 = vcmp.eq.s32.totalorder %v9330_v1, %v7381_v29  ;;  %vm7859_vm14 = vcmp.ne.s32.totalorder %v1583_v52, 0  ;;  %v119_v52 = vshra.s32 %v7847_v47, 3  ;;  %v116_v1 = vcvt.s32.f32 %v112_v43 }
 0x190   :  { %5534 = vmatprep.subr.msk.bf16.mxu1 %vm7796_vm8, %v9146_v61  ;;  %vm1554_vm8 = vcmp.lt.f32.partialorder %v7699_v49, 8.0  ;;  %vm7855_vm12 = vmpackc.low %vm9351_vm0, %vm1892_vm13  ;;  %vm1574_vm0 = vcmp.ge.f32.partialorder %v7812_v37, 0.0  ;;  %v124_v49 = vand.u32 7, %v120_v40  ;;  %v7957_v9 = vrot.slane %v148_v14, 1 }
 0x191   :  { %vm7876_vm13 = vmpackc.low %vm1777_vm5, %vm1773_vm15  ;;  %v1558_v26 = vsel %vm1554_vm8, 1, %v9155_v16  ;;  %vm9362_vm15 = vcmp.eq.s32.totalorder %v6388_v2, %v7352_v48  ;;  %vm9363_vm5 = vcmp.eq.s32.totalorder %v9334_v45, %v7352_v48  ;;  %vm9367_vm8 = vcmp.eq.s32.totalorder %v9332_v51, %v7381_v29 }
 0x192   :  { %vm7886_vm6 = vmand %vm9359_vm10, %vm9358_vm2  ;;  %v128_v23 = vcvt.s32.f32 %v124_v49  ;;  %vm9366_vm10 = vcmp.eq.s32.totalorder %v9331_v59, %v7381_v29  ;;  %v123_v35 = vand.u32 7, %v119_v52  ;;  %v1562_v43 = vrot.slane %v1558_v26, 1  ;;  %1468 = vst [vmem:[%s8921_s6 + $0x20] sm:$0x3] %v7957_v9 }
 0x193   :  { %vm7898_vm11 = vmpackc.low %vm9363_vm5, %vm9362_vm15  ;;  %v1578_v49 = vsel %vm1574_vm0, 1, %v9155_v16  ;;  %vm9371_vm5 = vcmp.eq.s32.totalorder %v9334_v45, %v7381_v29  ;;  %vm1594_vm0 = vcmp.lt.f32.partialorder %v7812_v37, 8.0  ;;  %v125_v40 = vand.u32 7, %v121_v34  ;;  %4963 = vst [vmem:[%s8921_s6 + $0x60] sm:$0x3] %v7957_v9 }
 0x194   :  { %vm7909_vm2 = vmpackc.low %vm9367_vm8, %vm9366_vm10  ;;  %v141_v44 = vsel %vm9080_vm1, %v116_v1, %v128_v23  ;;  %v5718_v1 = vcvt.f32.s32 %v5717_v42  ;;  %v1626_v23 = vmul.u32 8, %v5726_v50  ;;  %v127_v26 = vcvt.s32.f32 %v123_v35 }
 0x195   :  { %vm1551_vm15 = vmand %vm7886_vm6, %vm7780_vm4  ;;  %v146_v41 = vsel %vm143_vm3, %v141_v44, %v136_v18  ;;  %v115_v18 = vcvt.s32.f32 %v111_v55  ;;  %v131_v42 = vand.u32 7, %v7847_v47  ;;  %v113_v50 = vshra.s32 %v7868_v11, 6 }
 0x196   :  { %5408 = vmatpush1.bf16.xpose.msk.msra.mxu0 %vm7836_vm9, %v9146_v61  ;;  %vm9370_vm9 = vcmp.eq.s32.totalorder %v6388_v2, %v7381_v29  ;;  %v150_v12 = vmul.f32 0.14285715, %v146_v41  ;;  %v1643_v14 = vrot.slane %v7823_v54, 2  ;;  %v133_v35 = vand.u32 7, %v7868_v11  ;;  %v9422_v54 = vld [vmem:[#allocation18_spill] sm:$0xff] }
 0x197   :  { %5536 = vmatpush1.bf16.xpose.msk.msra.mxu1 %vm7855_vm12, %v9146_v61  ;;  %5410 = vmatprep.subr.msk.bf16.mxu0 %vm7876_vm13, %v9146_v61  ;;  %vm7937_vm10 = vmpackc.low %vm9371_vm5, %vm9370_vm9  ;;  %vm9374_vm12 = vcmp.eq.s32.totalorder %v6429_v58, %v7352_v48  ;;  %vm9375_vm13 = vcmp.eq.s32.totalorder %v6446_v19, %v7352_v48  ;;  %vm9380_vm9 = vcmp.lt.f32.partialorder %v7715_v60, 8.0  ;;  %vm9381_vm5 = vcmp.ge.f32.partialorder %v7715_v60, 0.0 }
 0x198   :  { %5538 = vmatprep.subr.msk.bf16.mxu1 %vm7898_vm11, %v9146_v61  ;;  %vm7952_vm8 = vmpackc.low %vm9375_vm13, %vm9374_vm12  ;;  %v7993_v34 = vrot.slane %v150_v12, 1  ;;  %vm9386_vm4 = vcmp.eq.s32.totalorder %v6521_v7, %v7352_v48  ;;  %vm9387_vm6 = vcmp.eq.s32.totalorder %v6524_v13, %v7352_v48  ;;  %v9390_v60 = vrot.slane %v7787_v27, 2 }
 0x199   :  { %vm7966_vm11 = vmand %vm1551_vm15, %vm7807_vm7  ;;  %vm7981_vm7 = vcmp.ne.s32.totalorder %v1542_v46, 0  ;;  %v1582_v47 = vrot.slane %v1578_v49, 2  ;;  %v1598_v11 = vsel %vm1594_vm0, 1, %v9155_v16  ;;  %v1618_v46 = vmul.u32 64, %v5718_v1 }
 0x19a   :  { %vm7977_vm12 = vmand %vm9381_vm5, %vm9380_vm9  ;;  %vm8008_vm13 = vcmp.ne.s32.totalorder %v9390_v60, 0  ;;  %vm8019_vm5 = vcmp.ne.s32.totalorder %v1562_v43, 0  ;;  %v1630_v27 = vrot.slane %v1626_v23, 1  ;;  %1470 = vst [vmem:[%s8921_s6 + $0x30] sm:$0x3] %v7993_v34  ;;  %v135_v37 = vcvt.s32.f32 %v131_v42  ;;  %v9421_v60 = vld [vmem:[#allocation17_spill] sm:$0xff] }
 0x19b   :  { %vm8002_vm15 = vmpackc.low %vm9387_vm6, %vm9386_vm4  ;;  %4965 = vst [vmem:[%s8921_s6 + $0x70] sm:$0x3] %v7993_v34  ;;  %v5734_v16 = vcvt.f32.s32 %v5733_v20  ;;  %v140_v43 = vsel %vm9080_vm1, %v115_v18, %v127_v26  ;;  %v117_v49 = vcvt.s32.f32 %v113_v50  ;;  %v129_v44 = vcvt.s32.f32 %v125_v40 }
 0x19c   :  { %vm1591_vm9 = vmand %vm7966_vm11, %vm7859_vm14  ;;  %vm1780_vm4 = vcmp.eq.s32.totalorder %v6429_v58, %v7381_v29  ;;  %v1647_v1 = vadd.s32 %v1643_v14, %v1635_v0  ;;  %v137_v23 = vcvt.s32.f32 %v133_v35  ;;  %vm1908_vm1 = vcmp.eq.s32.totalorder %v6521_v7, %v7381_v29 }
 0x19d   :  { %vm1550_vm0 = vmand %vm7977_vm12, %vm7981_vm7  ;;  %v1602_v0 = vrot.slane %v1598_v11, 2  ;;  %vm8082_vm11 = vcmp.ne.s32.totalorder %v1582_v47, 0  ;;  %v145_v41 = vsel %vm143_vm3, %v140_v43, %v135_v37  ;;  %v1634_v20 = vadd.s32 %v1630_v27, %v1618_v46  ;;  %v9423_v47 = vld [vmem:[#allocation19_spill] sm:$0xff]  ;;  %v9424_v11 = vld [vmem:[#allocation20_spill] sm:$0xff] }
 0x19e   :  { %5412 = vmatpush1.bf16.xpose.msk.msra.mxu0 %vm7909_vm2, %v9146_v61  ;;  %vm1912_vm2 = vcmp.eq.s32.totalorder %v6524_v13, %v7381_v29  ;;  %vm8060_vm6 = vmand %vm1591_vm9, %vm8008_vm13  ;;  %v1642_v12 = vrot.slane %v5734_v16, 2  ;;  %v149_v18 = vmul.f32 0.14285715, %v145_v41  ;;  %vm9404_vm12 = vcmask 1040384   ;;  %v9426_v46 = vld [vmem:[#allocation22_spill] sm:$0xff]  ;;  %v9427_v27 = vld [vmem:[#allocation23_spill] sm:$0xff] }
 0x19f   :  { %5540 = vmatpush1.bf16.xpose.msk.msra.mxu1 %vm7937_vm10, %v9146_v61  ;;  %5414 = vmatprep.subr.msk.bf16.mxu0 %vm7952_vm8, %v9146_v61  ;;  %vm1789_vm10 = vcmp.eq.s32.totalorder %v6646_v28, %v7352_v48  ;;  %vm1793_vm8 = vcmp.eq.s32.totalorder %v6649_v62, %v7352_v48  ;;  %vm8078_vm14 = vmand %vm1550_vm0, %vm8019_vm5  ;;  %v142_v52 = vsel %vm9404_vm12, %v117_v49, %v129_v44  ;;  %v1651_v42 = vsel %vm8060_vm6, %v1647_v1, 4294967295  ;;  %v9428_v37 = vld [vmem:[#allocation24_spill] sm:$0xff]  ;;  %v9429_v16 = vld [vmem:[#allocation25_spill] sm:$0xff] }
 0x1a0   :  { %5542 = vmatprep.subr.msk.bf16.mxu1 %vm8002_vm15, %v9146_v61  ;;  %vm9401_vm15 = vcmp.eq.s32.totalorder %v6446_v19, %v7381_v29  ;;  %vm8101_vm7 = vmpackc.low %vm1912_vm2, %vm1908_vm1  ;;  %vm1917_vm9 = vcmp.eq.s32.totalorder %v6674_v63, %v7352_v48  ;;  %vm1921_vm5 = vcmp.eq.s32.totalorder %v6677_v5, %v7352_v48  ;;  %v147_v50 = vsel %vm143_vm3, %v142_v52, %v137_v23  ;;  %v9430_v43 = vld [vmem:[#allocation26_spill] sm:$0xff]  ;;  %v9431_v49 = vld [vmem:[#allocation27_spill] sm:$0xff] }
 0x1a1   :  { %vm8093_vm13 = vmpackc.low %vm9401_vm15, %vm1780_vm4  ;;  %vm1606_vm1 = vcmp.ne.s32.totalorder %v1602_v0, 0  ;;  %v8116_v40 = vrot.slane %v149_v18, 1  ;;  %v151_v14 = vmul.f32 0.14285715, %v147_v50  ;;  %v8125_v38 = vrot.slane %v1651_v42, %v5867_v17  ;;  %v9432_v44 = vld [vmem:[#allocation28_spill] sm:$0xff]  ;;  %v9433_v1 = vld [vmem:[#allocation29_spill] sm:$0xff] }
 0x1a2   :  { %vm1590_vm0 = vmand %vm8078_vm14, %vm8082_vm11  ;;  %v1646_v56 = vadd.s32 %v1642_v12, %v1634_v20  ;;  %vm1916_vm14 = vcmp.eq.s32.totalorder %v6674_v63, %v7381_v29  ;;  %vm1920_vm11 = vcmp.eq.s32.totalorder %v6677_v5, %v7381_v29  ;;  %v9434_v23 = vld [vmem:[#allocation30_spill] sm:$0xff]  ;;  %v9436_v0 = vld [vmem:[#allocation32_spill] sm:$0xff] }
 0x1a3   :  { %vm5417_vm4 = vmpackc.low %vm1793_vm8, %vm1789_vm10  ;;  %1469 = vst [vmem:[%s8921_s6 + $0x28] sm:$0x3] %v8116_v40  ;;  %v8135_v35 = vrot.slane %v151_v14, 1  ;;  %vm1788_vm10 = vcmp.eq.s32.totalorder %v6646_v28, %v7381_v29  ;;  %vm1792_vm8 = vcmp.eq.s32.totalorder %v6649_v62, %v7381_v29  ;;  %vm1671_vm15 = vcmp.eq.s32.totalorder %v5843_v3, %v8125_v38  ;;  %v9439_v41 = vld [vmem:[#allocation35_spill] sm:$0xff]  ;;  %v9441_v20 = vld [vmem:[#allocation37_spill] sm:$0xff] }
 0x1a4   :  { %vm5545_vm2 = vmpackc.low %vm1921_vm5, %vm1917_vm9  ;;  %4964 = vst [vmem:[%s8921_s6 + $0x68] sm:$0x3] %v8116_v40  ;;  %vm1803_vm9 = vcmp.eq.s32.totalorder %v5932_v10, %v8125_v38  ;;  %v9442_v12 = vld [vmem:[#allocation38_spill] sm:$0xff]  ;;  %v9443_v18 = vld [vmem:[#allocation39_spill] sm:$0xff] }
 0x1a5   :  { %vm8140_vm6 = vmand %vm1590_vm0, %vm1606_vm1  ;;  %1471 = vst [vmem:[%s8921_s6 + $0x38] sm:$0x3] %v8135_v35  ;;  %v9444_v52 = vld [vmem:[#allocation40_spill] sm:$0xff]  ;;  %v9446_v48 = vld [vmem:[#allocation42_spill] sm:$0xff] }
 0x1a6   :  { %5416 = vmatpush1.bf16.xpose.msk.msra.mxu0 %vm8093_vm13, %v9146_v61  ;;  %4966 = vst [vmem:[%s8921_s6 + $0x78] sm:$0x3] %v8135_v35  ;;  %vm1675_vm13 = vcmp.eq.s32.totalorder %v5926_v6, %v8125_v38  ;;  %v1650_v55 = vsel %vm8140_vm6, %v1646_v56, 4294967295  ;;  %vm5419_vm12 = vmpackc.low %vm1792_vm8, %vm1788_vm10  ;;  %v9445_v56 = vld [vmem:[#allocation41_spill] sm:$0xff] }
 0x1a7   :  { %5544 = vmatpush1.bf16.xpose.msk.msra.mxu1 %vm8101_vm7, %v9146_v61  ;;  %5418 = vmatprep.subr.msk.bf16.mxu0 %vm5417_vm4, %v9146_v61  ;;  %vm1799_vm7 = vcmp.eq.s32.totalorder %v5929_v8, %v8125_v38  ;;  %vm5547_vm5 = vmpackc.low %vm1920_vm11, %vm1916_vm14  ;;  %v8176_v29 = vrot.slane %v1650_v55, %v5867_v17  ;;  %vm1679_vm4 = vcmp.eq.s32.totalorder %v5944_v21, %v8125_v38  ;;  %v5765_v17 = vld [vmem:[%s8915_s0 + $0x20] sm:$0xff] }
 0x1a8   :  { %5546 = vmatprep.subr.msk.bf16.mxu1 %vm5545_vm2, %v9146_v61  ;;  %vm5421_vm0 = vmpackc.low %vm1675_vm13, %vm1671_vm15  ;;  %vm1683_vm2 = vcmp.eq.s32.totalorder %v5947_v22, %v8125_v38  ;;  %vm1807_vm15 = vcmp.eq.s32.totalorder %v5958_v24, %v8125_v38  ;;  %vm1811_vm13 = vcmp.eq.s32.totalorder %v5961_v25, %v8125_v38 }
 0x1a9   :  { %vm5549_vm1 = vmpackc.low %vm1803_vm9, %vm1799_vm7  ;;  %vm1670_vm6 = vcmp.eq.s32.totalorder %v5843_v3, %v8176_v29  ;;  %vm1674_vm10 = vcmp.eq.s32.totalorder %v5926_v6, %v8176_v29  ;;  %vm1798_vm8 = vcmp.eq.s32.totalorder %v5929_v8, %v8176_v29  ;;  %vm1802_vm14 = vcmp.eq.s32.totalorder %v5932_v10, %v8176_v29  ;;  %v9409_v6 = vld [vmem:[#allocation5_spill] sm:$0xff]  ;;  %v9410_v8 = vld [vmem:[#allocation6_spill] sm:$0xff] }
 0x1aa   :  { %vm5425_vm11 = vmpackc.low %vm1683_vm2, %vm1679_vm4  ;;  %vm1682_vm4 = vcmp.eq.s32.totalorder %v5947_v22, %v8176_v29  ;;  %vm1806_vm2 = vcmp.eq.s32.totalorder %v5958_v24, %v8176_v29  ;;  %v9411_v10 = vld [vmem:[#allocation7_spill] sm:$0xff]  ;;  %v9413_v22 = vld [vmem:[#allocation9_spill] sm:$0xff] }
 0x1ab   :  { %vm5551_vm7 = vmpackc.low %vm1802_vm14, %vm1798_vm8  ;;  %vm1815_vm8 = vcmp.eq.s32.totalorder %v5992_v32, %v8125_v38  ;;  %vm1819_vm14 = vcmp.eq.s32.totalorder %v5995_v33, %v8125_v38  ;;  %v9414_v24 = vld [vmem:[#allocation10_spill] sm:$0xff] }
 0x1ac   :  { %vm5553_vm9 = vmpackc.low %vm1811_vm13, %vm1807_vm15 }
 0x1ad   :  { %vm5557_vm13 = vmpackc.low %vm1819_vm14, %vm1815_vm8 }
 0x1ae   :  { %5420 = vmatpush1.bf16.xpose.msk.msra.mxu0 %vm5419_vm12, %v9146_v61  ;;  %vm5423_vm12 = vmpackc.low %vm1674_vm10, %vm1670_vm6  ;;  %vm1810_vm6 = vcmp.eq.s32.totalorder %v5961_v25, %v8176_v29  ;;  %v9415_v25 = vld [vmem:[#allocation11_spill] sm:$0xff] }
 0x1af   :  { %5548 = vmatpush1.bf16.xpose.msk.msra.mxu1 %vm5547_vm5, %v9146_v61  ;;  %5422 = vmatprep.subr.msk.bf16.mxu0 %vm5421_vm0, %v9146_v61  ;;  %vm1687_vm5 = vcmp.eq.s32.totalorder %v5977_v30, %v8125_v38  ;;  %vm1691_vm0 = vcmp.eq.s32.totalorder %v5980_v31, %v8125_v38  ;;  %vm5555_vm15 = vmpackc.low %vm1810_vm6, %vm1806_vm2  ;;  %vm1823_vm2 = vcmp.eq.s32.totalorder %v9411_v10, %v8125_v38 }
 0x1b0   :  { %5550 = vmatprep.subr.msk.bf16.mxu1 %vm5549_vm1, %v9146_v61  ;;  %vm1678_vm1 = vcmp.eq.s32.totalorder %v5944_v21, %v8176_v29  ;;  %vm5429_vm10 = vmpackc.low %vm1691_vm0, %vm1687_vm5  ;;  %vm1818_vm5 = vcmp.eq.s32.totalorder %v5995_v33, %v8176_v29  ;;  %vm1695_vm0 = vcmp.eq.s32.totalorder %v9409_v6, %v8125_v38  ;;  %v9412_v21 = vld [vmem:[#allocation8_spill] sm:$0xff]  ;;  %v9419_v33 = vld [vmem:[#allocation15_spill] sm:$0xff] }
 0x1b1   :  { %vm1827_vm6 = vcmp.eq.s32.totalorder %v9412_v21, %v8125_v38 }
 0x1b2   :  { %vm5561_vm14 = vmpackc.low %vm1827_vm6, %vm1823_vm2 }
 0x1b5   :  { %2501 = vmatmul.mubr.f32.vlgmr.msra.gmra.mrb[2].mxu0 %v5765_v17 }
 0x1b6   :  { %5424 = vmatpush1.bf16.xpose.msk.msra.mxu0 %vm5423_vm12, %v9146_v61  ;;  %2643 = vmatmul.mubr.f32.vlgmr.msra.gmra.mrb[2].mxu1 %v5765_v17  ;;  %vm1686_vm12 = vcmp.eq.s32.totalorder %v5977_v30, %v8176_v29  ;;  %v9416_v30 = vld [vmem:[#allocation12_spill] sm:$0xff] }
 0x1b7   :  { %5552 = vmatpush1.bf16.xpose.msk.msra.mxu1 %vm5551_vm7, %v9146_v61  ;;  %5426 = vmatprep.subr.msk.bf16.mxu0 %vm5425_vm11, %v9146_v61  ;;  %vm5427_vm11 = vmpackc.low %vm1682_vm4, %vm1678_vm1  ;;  %vm1690_vm7 = vcmp.eq.s32.totalorder %v5980_v31, %v8176_v29  ;;  %vm1699_vm1 = vcmp.eq.s32.totalorder %v9410_v8, %v8125_v38  ;;  %v9417_v31 = vld [vmem:[#allocation13_spill] sm:$0xff] }
 0x1b8   :  { %5554 = vmatprep.subr.msk.bf16.mxu1 %vm5553_vm9, %v9146_v61  ;;  %2571 = vmatprep.mubr.f32.mxu0 %v7572_v53  ;;  %vm1814_vm9 = vcmp.eq.s32.totalorder %v5992_v32, %v8176_v29  ;;  %vm5431_vm4 = vmpackc.low %vm1690_vm7, %vm1686_vm12  ;;  %vm1826_vm12 = vcmp.eq.s32.totalorder %v9412_v21, %v8176_v29  ;;  %vm1703_vm7 = vcmp.eq.s32.totalorder %v9413_v22, %v8125_v38  ;;  %v9418_v32 = vld [vmem:[#allocation14_spill] sm:$0xff] }
 0x1b9   :  { %2713 = vmatprep.mubr.f32.mxu1 %v7572_v53  ;;  %vm5433_vm8 = vmpackc.low %vm1699_vm1, %vm1695_vm0  ;;  %vm1831_vm0 = vcmp.eq.s32.totalorder %v9415_v25, %v8125_v38  ;;  %vm1835_vm1 = vcmp.eq.s32.totalorder %v9416_v30, %v8125_v38  ;;  %v9420_v53 = vld [vmem:[#allocation16_spill] sm:$0xff] }
 0x1ba   :  { %vm5565_vm6 = vmpackc.low %vm1835_vm1, %vm1831_vm0 }
 0x1be   :  { %5428 = vmatpush1.bf16.xpose.msk.msra.mxu0 %vm5427_vm11, %v9146_v61  ;;  %vm1694_vm11 = vcmp.eq.s32.totalorder %v9409_v6, %v8176_v29 }
 0x1bf   :  { %5556 = vmatpush1.bf16.xpose.msk.msra.mxu1 %vm5555_vm15, %v9146_v61  ;;  %5430 = vmatprep.subr.msk.bf16.mxu0 %vm5429_vm10, %v9146_v61  ;;  %vm5559_vm10 = vmpackc.low %vm1818_vm5, %vm1814_vm9  ;;  %vm1698_vm15 = vcmp.eq.s32.totalorder %v9410_v8, %v8176_v29  ;;  %vm1707_vm9 = vcmp.eq.s32.totalorder %v9414_v24, %v8125_v38  ;;  %v9447_v8 = vld [vmem:[#allocation43_spill] sm:$0xff] }
 0x1c0   :  { %5558 = vmatprep.subr.msk.bf16.mxu1 %vm5557_vm13, %v9146_v61  ;;  %vm1822_vm13 = vcmp.eq.s32.totalorder %v9411_v10, %v8176_v29  ;;  %vm5435_vm5 = vmpackc.low %vm1698_vm15, %vm1694_vm11  ;;  %vm1834_vm11 = vcmp.eq.s32.totalorder %v9416_v30, %v8176_v29  ;;  %vm1711_vm15 = vcmp.eq.s32.totalorder %v9417_v31, %v8125_v38  ;;  %v9448_v10 = vld [vmem:[#allocation44_spill] sm:$0xff] }
 0x1c1   :  { %vm5437_vm2 = vmpackc.low %vm1707_vm9, %vm1703_vm7  ;;  %vm1839_vm7 = vcmp.eq.s32.totalorder %v9419_v33, %v8125_v38  ;;  %vm1843_vm9 = vcmp.eq.s32.totalorder %v9420_v53, %v8125_v38 }
 0x1c2   :  { %vm5569_vm1 = vmpackc.low %vm1843_vm9, %vm1839_vm7 }
 0x1c6   :  { %5432 = vmatpush1.bf16.xpose.msk.msra.mxu0 %vm5431_vm4, %v9146_v61  ;;  %vm5563_vm4 = vmpackc.low %vm1826_vm12, %vm1822_vm13  ;;  %vm1715_vm13 = vcmp.eq.s32.totalorder %v9418_v32, %v8125_v38 }
 0x1c7   :  { %5560 = vmatpush1.bf16.xpose.msk.msra.mxu1 %vm5559_vm10, %v9146_v61  ;;  %5434 = vmatprep.subr.msk.bf16.mxu0 %vm5433_vm8, %v9146_v61  ;;  %vm1702_vm10 = vcmp.eq.s32.totalorder %v9413_v22, %v8176_v29  ;;  %vm1706_vm8 = vcmp.eq.s32.totalorder %v9414_v24, %v8176_v29  ;;  %vm5441_vm0 = vmpackc.low %vm1715_vm13, %vm1711_vm15  ;;  %vm1847_vm15 = vcmp.eq.s32.totalorder %v9423_v47, %v8125_v38  ;;  %v8455_v22 = vsub.s32 6, %v5843_v3 }
 0x1c8   :  { %5562 = vmatprep.subr.msk.bf16.mxu1 %vm5561_vm14, %v9146_v61  ;;  %vm1830_vm14 = vcmp.eq.s32.totalorder %v9415_v25, %v8176_v29  ;;  %vm5439_vm12 = vmpackc.low %vm1706_vm8, %vm1702_vm10  ;;  %vm1842_vm10 = vcmp.eq.s32.totalorder %v9420_v53, %v8176_v29  ;;  %vm1719_vm8 = vcmp.eq.s32.totalorder %v9421_v60, %v8125_v38  ;;  %vm1851_vm13 = vcmp.eq.s32.totalorder %v9424_v11, %v8125_v38 }
 0x1c9   :  { %vm5573_vm9 = vmpackc.low %vm1851_vm13, %vm1847_vm15 }
 0x1ce   :  { %5436 = vmatpush1.bf16.xpose.msk.msra.mxu0 %vm5435_vm5, %v9146_v61  ;;  %vm5567_vm5 = vmpackc.low %vm1834_vm11, %vm1830_vm14  ;;  %vm1723_vm14 = vcmp.eq.s32.totalorder %v9422_v54, %v8125_v38 }
 0x1cf   :  { %5564 = vmatpush1.bf16.xpose.msk.msra.mxu1 %vm5563_vm4, %v9146_v61  ;;  %5438 = vmatprep.subr.msk.bf16.mxu0 %vm5437_vm2, %v9146_v61  ;;  %vm1710_vm4 = vcmp.eq.s32.totalorder %v9417_v31, %v8176_v29  ;;  %vm1714_vm2 = vcmp.eq.s32.totalorder %v9418_v32, %v8176_v29  ;;  %vm5445_vm7 = vmpackc.low %vm1723_vm14, %vm1719_vm8  ;;  %vm1855_vm8 = vcmp.eq.s32.totalorder %v9427_v27, %v8125_v38 }
 0x1d0   :  { %5566 = vmatprep.subr.msk.bf16.mxu1 %vm5565_vm6, %v9146_v61  ;;  %vm1838_vm6 = vcmp.eq.s32.totalorder %v9419_v33, %v8176_v29  ;;  %vm5443_vm11 = vmpackc.low %vm1714_vm2, %vm1710_vm4  ;;  %vm1850_vm4 = vcmp.eq.s32.totalorder %v9424_v11, %v8176_v29  ;;  %vm1727_vm2 = vcmp.eq.s32.totalorder %v9425_v39, %v8125_v38  ;;  %vm1859_vm14 = vcmp.eq.s32.totalorder %v9428_v37, %v8125_v38 }
 0x1d1   :  { %vm5577_vm13 = vmpackc.low %vm1859_vm14, %vm1855_vm8 }
 0x1d6   :  { %5440 = vmatpush1.bf16.xpose.msk.msra.mxu0 %vm5439_vm12, %v9146_v61  ;;  %vm5571_vm12 = vmpackc.low %vm1842_vm10, %vm1838_vm6  ;;  %vm1731_vm6 = vcmp.eq.s32.totalorder %v9426_v46, %v8125_v38 }
 0x1d7   :  { %5568 = vmatpush1.bf16.xpose.msk.msra.mxu1 %vm5567_vm5, %v9146_v61  ;;  %5442 = vmatprep.subr.msk.bf16.mxu0 %vm5441_vm0, %v9146_v61  ;;  %vm1718_vm5 = vcmp.eq.s32.totalorder %v9421_v60, %v8176_v29  ;;  %vm1722_vm0 = vcmp.eq.s32.totalorder %v9422_v54, %v8176_v29  ;;  %vm5449_vm15 = vmpackc.low %vm1731_vm6, %vm1727_vm2  ;;  %vm1863_vm2 = vcmp.eq.s32.totalorder %v9431_v49, %v8125_v38 }
 0x1d8   :  { %5570 = vmatprep.subr.msk.bf16.mxu1 %vm5569_vm1, %v9146_v61  ;;  %vm1846_vm1 = vcmp.eq.s32.totalorder %v9423_v47, %v8176_v29  ;;  %vm5447_vm10 = vmpackc.low %vm1722_vm0, %vm1718_vm5  ;;  %vm1858_vm5 = vcmp.eq.s32.totalorder %v9428_v37, %v8176_v29  ;;  %vm1735_vm0 = vcmp.eq.s32.totalorder %v9429_v16, %v8125_v38  ;;  %vm1867_vm6 = vcmp.eq.s32.totalorder %v9432_v44, %v8125_v38 }
 0x1d9   :  { %vm5581_vm14 = vmpackc.low %vm1867_vm6, %vm1863_vm2 }
 0x1de   :  { %5444 = vmatpush1.bf16.xpose.msk.msra.mxu0 %vm5443_vm11, %v9146_v61  ;;  %vm5575_vm11 = vmpackc.low %vm1850_vm4, %vm1846_vm1  ;;  %vm1739_vm1 = vcmp.eq.s32.totalorder %v9430_v43, %v8125_v38 }
 0x1df   :  { %5572 = vmatpush1.bf16.xpose.msk.msra.mxu1 %vm5571_vm12, %v9146_v61  ;;  %5446 = vmatprep.subr.msk.bf16.mxu0 %vm5445_vm7, %v9146_v61  ;;  %vm1726_vm12 = vcmp.eq.s32.totalorder %v9425_v39, %v8176_v29  ;;  %vm1730_vm7 = vcmp.eq.s32.totalorder %v9426_v46, %v8176_v29  ;;  %vm5453_vm8 = vmpackc.low %vm1739_vm1, %vm1735_vm0  ;;  %vm1871_vm0 = vcmp.eq.s32.totalorder %v9435_v36, %v8125_v38  ;;  %v5784_v39 = vmov 0.0  }
 0x1e0   :  { %5574 = vmatprep.subr.msk.bf16.mxu1 %vm5573_vm9, %v9146_v61  ;;  %vm1854_vm9 = vcmp.eq.s32.totalorder %v9427_v27, %v8176_v29  ;;  %vm5451_vm4 = vmpackc.low %vm1730_vm7, %vm1726_vm12  ;;  %vm1866_vm12 = vcmp.eq.s32.totalorder %v9432_v44, %v8176_v29  ;;  %vm1743_vm7 = vcmp.eq.s32.totalorder %v9433_v1, %v8125_v38  ;;  %vm1875_vm1 = vcmp.eq.s32.totalorder %v9436_v0, %v8125_v38 }
 0x1e1   :  { %vm5585_vm6 = vmpackc.low %vm1875_vm1, %vm1871_vm0 }
 0x1e6   :  { %5448 = vmatpush1.bf16.xpose.msk.msra.mxu0 %vm5447_vm10, %v9146_v61  ;;  %vm5579_vm10 = vmpackc.low %vm1858_vm5, %vm1854_vm9  ;;  %vm1747_vm9 = vcmp.eq.s32.totalorder %v9434_v23, %v8125_v38 }
 0x1e7   :  { %5576 = vmatpush1.bf16.xpose.msk.msra.mxu1 %vm5575_vm11, %v9146_v61  ;;  %5450 = vmatprep.subr.msk.bf16.mxu0 %vm5449_vm15, %v9146_v61  ;;  %vm1734_vm11 = vcmp.eq.s32.totalorder %v9429_v16, %v8176_v29  ;;  %vm1738_vm15 = vcmp.eq.s32.totalorder %v9430_v43, %v8176_v29  ;;  %vm5457_vm2 = vmpackc.low %vm1747_vm9, %vm1743_vm7  ;;  %vm1879_vm7 = vcmp.eq.s32.totalorder %v9439_v41, %v8125_v38 }
 0x1e8   :  { %5578 = vmatprep.subr.msk.bf16.mxu1 %vm5577_vm13, %v9146_v61  ;;  %vm1862_vm13 = vcmp.eq.s32.totalorder %v9431_v49, %v8176_v29  ;;  %vm5455_vm5 = vmpackc.low %vm1738_vm15, %vm1734_vm11  ;;  %vm1874_vm11 = vcmp.eq.s32.totalorder %v9436_v0, %v8176_v29  ;;  %vm1751_vm15 = vcmp.eq.s32.totalorder %v9437_v4, %v8125_v38  ;;  %vm1883_vm9 = vcmp.eq.s32.totalorder %v9440_v15, %v8125_v38 }
 0x1e9   :  { %vm5589_vm1 = vmpackc.low %vm1883_vm9, %vm1879_vm7 }
 0x1ee   :  { %5452 = vmatpush1.bf16.xpose.msk.msra.mxu0 %vm5451_vm4, %v9146_v61  ;;  %vm5583_vm4 = vmpackc.low %vm1866_vm12, %vm1862_vm13  ;;  %vm1755_vm13 = vcmp.eq.s32.totalorder %v9438_v57, %v8125_v38 }
 0x1ef   :  { %5580 = vmatpush1.bf16.xpose.msk.msra.mxu1 %vm5579_vm10, %v9146_v61  ;;  %5454 = vmatprep.subr.msk.bf16.mxu0 %vm5453_vm8, %v9146_v61  ;;  %vm1742_vm10 = vcmp.eq.s32.totalorder %v9433_v1, %v8176_v29  ;;  %vm1746_vm8 = vcmp.eq.s32.totalorder %v9434_v23, %v8176_v29  ;;  %vm5461_vm0 = vmpackc.low %vm1755_vm13, %vm1751_vm15  ;;  %vm1887_vm15 = vcmp.eq.s32.totalorder %v9443_v18, %v8125_v38 }
 0x1f0   :  { %5582 = vmatprep.subr.msk.bf16.mxu1 %vm5581_vm14, %v9146_v61  ;;  %vm1870_vm14 = vcmp.eq.s32.totalorder %v9435_v36, %v8176_v29  ;;  %vm5459_vm12 = vmpackc.low %vm1746_vm8, %vm1742_vm10  ;;  %vm1882_vm10 = vcmp.eq.s32.totalorder %v9440_v15, %v8176_v29  ;;  %vm1759_vm8 = vcmp.eq.s32.totalorder %v9441_v20, %v8125_v38  ;;  %vm1891_vm13 = vcmp.eq.s32.totalorder %v9444_v52, %v8125_v38  ;;  %v4968_v15 = vld [vmem:[%s8917_s2 + $0x28] sm:$0xff] }
 0x1f1   :  { %vm5593_vm9 = vmpackc.low %vm1891_vm13, %vm1887_vm15 }
 0x1f6   :  { %5456 = vmatpush1.bf16.xpose.msk.msra.mxu0 %vm5455_vm5, %v9146_v61  ;;  %vm5587_vm5 = vmpackc.low %vm1874_vm11, %vm1870_vm14  ;;  %vm1763_vm14 = vcmp.eq.s32.totalorder %v9442_v12, %v8125_v38 }
 0x1f7   :  { %5584 = vmatpush1.bf16.xpose.msk.msra.mxu1 %vm5583_vm4, %v9146_v61  ;;  %5458 = vmatprep.subr.msk.bf16.mxu0 %vm5457_vm2, %v9146_v61  ;;  %vm1750_vm4 = vcmp.eq.s32.totalorder %v9437_v4, %v8176_v29  ;;  %vm1754_vm2 = vcmp.eq.s32.totalorder %v9438_v57, %v8176_v29  ;;  %vm5465_vm7 = vmpackc.low %vm1763_vm14, %vm1759_vm8  ;;  %vm1895_vm8 = vcmp.eq.s32.totalorder %v9447_v8, %v8125_v38 }
 0x1f8   :  { %5586 = vmatprep.subr.msk.bf16.mxu1 %vm5585_vm6, %v9146_v61  ;;  %vm1878_vm6 = vcmp.eq.s32.totalorder %v9439_v41, %v8176_v29  ;;  %vm5463_vm11 = vmpackc.low %vm1754_vm2, %vm1750_vm4  ;;  %vm1890_vm4 = vcmp.eq.s32.totalorder %v9444_v52, %v8176_v29  ;;  %vm1767_vm2 = vcmp.eq.s32.totalorder %v9445_v56, %v8125_v38  ;;  %vm1899_vm14 = vcmp.eq.s32.totalorder %v9448_v10, %v8125_v38  ;;  %v2781_v41 = vld [vmem:[%s8917_s2] sm:$0xff]  ;;  %v4970_v52 = vld [vmem:[%s8917_s2 + $0x38] sm:$0xff] }
 0x1f9   :  { %vm5597_vm13 = vmpackc.low %vm1899_vm14, %vm1895_vm8  ;;  %vm1454_vm14 = vcmask 1045504   ;;  %2787 = vperm.xlu0 %5745, %v2781_v41  }
 0x1fe   :  { %5460 = vmatpush1.bf16.xpose.msk.msra.mxu0 %vm5459_vm12, %v9146_v61  ;;  %vm5591_vm12 = vmpackc.low %vm1882_vm10, %vm1878_vm6  ;;  %vm1771_vm6 = vcmp.eq.s32.totalorder %v9446_v48, %v8125_v38 }
 0x1ff   :  { %5588 = vmatpush1.bf16.xpose.msk.msra.mxu1 %vm5587_vm5, %v9146_v61  ;;  %5462 = vmatprep.subr.msk.bf16.mxu0 %vm5461_vm0, %v9146_v61  ;;  %vm1758_vm5 = vcmp.eq.s32.totalorder %v9441_v20, %v8176_v29  ;;  %vm1762_vm0 = vcmp.eq.s32.totalorder %v9442_v12, %v8176_v29  ;;  %vm5469_vm15 = vmpackc.low %vm1771_vm6, %vm1767_vm2  ;;  %vm1903_vm2 = vcmp.eq.s32.totalorder %v6388_v2, %v8125_v38  ;;  %v2782_v20 = vld [vmem:[%s8917_s2 + $0x8] sm:$0xff]  ;;  %v2784_v12 = vld [vmem:[%s8917_s2 + $0x18] sm:$0xff] }
 0x200   :  { %5590 = vmatprep.subr.msk.bf16.mxu1 %vm5589_vm1, %v9146_v61  ;;  %vm1886_vm1 = vcmp.eq.s32.totalorder %v9443_v18, %v8176_v29  ;;  %vm5467_vm10 = vmpackc.low %vm1762_vm0, %vm1758_vm5  ;;  %vm1898_vm5 = vcmp.eq.s32.totalorder %v9448_v10, %v8176_v29  ;;  %vm1775_vm0 = vcmp.eq.s32.totalorder %v9331_v59, %v8125_v38  ;;  %vm1907_vm6 = vcmp.eq.s32.totalorder %v9334_v45, %v8125_v38  ;;  %v2783_v18 = vld [vmem:[%s8917_s2 + $0x10] sm:$0xff] }
 0x201   :  { %2792 = vperm.xlu0 %5745, %v2782_v20  }
 0x205   :  { %2797 = vperm.xlu0 %5745, %v2783_v18  }
 0x206   :  { %5464 = vmatpush1.bf16.xpose.msk.msra.mxu0 %vm5463_vm11, %v9146_v61  ;;  %vm5595_vm11 = vmpackc.low %vm1890_vm4, %vm1886_vm1  ;;  %vm1779_vm1 = vcmp.eq.s32.totalorder %v9332_v51, %v8125_v38 }
 0x207   :  { %5592 = vmatpush1.bf16.xpose.msk.msra.mxu1 %vm5591_vm12, %v9146_v61  ;;  %5466 = vmatprep.subr.msk.bf16.mxu0 %vm5465_vm7, %v9146_v61  ;;  %vm1766_vm12 = vcmp.eq.s32.totalorder %v9445_v56, %v8176_v29  ;;  %vm1770_vm7 = vcmp.eq.s32.totalorder %v9446_v48, %v8176_v29  ;;  %vm8465_vm8 = vmpackc.low %vm1779_vm1, %vm1775_vm0  ;;  %vm1783_vm1 = vcmp.eq.s32.totalorder %v6429_v58, %v8125_v38 }
 0x208   :  { %v8410_v26 = vpop.f32.mrb[0].mxu0  ;;  %5594 = vmatprep.subr.msk.bf16.mxu1 %vm5593_vm9, %v9146_v61  ;;  %vm1894_vm9 = vcmp.eq.s32.totalorder %v9447_v8, %v8176_v29  ;;  %vm5471_vm4 = vmpackc.low %vm1770_vm7, %vm1766_vm12  ;;  %vm1778_vm12 = vcmp.eq.s32.totalorder %v9332_v51, %v8176_v29 }
 0x209   :  { %v1398_v42 = vmax.f32 %v8410_v26, 1.0  ;;  %v8418_v50 = vpop.f32.mrb[0].mxu1  ;;  %v8420_v14 = vpop.f32.mrb[1].mxu0  ;;  %vm1430_vm7 = vcmp.gt.f32.partialorder %v8410_v26, 0.0 }
 0x20a   :  { %v1400_v55 = vmax.f32 %v8418_v50, 1.0  ;;  %v1399_v17 = vmax.f32 %v8420_v14, 1.0  ;;  %v8428_v6 = vpop.f32.mrb[1].mxu1  ;;  %vm1432_vm0 = vcmp.gt.f32.partialorder %v8418_v50, 0.0  ;;  %v4429_v46 = vsel %vm1430_vm7, 1.0, %v5784_v39 }
 0x20b   :  { %5747 = vrcp.f32 %v1398_v42  ;;  %v1401_v21 = vmax.f32 %v8428_v6, 1.0  ;;  %v4431_v43 = vsel %vm1432_vm0, 1.0, %v5784_v39  ;;  %vm1910_vm0 = vcmp.eq.s32.totalorder %v6521_v7, %v8176_v29 }
 0x20c   :  { %5749 = vrcp.f32 %v1400_v55 }
 0x20d   :  { %5751 = vrcp.f32 %v1399_v17 }
 0x20e   :  { %5753 = vrcp.f32 %v1401_v21  ;;  %5468 = vmatpush1.bf16.xpose.msk.msra.mxu0 %vm5467_vm10, %v9146_v61  ;;  %vm8461_vm10 = vmpackc.low %vm1898_vm5, %vm1894_vm9  ;;  %vm1902_vm9 = vcmp.eq.s32.totalorder %v6388_v2, %v8176_v29  ;;  %vm1906_vm5 = vcmp.eq.s32.totalorder %v9334_v45, %v8176_v29 }
 0x20f   :  { %5596 = vmatpush1.bf16.xpose.msk.msra.mxu1 %vm5595_vm11, %v9146_v61  ;;  %5470 = vmatprep.subr.msk.bf16.mxu0 %vm5469_vm15, %v9146_v61  ;;  %vm1459_vm11 = vcmask 1046528   ;;  %vm8469_vm15 = vmpackc.low %vm1907_vm6, %vm1903_vm2  ;;  %vm1431_vm2 = vcmp.gt.f32.partialorder %v8420_v14, 0.0  ;;  %vm1911_vm6 = vcmp.eq.s32.totalorder %v6521_v7, %v8125_v38 }
 0x210   :  { %5598 = vmatprep.subr.msk.bf16.mxu1 %vm5597_vm13, %v9146_v61  ;;  %vm1774_vm13 = vcmp.eq.s32.totalorder %v9331_v59, %v8176_v29  ;;  %v4430_v36 = vsel %vm1431_vm2, 1.0, %v5784_v39  ;;  %vm1795_vm2 = vcmp.eq.s32.totalorder %v6649_v62, %v8125_v38 }
 0x215   :  { %v5748_v30 = vpop.eup %5747 }
 0x216   :  { %v5750_v32 = vpop.eup %5749  ;;  %v1413_v33 = vrot.slane %v5748_v30, %v8455_v22  ;;  %5472 = vmatpush1.bf16.xpose.msk.msra.mxu0 %vm5471_vm4, %v9146_v61  ;;  %vm1787_vm4 = vcmp.eq.s32.totalorder %v6446_v19, %v8125_v38 }
 0x217   :  { %v5752_v53 = vpop.eup %5751  ;;  %v1421_v60 = vrot.slane %v5750_v32, %v8455_v22  ;;  %5600 = vmatpush1.bf16.xpose.msk.msra.mxu1 %vm8461_vm10, %v9146_v61  ;;  %5474 = vmatprep.subr.msk.bf16.mxu0 %vm8465_vm8, %v9146_v61  ;;  %vm1433_vm10 = vcmp.gt.f32.partialorder %v8428_v6, 0.0  ;;  %vm8521_vm8 = vmpackc.low %vm1778_vm12, %vm1774_vm13 }
 0x218   :  { %v5754_v54 = vpop.eup %5753  ;;  %v1426_v47 = vmul.f32 %v1413_v33, %v8410_v26  ;;  %v1417_v11 = vrot.slane %v5752_v53, %v8455_v22  ;;  %5602 = vmatprep.subr.msk.bf16.mxu1 %vm8469_vm15, %v9146_v61  ;;  %vm1915_vm15 = vcmp.eq.s32.totalorder %v6524_v13, %v8125_v38  ;;  %vm5603_vm13 = vmpackc.low %vm1906_vm5, %vm1902_vm9  ;;  %v4432_v4 = vsel %vm1433_vm10, 1.0, %v5784_v39  ;;  %v4969_v26 = vld [vmem:[%s8917_s2 + $0x30] sm:$0xff] }
 0x219   :  { %v1428_v27 = vmul.f32 %v1421_v60, %v8418_v50  ;;  %v1425_v37 = vrot.slane %v5754_v54, %v8455_v22  ;;  %vm5477_vm12 = vmpackc.low %vm1787_vm4, %vm1783_vm1  ;;  %vm1782_vm9 = vcmp.eq.s32.totalorder %v6429_v58, %v8176_v29  ;;  %vm1786_vm5 = vcmp.eq.s32.totalorder %v6446_v19, %v8176_v29  ;;  %2822 = vperm.xlu0 %5745, %v4969_v26  }
 0x21a   :  { %v1455_v16 = vsel %vm1454_vm14, %v1426_v47, %v4429_v46  ;;  %v1427_v49 = vmul.f32 %v1417_v11, %v8420_v14  ;;  %vm5605_vm7 = vmpackc.low %vm1915_vm15, %vm1911_vm6  ;;  %vm1914_vm1 = vcmp.eq.s32.totalorder %v6524_v13, %v8176_v29  ;;  %vm1791_vm4 = vcmp.eq.s32.totalorder %v6646_v28, %v8125_v38 }
 0x21b   :  { %v1460_v1 = vsel %vm1459_vm11, %v1455_v16, %v7957_v9  ;;  %v1457_v23 = vsel %vm1454_vm14, %v1428_v27, %v4431_v43  ;;  %v1429_v0 = vmul.f32 %v1425_v37, %v8428_v6  ;;  %vm5479_vm6 = vmpackc.low %vm1786_vm5, %vm1782_vm9  ;;  %vm1919_vm10 = vcmp.eq.s32.totalorder %v6674_v63, %v8125_v38 }
 0x21c   :  { %1464 = vst [vmem:[%s8921_s6] sm:$0xff] %v1460_v1  ;;  %v1462_v59 = vsel %vm1459_vm11, %v1457_v23, %v7993_v34  ;;  %v1456_v51 = vsel %vm1454_vm14, %v1427_v49, %v4430_v36  ;;  %vm5607_vm15 = vmpackc.low %vm1914_vm1, %vm1910_vm0  ;;  %vm1794_vm9 = vcmp.eq.s32.totalorder %v6649_v62, %v8176_v29  ;;  %vm1918_vm5 = vcmp.eq.s32.totalorder %v6674_v63, %v8176_v29  ;;  %v5766_v62 = vld [vmem:[%s8915_s0 + $0x30] sm:$0xff]  ;;  %v8640_v63 = vld [vmem:[%s8918_s3 + $0x8] sm:$0xff] }
 0x21d   :  { %1466 = vst [vmem:[%s8921_s6 + $0x10] sm:$0xff] %v1462_v59  ;;  %v1458_v2 = vsel %vm1454_vm14, %v1429_v0, %v4432_v4  ;;  %v1461_v45 = vsel %vm1459_vm11, %v1456_v51, %v8116_v40  ;;  %vm1922_vm0 = vcmp.eq.s32.totalorder %v6677_v5, %v8176_v29  ;;  %v5616_v13 = vpack.c.bf16 %v7957_v9, %v1460_v1 }
 0x21e   :  { %5476 = vmatpush1.bf16.xpose.msk.msra.mxu0 %vm8521_vm8, %v9146_v61  ;;  %1465 = vst [vmem:[%s8921_s6 + $0x8] sm:$0xff] %v1461_v45  ;;  %v1463_v57 = vsel %vm1459_vm11, %v1458_v2, %v8135_v35  ;;  %vm1923_vm8 = vcmp.eq.s32.totalorder %v6677_v5, %v8125_v38  ;;  %v5613_v58 = vpack.c.bf16 %v8116_v40, %v1461_v45  ;;  %v8651_v5 = vld [vmem:[%s8918_s3 + $0x10] sm:$0xff]  ;;  %v8662_v38 = vld [vmem:[%s8918_s3 + $0x18] sm:$0xff] }
 0x21f   :  { %5604 = vmatpush1.bf16.xpose.msk.msra.mxu1 %vm5603_vm13, %v9146_v61  ;;  %5478 = vmatprep.subr.msk.bf16.mxu0 %vm5477_vm12, %v9146_v61  ;;  %1467 = vst [vmem:[%s8921_s6 + $0x18] sm:$0xff] %v1463_v57  ;;  %vm5481_vm13 = vmpackc.low %vm1795_vm2, %vm1791_vm4  ;;  %vm5785_vm2 = vmmov 1   ;;  %v5619_v7 = vpack.c.bf16 %v8135_v35, %v1463_v57 }
 0x220   :  { %5606 = vmatprep.subr.msk.bf16.mxu1 %vm5605_vm7, %v9146_v61  ;;  %vm5609_vm12 = vmpackc.low %vm1923_vm8, %vm1919_vm10  ;;  %vm1790_vm7 = vcmp.eq.s32.totalorder %v6646_v28, %v8176_v29  ;;  %v5622_v28 = vpack.c.bf16 %v7993_v34, %v1462_v59  ;;  %v4967_v29 = vld [vmem:[%s8917_s2 + $0x20] sm:$0xff] }
 0x221   :  { %vm5483_vm1 = vmpackc.low %vm1794_vm9, %vm1790_vm7  ;;  %2812 = vperm.xlu1 %5746, %v4967_v29  }
 0x222   :  { %vm5611_vm4 = vmpackc.low %vm1922_vm0, %vm1918_vm5 }
 0x225   :  { %2817 = vperm.xlu1 %5746, %v4968_v15  }
 0x226   :  { %5480 = vmatpush1.bf16.xpose.msk.msra.mxu0 %vm5479_vm6, %v9146_v61  ;;  %vm8603_vm6 = vmpackc.low %vm143_vm3, %vm5785_vm2  ;;  %vm2834_vm3 = vcmask 80896  }
 0x227   :  { %5608 = vmatpush1.bf16.xpose.msk.msra.mxu1 %vm5607_vm15, %v9146_v61  ;;  %5482 = vmatprep.subr.msk.bf16.mxu0 %vm5481_vm13, %v9146_v61 }
 0x228   :  { %5610 = vmatprep.subr.msk.bf16.mxu1 %vm5609_vm12, %v9146_v61  ;;  %vm3707_vm12 = vcmask 7168  }
 0x229   :  { %2802 = vperm.xlu1 %5746, %v2784_v12  }
 0x22d   :  { %2827 = vperm.xlu1 %5746, %v4970_v52  }
 0x22e   :  { %5484 = vmatpush1.bf16.xpose.msk.msra.mxu0 %vm5483_vm1, %v9146_v61 }
 0x22f   :  { %5612 = vmatpush1.bf16.xpose.msk.msra.mxu1 %vm5611_vm4, %v9146_v61  ;;  %5615 = vmatprep.subr.msk.bf16.mxu0 %vm8603_vm6, %v5613_v58  ;;  %v8629_v61 = vld [vmem:[%s8918_s3] sm:$0xff] }
 0x230   :  { %5621 = vmatprep.subr.msk.bf16.mxu1 %vm8603_vm6, %v5619_v7 }
 0x235   :  { %2572 = vmatmul.mubr.f32.vlgmr.msra.gmra.mrb[2].mxu0 %v5766_v62 }
 0x236   :  { %2714 = vmatmul.mubr.f32.vlgmr.msra.gmra.mrb[2].mxu1 %v5766_v62  ;;  %5618 = vmatpush1.bf16.msk.msra.mxu0 %vm8603_vm6, %v5616_v13 }
 0x237   :  { %5624 = vmatpush1.bf16.msk.msra.mxu1 %vm8603_vm6, %v5622_v28  ;;  %2919 = vmatprep.mubr.f32.mxu0 %v5784_v39 }
 0x238   :  { %3008 = vmatprep.mubr.f32.mxu1 %v5784_v39 }
 0x239   :  { %4973 = vmatmul.mubr.msk.f32.vlgmr.msra.gmra.mrb[4].mxu0 %vm2834_vm3, %v8629_v61 }
 0x23a   :  { %4979 = vmatmul.mubr.msk.f32.vlgmr.msra.gmra.mrb[4].mxu1 %vm2834_vm3, %v8629_v61  ;;  %2925 = vmatprep.mubr.f32.mxu0 %v5784_v39 }
 0x23b   :  { %3014 = vmatprep.mubr.f32.mxu1 %v5784_v39 }
 0x23d   :  { %4974 = vmatmul.mubr.msk.f32.gmra.mrb[6].mxu0 %vm2834_vm3, %v8640_v63 }
 0x23e   :  { %4980 = vmatmul.mubr.msk.f32.gmra.mrb[6].mxu1 %vm2834_vm3, %v8640_v63  ;;  %2931 = vmatprep.mubr.f32.mxu0 %v5784_v39 }
 0x23f   :  { %3020 = vmatprep.mubr.f32.mxu1 %v5784_v39 }
 0x241   :  { %4975 = vmatmul.mubr.msk.f32.gmra.mrb[8].mxu0 %vm2834_vm3, %v8651_v5 }
 0x242   :  { %4981 = vmatmul.mubr.msk.f32.gmra.mrb[8].mxu1 %vm2834_vm3, %v8651_v5  ;;  %2937 = vmatprep.mubr.f32.mxu0 %v5784_v39 }
 0x243   :  { %3026 = vmatprep.mubr.f32.mxu1 %v5784_v39 }
 0x245   :  { %4976 = vmatmul.mubr.msk.f32.gmra.mrb[10].mxu0 %vm2834_vm3, %v8662_v38 }
 0x246   :  { %4982 = vmatmul.mubr.msk.f32.gmra.mrb[10].mxu1 %vm2834_vm3, %v8662_v38  ;;  %3097 = vmatprep.mubr.f32.mxu0 %v5784_v39 }
 0x247   :  { %3186 = vmatprep.mubr.f32.mxu1 %v5784_v39 }
 0x308   :  { %v2573_v42 = vpop.f32.mrb[2].mxu0 }
 0x309   :  { %v2720_v50 = vmax.f32 %v2573_v42, 1.0  ;;  %v2715_v14 = vpop.f32.mrb[2].mxu1  ;;  %v2575_v56 = vpop.f32.mrb[3].mxu0  ;;  %vm2752_vm10 = vcmp.gt.f32.partialorder %v2573_v42, 0.0 }
 0x30a   :  { %v2722_v48 = vmax.f32 %v2715_v14, 1.0  ;;  %v2721_v55 = vmax.f32 %v2575_v56, 1.0  ;;  %v2717_v17 = vpop.f32.mrb[3].mxu1  ;;  %vm2754_vm8 = vcmp.gt.f32.partialorder %v2715_v14, 0.0  ;;  %vm2753_vm15 = vcmp.gt.f32.partialorder %v2575_v56, 0.0 }
 0x30b   :  { %5755 = vrcp.f32 %v2720_v50  ;;  %v2723_v6 = vmax.f32 %v2717_v17, 1.0  ;;  %v4955_v33 = vsel %vm2752_vm10, 1.0, %v5784_v39  ;;  %vm2755_vm13 = vcmp.gt.f32.partialorder %v2717_v17, 0.0 }
 0x30c   :  { %5757 = vrcp.f32 %v2722_v48  ;;  %v4957_v47 = vsel %vm2754_vm8, 1.0, %v5784_v39  ;;  %v4956_v37 = vsel %vm2753_vm15, 1.0, %v5784_v39  ;;  %v4958_v49 = vsel %vm2755_vm13, 1.0, %v5784_v39 }
 0x30d   :  { %5759 = vrcp.f32 %v2721_v55 }
 0x30e   :  { %5761 = vrcp.f32 %v2723_v6 }
 0x315   :  { %v5756_v8 = vpop.eup %5755 }
 0x316   :  { %v5758_v10 = vpop.eup %5757  ;;  %v2735_v21 = vrot.slane %v5756_v8, %v8455_v22 }
 0x317   :  { %v5760_v24 = vpop.eup %5759  ;;  %v2743_v25 = vrot.slane %v5758_v10, %v8455_v22 }
 0x318   :  { %v5762_v30 = vpop.eup %5761  ;;  %v2748_v31 = vmul.f32 %v2735_v21, %v2573_v42  ;;  %v2739_v32 = vrot.slane %v5760_v24, %v8455_v22 }
 0x319   :  { %v2750_v53 = vmul.f32 %v2743_v25, %v2715_v14  ;;  %v2747_v60 = vrot.slane %v5762_v30, %v8455_v22 }
 0x31a   :  { %v2764_v54 = vsel %vm1454_vm14, %v2748_v31, %v4955_v33  ;;  %v2749_v11 = vmul.f32 %v2739_v32, %v2575_v56 }
 0x31b   :  { %v2768_v46 = vsel %vm1459_vm11, %v2764_v54, %v7957_v9  ;;  %v2766_v27 = vsel %vm1454_vm14, %v2750_v53, %v4957_v47  ;;  %v2751_v16 = vmul.f32 %v2747_v60, %v2717_v17 }
 0x31c   :  { %4959 = vst [vmem:[%s8921_s6 + $0x40] sm:$0xff] %v2768_v46  ;;  %v2770_v22 = vsel %vm1459_vm11, %v2766_v27, %v7993_v34  ;;  %v2765_v43 = vsel %vm1454_vm14, %v2749_v11, %v4956_v37  ;;  %v5628_v0 = vpack.c.bf16 %v7957_v9, %v2768_v46  ;;  %v2788_v9 = vpop.permute.xlu0 %2787 }
 0x31d   :  { %4961 = vst [vmem:[%s8921_s6 + $0x50] sm:$0xff] %v2770_v22  ;;  %v2767_v44 = vsel %vm1454_vm14, %v2751_v16, %v4958_v49  ;;  %v2769_v1 = vsel %vm1459_vm11, %v2765_v43, %v8116_v40  ;;  %v5634_v51 = vpack.c.bf16 %v7993_v34, %v2770_v22  ;;  %v8762_v34 = vpop.permute.xlu1 %2812  ;;  %vm3244_vm14 = vcmask 261120  }
 0x31e   :  { %4960 = vst [vmem:[%s8921_s6 + $0x48] sm:$0xff] %v2769_v1  ;;  %v5625_v23 = vpack.c.bf16 %v8116_v40, %v2769_v1  ;;  %v2771_v36 = vsel %vm1459_vm11, %v2767_v44, %v8135_v35  ;;  %v2921_v40 = vpop.f32.mrb[4].mxu0  ;;  %vm5787_vm11 = vmmov 0  }
 0x31f   :  { %4962 = vst [vmem:[%s8921_s6 + $0x58] sm:$0xff] %v2771_v36  ;;  %v5631_v59 = vpack.c.bf16 %v8135_v35, %v2771_v36  ;;  %v3010_v35 = vpop.f32.mrb[4].mxu1  ;;  %v2923_v4 = vpop.f32.mrb[5].mxu0  ;;  %v2922_v2 = vadd.f32 %v2921_v40, %v2788_v9 }
 0x320   :  { %5627 = vmatprep.subr.msk.bf16.mxu0 %vm8603_vm6, %v5625_v23  ;;  %v3011_v45 = vadd.f32 %v3010_v35, %v2788_v9  ;;  %v3012_v57 = vpop.f32.mrb[5].mxu1  ;;  %v2924_v19 = vadd.f32 %v2923_v4, %v2788_v9  ;;  %v2793_v7 = vpop.permute.xlu0 %2792 }
 0x321   :  { %5633 = vmatprep.subr.msk.bf16.mxu1 %vm8603_vm6, %v5631_v59  ;;  %5630 = vmatpush1.bf16.msk.msra.mxu0 %vm8603_vm6, %v5628_v0  ;;  %v3013_v58 = vadd.f32 %v3012_v57, %v2788_v9  ;;  %v3211_v13 = vmax.f32 %v2922_v2, 0.0  ;;  %v8764_v28 = vpop.permute.xlu1 %2817 }
 0x322   :  { %5636 = vmatpush1.bf16.msk.msra.mxu1 %vm8603_vm6, %v5634_v51  ;;  %v3212_v62 = vmax.f32 %v2924_v19, 0.0 }
 0x323   :  { %v3214_v29 = vmax.f32 %v3013_v58, 0.0 }
 0x324   :  { %4985 = vmatmul.mubr.msk.f32.vlgmr.msra.gmra.mrb[12].mxu0 %vm2834_vm3, %v8629_v61  ;;  %v3555_v20 = vadd.f32 %v3212_v62, %v3211_v13  ;;  %v2798_v53 = vpop.permute.xlu0 %2797 }
 0x325   :  { %4991 = vmatmul.mubr.msk.f32.vlgmr.msra.gmra.mrb[12].mxu1 %vm2834_vm3, %v8629_v61  ;;  %3103 = vmatprep.mubr.f32.mxu0 %v5784_v39  ;;  %v2927_v61 = vpop.f32.mrb[6].mxu0  ;;  %v2803_v8 = vpop.permute.xlu1 %2802 }
 0x326   :  { %3192 = vmatprep.mubr.f32.mxu1 %v5784_v39  ;;  %v2928_v41 = vadd.f32 %v2927_v61, %v2793_v7  ;;  %v8769_v61 = vld [vmem:[%s8919_s4] sm:$0x3] }
 0x328   :  { %4986 = vmatmul.mubr.msk.f32.gmra.mrb[14].mxu0 %vm2834_vm3, %v8640_v63  ;;  %v3219_v50 = vmax.f32 %v2928_v41, 0.0 }
 0x329   :  { %4992 = vmatmul.mubr.msk.f32.gmra.mrb[14].mxu1 %vm2834_vm3, %v8640_v63  ;;  %3109 = vmatprep.mubr.f32.mxu0 %v5784_v39  ;;  %v3213_v63 = vmax.f32 %v3011_v45, 0.0 }
 0x32a   :  { %3198 = vmatprep.mubr.f32.mxu1 %v5784_v39  ;;  %v5639_v60 = vpack.c.bf16 %v3219_v50, %v3211_v13 }
 0x32b   :  { %v3556_v26 = vadd.f32 %v3555_v20, %v3213_v63 }
 0x32c   :  { %4987 = vmatmul.mubr.msk.f32.gmra.mrb[16].mxu0 %vm2834_vm3, %v8651_v5 }
 0x32d   :  { %4993 = vmatmul.mubr.msk.f32.gmra.mrb[16].mxu1 %vm2834_vm3, %v8651_v5  ;;  %3115 = vmatprep.mubr.f32.mxu0 %v5784_v39  ;;  %v3016_v5 = vpop.f32.mrb[6].mxu1  ;;  %v3557_v44 = vadd.f32 %v3556_v26, %v3214_v29 }
 0x32e   :  { %3204 = vmatprep.mubr.f32.mxu1 %v5784_v39  ;;  %v3018_v15 = vpop.f32.mrb[7].mxu1  ;;  %v3017_v18 = vadd.f32 %v3016_v5, %v2793_v7 }
 0x32f   :  { %v3019_v52 = vadd.f32 %v3018_v15, %v2793_v7  ;;  %v3022_v56 = vpop.f32.mrb[8].mxu1  ;;  %3558 = vadd.xlane.f32.xlu0 %v3557_v44 }
 0x330   :  { %4988 = vmatmul.mubr.msk.f32.gmra.mrb[18].mxu0 %vm2834_vm3, %v8662_v38  ;;  %v3024_v55 = vpop.f32.mrb[9].mxu1  ;;  %v3221_v17 = vmax.f32 %v3017_v18, 0.0  ;;  %v3023_v22 = vadd.f32 %v3022_v56, %v2798_v53 }
 0x331   :  { %4994 = vmatmul.mubr.msk.f32.gmra.mrb[18].mxu1 %vm2834_vm3, %v8662_v38  ;;  %3312 = vmatprep.mubr.f32.mxu0 %v5784_v39  ;;  %v2929_v38 = vpop.f32.mrb[7].mxu0  ;;  %v3222_v14 = vmax.f32 %v3019_v52, 0.0  ;;  %v3028_v24 = vpop.f32.mrb[10].mxu1  ;;  %v3025_v1 = vadd.f32 %v3024_v55, %v2798_v53 }
 0x332   :  { %3383 = vmatprep.mubr.f32.mxu1 %v5784_v39  ;;  %v2930_v12 = vadd.f32 %v2929_v38, %v2793_v7  ;;  %v2933_v42 = vpop.f32.mrb[8].mxu0  ;;  %v3029_v33 = vadd.f32 %v3028_v24, %v2803_v8  ;;  %v3030_v49 = vpop.f32.mrb[11].mxu1  ;;  %v5647_v36 = vpack.c.bf16 %v3221_v17, %v3213_v63  ;;  %v3229_v51 = vmax.f32 %v3023_v22, 0.0 }
 0x333   :  { %v2935_v48 = vpop.f32.mrb[9].mxu0  ;;  %v5645_v6 = vpack.c.bf16 %v3222_v14, %v3214_v29  ;;  %v2934_v47 = vadd.f32 %v2933_v42, %v2798_v53  ;;  %v3031_v23 = vadd.f32 %v3030_v49, %v2803_v8  ;;  %v3230_v40 = vmax.f32 %v3025_v1, 0.0 }
 0x334   :  { %v3220_v10 = vmax.f32 %v2930_v12, 0.0  ;;  %v2939_v21 = vpop.f32.mrb[10].mxu0  ;;  %v2936_v11 = vadd.f32 %v2935_v48, %v2798_v53  ;;  %v3237_v37 = vmax.f32 %v3029_v33, 0.0 }
 0x335   :  { %5646 = vmatprep.subr.bf16.mxu1 %v5645_v6  ;;  %v2940_v31 = vadd.f32 %v2939_v21, %v2803_v8  ;;  %v2941_v32 = vpop.f32.mrb[11].mxu0  ;;  %v3227_v43 = vmax.f32 %v2934_v47, 0.0  ;;  %v3238_v35 = vmax.f32 %v3031_v23, 0.0 }
 0x336   :  { %v5637_v25 = vpack.c.bf16 %v3220_v10, %v3212_v62  ;;  %v3560_v30 = vadd.f32 %v3220_v10, %v3219_v50  ;;  %v2942_v54 = vadd.f32 %v2941_v32, %v2803_v8  ;;  %v3228_v9 = vmax.f32 %v2936_v11, 0.0  ;;  %5648 = vmatpush1.bf16.msra.mxu1 %v5647_v36 }
 0x337   :  { %v3235_v27 = vmax.f32 %v2940_v31, 0.0  ;;  %v5649_v57 = vpack.c.bf16 %v3238_v35, %v3230_v40  ;;  %v5651_v13 = vpack.c.bf16 %v3237_v37, %v3229_v51  ;;  %v2823_v31 = vpop.permute.xlu0 %2822 }
 0x338   :  { %5638 = vmatprep.subr.bf16.mxu0 %v5637_v25  ;;  %v3561_v46 = vadd.f32 %v3560_v30, %v3221_v17  ;;  %v3236_v16 = vmax.f32 %v2942_v54, 0.0  ;;  %v3565_v45 = vadd.f32 %v3228_v9, %v3227_v43 }
 0x339   :  { %5640 = vmatpush1.bf16.msra.mxu0 %v5639_v60  ;;  %v5643_v58 = vpack.c.bf16 %v3235_v27, %v3227_v43  ;;  %5650 = vmatprep.subr.bf16.mxu1 %v5649_v57 }
 0x33a   :  { %v3562_v0 = vadd.f32 %v3561_v46, %v3222_v14  ;;  %v3570_v59 = vadd.f32 %v3236_v16, %v3235_v27  ;;  %v5641_v2 = vpack.c.bf16 %v3236_v16, %v3228_v9  ;;  %v3566_v7 = vadd.f32 %v3565_v45, %v3229_v51  ;;  %5652 = vmatpush1.bf16.msra.mxu1 %v5651_v13  ;;  %v2828_v27 = vpop.permute.xlu1 %2827 }
 0x33c   :  { %3563 = vadd.xlane.f32.xlu1 %v3562_v0  ;;  %v3571_v4 = vadd.f32 %v3570_v59, %v3237_v37  ;;  %5642 = vmatprep.subr.bf16.mxu0 %v5641_v2  ;;  %v3567_v62 = vadd.f32 %v3566_v7, %v3230_v40 }
 0x33d   :  { %5644 = vmatpush1.bf16.msra.mxu0 %v5643_v58  ;;  %4996 = vmatmul.mubr.msk.f32.vlgmr.msra.gmra.mrb[20].mxu1 %vm3244_vm14, %v8769_v61 }
 0x33e   :  { %v3572_v19 = vadd.f32 %v3571_v4, %v3238_v35  ;;  %3525 = vmatprep.mubr.f32.mxu1 %v5784_v39 }
 0x340   :  { %3573 = vadd.xlane.f32.xlu0 %v3572_v19  ;;  %3568 = vadd.xlane.f32.xlu1 %v3567_v62 }
 0x341   :  { %4995 = vmatmul.mubr.msk.f32.vlgmr.msra.gmra.mrb[20].mxu0 %vm3244_vm14, %v8769_v61 }
 0x342   :  { %3454 = vmatprep.mubr.f32.mxu0 %v5784_v39 }
 0x3bc   :  { %v3559_v0 = vpop.xlane.xlu0 %3558 }
 0x3c9   :  { %v3564_v57 = vpop.xlane.xlu1 %3563 }
 0x3f7   :  { %v3099_v63 = vpop.f32.mrb[12].mxu0 }
 0x3f8   :  { %v3100_v5 = vadd.f32 %v3099_v63, %v8762_v34  ;;  %v3101_v38 = vpop.f32.mrb[13].mxu0  ;;  %v3188_v29 = vpop.f32.mrb[12].mxu1 }
 0x3f9   :  { %v3102_v41 = vadd.f32 %v3101_v38, %v8762_v34  ;;  %v3189_v15 = vadd.f32 %v3188_v29, %v8762_v34  ;;  %v3190_v20 = vpop.f32.mrb[13].mxu1 }
 0x3fa   :  { %v3215_v12 = vmax.f32 %v3100_v5, 0.0  ;;  %v3191_v26 = vadd.f32 %v3190_v20, %v8762_v34 }
 0x3fb   :  { %v3216_v18 = vmax.f32 %v3102_v41, 0.0  ;;  %v3105_v52 = vpop.f32.mrb[14].mxu0  ;;  %v3217_v48 = vmax.f32 %v3189_v15, 0.0  ;;  %v3575_v41 = vmul.f32 0.001953125, %v3559_v0  ;;  %v3576_v15 = vmul.f32 0.001953125, %v3564_v57 }
 0x3fc   :  { %v3106_v42 = vadd.f32 %v3105_v52, %v8764_v28  ;;  %v3194_v50 = vpop.f32.mrb[14].mxu1  ;;  %v3107_v14 = vpop.f32.mrb[15].mxu0  ;;  %v3218_v34 = vmax.f32 %v3191_v26, 0.0 }
 0x3fd   :  { %v3739_v56 = vadd.f32 %v3216_v18, %v3215_v12  ;;  %v3195_v55 = vadd.f32 %v3194_v50, %v8764_v28  ;;  %v3108_v17 = vadd.f32 %v3107_v14, %v8764_v28  ;;  %v3196_v6 = vpop.f32.mrb[15].mxu1  ;;  %v3574_v26 = vpop.xlane.xlu0 %3573 }
 0x3fe   :  { %v3223_v8 = vmax.f32 %v3106_v42, 0.0  ;;  %v3197_v10 = vadd.f32 %v3196_v6, %v8764_v28  ;;  %v3569_v42 = vpop.xlane.xlu1 %3568  ;;  %v5786_v6 = vmov 0.0|0.0  }
 0x3ff   :  { %v3740_v21 = vadd.f32 %v3739_v56, %v3217_v48  ;;  %v3225_v24 = vmax.f32 %v3195_v55, 0.0  ;;  %v3224_v25 = vmax.f32 %v3108_v17, 0.0  ;;  %v3111_v30 = vpop.f32.mrb[16].mxu0  ;;  %v5670_v56 = vpack.c.bf16 %v3576_v15, %v3575_v41 }
 0x400   :  { %v5655_v32 = vpack.c.bf16 %v3223_v8, %v3215_v12  ;;  %v3226_v33 = vmax.f32 %v3197_v10, 0.0  ;;  %v3112_v53 = vadd.f32 %v3111_v30, %v2823_v31  ;;  %v3113_v60 = vpop.f32.mrb[17].mxu0  ;;  %v3200_v54 = vpop.f32.mrb[16].mxu1  ;;  %v3577_v55 = vmul.f32 0.001953125, %v3569_v42  ;;  %v3579_v10 = vld [vmem:[%s8920_s5] sm:$0xff]  ;;  %v3584_v30 = vld [vmem:[%s8920_s5 + $0x28] sm:$0xff] }
 0x401   :  { %v5663_v47 = vpack.c.bf16 %v3225_v24, %v3217_v48  ;;  %v5653_v11 = vpack.c.bf16 %v3224_v25, %v3216_v18  ;;  %v3744_v46 = vadd.f32 %v3224_v25, %v3223_v8  ;;  %v3114_v37 = vadd.f32 %v3113_v60, %v2823_v31  ;;  %v3202_v16 = vpop.f32.mrb[17].mxu1  ;;  %v3583_v25 = vld [vmem:[%s8920_s5 + $0x20] sm:$0xff] }
 0x402   :  { %v5661_v22 = vpack.c.bf16 %v3226_v33, %v3218_v34  ;;  %v3231_v43 = vmax.f32 %v3112_v53, 0.0  ;;  %v3201_v28 = vadd.f32 %v3200_v54, %v2823_v31  ;;  %v3203_v44 = vadd.f32 %v3202_v16, %v2823_v31  ;;  %v3585_v31 = vld [vmem:[%s8920_s5 + $0x30] sm:$0xff] }
 0x403   :  { %v3232_v49 = vmax.f32 %v3114_v37, 0.0  ;;  %v3117_v1 = vpop.f32.mrb[18].mxu0  ;;  %v3741_v23 = vadd.f32 %v3740_v21, %v3218_v34  ;;  %5654 = vmatprep.subr.bf16.mxu0 %v5653_v11  ;;  %v3745_v36 = vadd.f32 %v3744_v46, %v3225_v24  ;;  %v3578_v48 = vmul.f32 0.001953125, %v3574_v26  ;;  %v3581_v21 = vld [vmem:[%s8920_s5 + $0x10] sm:$0xff]  ;;  %v3582_v24 = vld [vmem:[%s8920_s5 + $0x18] sm:$0xff] }
 0x404   :  { %v3118_v59 = vadd.f32 %v3117_v1, %v2828_v27  ;;  %v3206_v51 = vpop.f32.mrb[18].mxu1  ;;  %5662 = vmatprep.subr.bf16.mxu1 %v5661_v22  ;;  %v3119_v9 = vpop.f32.mrb[19].mxu0  ;;  %5656 = vmatpush1.bf16.msra.mxu0 %v5655_v32  ;;  %v3233_v35 = vmax.f32 %v3201_v28, 0.0  ;;  %v3234_v62 = vmax.f32 %v3203_v44, 0.0  ;;  %v5788_v34 = vmov 1983009808  }
 0x405   :  { %v3749_v40 = vadd.f32 %v3232_v49, %v3231_v43  ;;  %v3207_v4 = vadd.f32 %v3206_v51, %v2828_v27  ;;  %3742 = vadd.xlane.f32.xlu0 %v3741_v23  ;;  %v3120_v2 = vadd.f32 %v3119_v9, %v2828_v27  ;;  %v3208_v45 = vpop.f32.mrb[19].mxu1  ;;  %5664 = vmatpush1.bf16.msra.mxu1 %v5663_v47  ;;  %v3539_v32 = vunpack.c.l.s4 %v5788_v34 }
 0x406   :  { %v3239_v19 = vmax.f32 %v3118_v59, 0.0  ;;  %v3209_v58 = vadd.f32 %v3208_v45, %v2828_v27  ;;  %v3746_v7 = vadd.f32 %v3745_v36, %v3226_v33  ;;  %v5673_v8 = vpack.c.bf16 %v3578_v48, %v3577_v55 }
 0x407   :  { %v3750_v13 = vadd.f32 %v3749_v40, %v3233_v35  ;;  %v3241_v63 = vmax.f32 %v3207_v4, 0.0  ;;  %v3240_v5 = vmax.f32 %v3120_v2, 0.0  ;;  %v3540_v33 = vunpack.c.0.s8 %v3539_v32 }
 0x408   :  { %v5659_v38 = vpack.c.bf16 %v3239_v19, %v3231_v43  ;;  %v3242_v29 = vmax.f32 %v3209_v58, 0.0 }
 0x409   :  { %v5667_v20 = vpack.c.bf16 %v3241_v63, %v3233_v35  ;;  %v5657_v12 = vpack.c.bf16 %v3240_v5, %v3232_v49  ;;  %v3754_v18 = vadd.f32 %v3240_v5, %v3239_v19  ;;  %3747 = vadd.xlane.f32.xlu0 %v3746_v7  ;;  %v3751_v52 = vadd.f32 %v3750_v13, %v3234_v62 }
 0x40a   :  { %v5665_v50 = vpack.c.bf16 %v3242_v29, %v3234_v62  ;;  %v3543_v54 = vsub.s32 %v3540_v33, %v5843_v3 }
 0x40b   :  { %3752 = vadd.xlane.f32.xlu1 %v3751_v52  ;;  %5658 = vmatprep.subr.bf16.mxu0 %v5657_v12  ;;  %v3755_v14 = vadd.f32 %v3754_v18, %v3241_v63 }
 0x40c   :  { %5666 = vmatprep.subr.bf16.mxu1 %v5665_v50  ;;  %5660 = vmatpush1.bf16.msra.mxu0 %v5659_v38 }
 0x40d   :  { %5668 = vmatpush1.bf16.msra.mxu1 %v5667_v20  ;;  %v3756_v17 = vadd.f32 %v3755_v14, %v3242_v29  ;;  %5669 = vmatprep.subr.bf16.mxu0 %v5786_v6 }
 0x40e   :  { %5675 = vmatprep.subr.bf16.mxu1 %v5786_v6 }
 0x40f   :  { %3757 = vadd.xlane.f32.xlu0 %v3756_v17  ;;  %4997 = vmatmul.mubr.msk.f32.vlgmr.msra.gmra.mrb[22].mxu0 %vm3244_vm14, %v8769_v61 }
 0x410   :  { %5671 = vmatpush3.bf16.msra.mxu0 %v5670_v56  ;;  %4998 = vmatmul.mubr.msk.f32.vlgmr.msra.gmra.mrb[22].mxu1 %vm3244_vm14, %v8769_v61  ;;  %v3580_v61 = vld [vmem:[%s8920_s5 + $0x8] sm:$0xff]  ;;  %v3385_v60 = vpop.f32.mrb[20].mxu1 }
 0x411   :  { %5672 = vmatprep.subr.bf16.mxu0 %v5786_v6  ;;  %5051 = vmatprep.mubr.msk.f32.mxu0 %vm5787_vm11, %v5784_v39  ;;  %v3387_v11 = vpop.f32.mrb[21].mxu1 }
 0x412   :  { %5080 = vmatprep.mubr.msk.f32.mxu1 %vm5787_vm11, %v5784_v39  ;;  %v3537_v27 = vcombine.low %v3385_v60, %v3387_v11 }
 0x414   :  { %5674 = vmatpush3.bf16.msra.mxu0 %v5673_v8  ;;  %v3314_v53 = vpop.f32.mrb[20].mxu0  ;;  %v3551_v16 = vrot.slane %v3537_v27, %v3543_v54 }
 0x415   :  { %v3316_v47 = vpop.f32.mrb[21].mxu0 }
 0x416   :  { %v3536_v46 = vcombine.low %v3314_v53, %v3316_v47 }
 0x417   :  { %5052 = vmatmul.mubr.msk.f32.vlgmr.msra.gmra.mrb[24].mxu0 %vm3244_vm14, %v3579_v10 }
 0x418   :  { %5054 = vmatprep.mubr.msk.f32.mxu0 %vm5787_vm11, %v5784_v39  ;;  %v3544_v37 = vrot.slane %v3536_v46, %v3543_v54 }
 0x41a   :  { %v3552_v22 = vcombine.low %v3544_v37, %v3551_v16 }
 0x41b   :  { %5055 = vmatmul.mubr.msk.f32.gmra.mrb[26].mxu0 %vm3244_vm14, %v3580_v61 }
 0x41c   :  { %5057 = vmatprep.mubr.msk.f32.mxu0 %vm5787_vm11, %v5784_v39  ;;  %3554 = vst [vmem:[%s8922_s7] sm:$0xff] %v3552_v22 }
 0x41f   :  { %5058 = vmatmul.mubr.msk.f32.gmra.mrb[28].mxu0 %vm3244_vm14, %v3581_v21 }
 0x420   :  { %5060 = vmatprep.mubr.msk.f32.mxu0 %vm5787_vm11, %v5784_v39 }
 0x423   :  { %5061 = vmatmul.mubr.msk.f32.gmra.mrb[30].mxu0 %vm3244_vm14, %v3582_v24 }
 0x424   :  { %5063 = vmatprep.mubr.msk.f32.mxu0 %vm5787_vm11, %v5784_v39 }
 0x427   :  { %5064 = vmatmul.mubr.msk.f32.gmra.mrb[32].mxu0 %vm3244_vm14, %v3583_v25 }
 0x428   :  { %5066 = vmatprep.mubr.msk.f32.mxu0 %vm5787_vm11, %v5784_v39 }
 0x42b   :  { %5067 = vmatmul.mubr.msk.f32.gmra.mrb[34].mxu0 %vm3244_vm14, %v3584_v30 }
 0x42c   :  { %5069 = vmatprep.mubr.msk.f32.mxu0 %vm5787_vm11, %v5784_v39 }
 0x42f   :  { %5070 = vmatmul.mubr.msk.f32.gmra.mrb[36].mxu0 %vm3244_vm14, %v3585_v31 }
 0x492   :  { %v3743_v43 = vpop.xlane.xlu0 %3742 }
 0x493   :  { %v3759_v49 = vmul.f32 0.001953125, %v3743_v43 }
 0x496   :  { %v3748_v28 = vpop.xlane.xlu0 %3747 }
 0x497   :  { %v3760_v44 = vmul.f32 0.001953125, %v3748_v28 }
 0x498   :  { %v3753_v23 = vpop.xlane.xlu1 %3752 }
 0x499   :  { %v5676_v1 = vpack.c.bf16 %v3760_v44, %v3759_v49  ;;  %v3761_v3 = vmul.f32 0.001953125, %v3753_v23 }
 0x49b   :  { %5677 = vmatpush3.bf16.msra.mxu1 %v5676_v1 }
 0x49c   :  { %v3758_v36 = vpop.xlane.xlu0 %3757  ;;  %5678 = vmatprep.subr.bf16.mxu1 %v5786_v6 }
 0x49d   :  { %v3762_v0 = vmul.f32 0.001953125, %v3758_v36 }
 0x49f   :  { %v5679_v59 = vpack.c.bf16 %v3762_v0, %v3761_v3 }
 0x4a1   :  { %5680 = vmatpush3.bf16.msra.mxu1 %v5679_v59 }
 0x4a4   :  { %5081 = vmatmul.mubr.msk.f32.vlgmr.msra.gmra.mrb[24].mxu1 %vm3244_vm14, %v3579_v10 }
 0x4a5   :  { %5083 = vmatprep.mubr.msk.f32.mxu1 %vm5787_vm11, %v5784_v39 }
 0x4a8   :  { %5084 = vmatmul.mubr.msk.f32.gmra.mrb[26].mxu1 %vm3244_vm14, %v3580_v61 }
 0x4a9   :  { %5086 = vmatprep.mubr.msk.f32.mxu1 %vm5787_vm11, %v5784_v39 }
 0x4ac   :  { %5087 = vmatmul.mubr.msk.f32.gmra.mrb[28].mxu1 %vm3244_vm14, %v3581_v21 }
 0x4ad   :  { %5089 = vmatprep.mubr.msk.f32.mxu1 %vm5787_vm11, %v5784_v39 }
 0x4b0   :  { %5090 = vmatmul.mubr.msk.f32.gmra.mrb[30].mxu1 %vm3244_vm14, %v3582_v24 }
 0x4b1   :  { %5092 = vmatprep.mubr.msk.f32.mxu1 %vm5787_vm11, %v5784_v39 }
 0x4b4   :  { %5093 = vmatmul.mubr.msk.f32.gmra.mrb[32].mxu1 %vm3244_vm14, %v3583_v25 }
 0x4b5   :  { %5095 = vmatprep.mubr.msk.f32.mxu1 %vm5787_vm11, %v5784_v39 }
 0x4b8   :  { %5096 = vmatmul.mubr.msk.f32.gmra.mrb[34].mxu1 %vm3244_vm14, %v3584_v30 }
 0x4b9   :  { %5098 = vmatprep.mubr.msk.f32.mxu1 %vm5787_vm11, %v5784_v39 }
 0x4bc   :  { %5099 = vmatmul.mubr.msk.f32.gmra.mrb[36].mxu1 %vm3244_vm14, %v3585_v31 }
 0x4e2   :  { %v3456_v51 = vpop.f32.mrb[22].mxu0 }
 0x4e3   :  { %v3527_v9 = vpop.f32.mrb[22].mxu1  ;;  %v3458_v40 = vpop.f32.mrb[23].mxu0 }
 0x4e4   :  { %v3719_v35 = vcombine.low %v3456_v51, %v3458_v40  ;;  %v3529_v4 = vpop.f32.mrb[23].mxu1 }
 0x4e5   :  { %v3720_v2 = vcombine.low %v3527_v9, %v3529_v4 }
 0x4e6   :  { %v3727_v45 = vrot.slane %v3719_v35, %v3543_v54 }
 0x4e7   :  { %v3734_v57 = vrot.slane %v3720_v2, %v3543_v54 }
 0x4e9   :  { %v3735_v19 = vcombine.low %v3727_v45, %v3734_v57 }
 0x4ea   :  { %v3673_v58 = vpop.f32.mrb[24].mxu0 }
 0x4eb   :  { %5006 = vst [vmem:[%s8922_s7 + $0x8] sm:$0xff] %v3735_v19  ;;  %3708 = vst.msk [vmem:[%s8923_s8] sm:$0xff] %vm3707_vm12, %v3673_v58  ;;  %v5053_v39 = vpop.f32.mrb[25].mxu0 }
 0x4ee   :  { %v3678_v7 = vpop.f32.mrb[26].mxu0 }
 0x4ef   :  { %3709 = vst.msk [vmem:[%s8923_s8 + $0x8] sm:$0xff] %vm3707_vm12, %v3678_v7  ;;  %v5056_v13 = vpop.f32.mrb[27].mxu0 }
 0x4f2   :  { %v3683_v62 = vpop.f32.mrb[28].mxu0 }
 0x4f3   :  { %3710 = vst.msk [vmem:[%s8923_s8 + $0x10] sm:$0xff] %vm3707_vm12, %v3683_v62  ;;  %v5059_v63 = vpop.f32.mrb[29].mxu0 }
 0x4f6   :  { %v3688_v5 = vpop.f32.mrb[30].mxu0 }
 0x4f7   :  { %3711 = vst.msk [vmem:[%s8923_s8 + $0x18] sm:$0xff] %vm3707_vm12, %v3688_v5  ;;  %v5062_v38 = vpop.f32.mrb[31].mxu0 }
 0x4fa   :  { %v3693_v29 = vpop.f32.mrb[32].mxu0 }
 0x4fb   :  { %3712 = vst.msk [vmem:[%s8923_s8 + $0x20] sm:$0xff] %vm3707_vm12, %v3693_v29  ;;  %v5065_v41 = vpop.f32.mrb[33].mxu0 }
 0x4fe   :  { %v3698_v15 = vpop.f32.mrb[34].mxu0 }
 0x4ff   :  { %3713 = vst.msk [vmem:[%s8923_s8 + $0x28] sm:$0xff] %vm3707_vm12, %v3698_v15  ;;  %v5068_v20 = vpop.f32.mrb[35].mxu0 }
 0x502   :  { %v3703_v12 = vpop.f32.mrb[36].mxu0 }
 0x503   :  { %3714 = vst.msk [vmem:[%s8923_s8 + $0x30] sm:$0xff] %vm3707_vm12, %v3703_v12  ;;  %v5071_v18 = vpop.f32.mrb[37].mxu0 }
 0x577   :  { %v3857_v52 = vpop.f32.mrb[24].mxu1 }
 0x578   :  { %5014 = vst.msk [vmem:[%s8923_s8 + $0x38] sm:$0xff] %vm3707_vm12, %v3857_v52  ;;  %v5082_v26 = vpop.f32.mrb[25].mxu1 }
 0x57b   :  { %v3862_v42 = vpop.f32.mrb[26].mxu1 }
 0x57c   :  { %5015 = vst.msk [vmem:[%s8923_s8 + $0x40] sm:$0xff] %vm3707_vm12, %v3862_v42  ;;  %v5085_v50 = vpop.f32.mrb[27].mxu1 }
 0x57f   :  { %v3867_v14 = vpop.f32.mrb[28].mxu1 }
 0x580   :  { %5016 = vst.msk [vmem:[%s8923_s8 + $0x48] sm:$0xff] %vm3707_vm12, %v3867_v14  ;;  %v5088_v56 = vpop.f32.mrb[29].mxu1 }
 0x583   :  { %v3872_v48 = vpop.f32.mrb[30].mxu1 }
 0x584   :  { %5017 = vst.msk [vmem:[%s8923_s8 + $0x50] sm:$0xff] %vm3707_vm12, %v3872_v48  ;;  %v5091_v55 = vpop.f32.mrb[31].mxu1 }
 0x587   :  { %v3877_v17 = vpop.f32.mrb[32].mxu1 }
 0x588   :  { %5018 = vst.msk [vmem:[%s8923_s8 + $0x58] sm:$0xff] %vm3707_vm12, %v3877_v17  ;;  %v5094_v6 = vpop.f32.mrb[33].mxu1 }
 0x58b   :  { %v3882_v8 = vpop.f32.mrb[34].mxu1 }
 0x58c   :  { %5019 = vst.msk [vmem:[%s8923_s8 + $0x60] sm:$0xff] %vm3707_vm12, %v3882_v8  ;;  %v5097_v10 = vpop.f32.mrb[35].mxu1 }
 0x58f   :  { %v3887_v61 = vpop.f32.mrb[36].mxu1 }
 0x590   :  { %5020 = vst.msk [vmem:[%s8923_s8 + $0x68] sm:$0xff] %vm3707_vm12, %v3887_v61  ;;  %v5100_v21 = vpop.f32.mrb[37].mxu1 }
 0x591   :  { %3911 = vsyncpa [#allocation3], 1 }

</bundles_post_ra>
